<compile_context>
chip_gen: v7x
topology: tpu7x:2x2x1
jax: 0.10.0
libtpu: 0.0.40
codegen_flags: <defaults>
</compile_context>

<pallas_src>
import functools

import jax
import jax.numpy as jnp
from jax import lax
from jax.experimental import pallas as pl
from jax.experimental.pallas import tpu as pltpu

_EPS2 = 1e-24  # (F.normalize eps)^2 ; rsqrt(max(sumsq, eps^2)) ~ x / max(||x||, eps)


def _round_up(x, n):
    return (x + n - 1) // n * n


def _wnorm_t_kernel(w_ref, wt_ref):
    """Row-normalize a (tc, D_pad) weight tile, cast to bf16, write it transposed.

    One-time prepass: the transpose happens here (once per class tile total), so
    the main loop never touches the XLU for weight layout.
    """
    w = w_ref[...].astype(jnp.float32)
    inv = lax.rsqrt(jnp.maximum(jnp.sum(w * w, axis=-1, keepdims=True), _EPS2))
    wt_ref[...] = jnp.transpose(w * inv).astype(jnp.bfloat16)   # (D_pad, tc)


def _cosface_kernel(x_ref, wt_ref, label_ref, *refs, s, m, n_valid_classes,
                    needs_mask, with_logits):
    if with_logits:
        logits_ref, loss_ref, xs_sc, l_sc, t_sc = refs
    else:
        logits_ref = None
        loss_ref, xs_sc, l_sc, t_sc = refs

    j = pl.program_id(1)              # class-tile index (inner, "arbitrary")
    n_c = pl.num_programs(1)
    tb = xs_sc.shape[0]
    tc = wt_ref.shape[1]

    @pl.when(j == 0)
    def _init():
        # Normalize x, fold the s scale in, cast to bf16 -- once per batch tile.
        x = x_ref[...].astype(jnp.float32)
        inv = lax.rsqrt(jnp.maximum(jnp.sum(x * x, axis=-1, keepdims=True), _EPS2))
        xs_sc[...] = (x * (inv * s)).astype(jnp.bfloat16)
        l_sc[...] = jnp.zeros_like(l_sc)
        t_sc[...] = jnp.zeros_like(t_sc)

    # (tb, tc) = s * cosine.  Plain (M,K)x(K,N): bf16 operands, f32 accumulation,
    # no per-tile transpose (W^T was produced by the prepass).
    sc = jnp.dot(xs_sc[...], wt_ref[...], preferred_element_type=jnp.float32)

    col = lax.broadcasted_iota(jnp.int32, (tb, tc), 1) + j * tc
    is_tgt = col == label_ref[...]                 # (tb,1) labels broadcast over tc
    # output = onehot*(cos - m) + (1-onehot)*cos, then *s  ==  s*cos - s*m at target.
    logits = jnp.where(is_tgt, sc - (s * m), sc)

    if with_logits:
        # Padded class columns are sliced away in the wrapper; no masking needed.
        logits_ref[...] = logits.astype(logits_ref.dtype)

    # Target logit accumulator (padded columns can never match a valid label).
    t_sc[...] = t_sc[...] + jnp.sum(jnp.where(is_tgt, logits, 0.0),
                                    axis=-1, keepdims=True)

    # Fixed-max log-sum-exp: CosFace logits are <= s by construction, so no
    # online running max is needed (saves an XLU reduce + rescale per tile).
    p = jnp.exp(logits - s)

    def _accum_l(pv):
        l_sc[...] = l_sc[...] + jnp.sum(pv, axis=-1, keepdims=True)

    if needs_mask:
        # Only the last class tile can contain padded columns; gate the
        # per-element mask so the other n_c-1 tiles skip it entirely.
        is_last = j == n_c - 1

        @pl.when(is_last)
        def _masked():
            _accum_l(jnp.where(col < n_valid_classes, p, 0.0))

        @pl.when(jnp.logical_not(is_last))
        def _unmasked():
            _accum_l(p)
    else:
        _accum_l(p)

    @pl.when(j == n_c - 1)
    def _finalize():
        # Per-row cross entropy: logsumexp - target_logit, with fixed max = s.
        loss_col = s + jnp.log(l_sc[...]) - t_sc[...]          # (tb, 1)
        # Lane-dense store: relayout (tb,1) -> (1,tb) via select+reduce over
        # sublanes (runs once per batch tile; avoids a skinny transpose).
        eye = (lax.broadcasted_iota(jnp.int32, (tb, tb), 0)
               == lax.broadcasted_iota(jnp.int32, (tb, tb), 1))
        loss_ref[...] = jnp.sum(jnp.where(eye, loss_col, 0.0),
                                axis=0, keepdims=True)


def cosface_forward(x, weight, label, *, s=64.0, m=0.35,
                    block_b=None, block_c=None,
                    return_logits=True, logits_dtype=jnp.float32,
                    weight_buffers=None, batch_core_parallel=False):
    """CosFace forward.

    Returns (scaled logits (B, C), mean cross-entropy loss) if return_logits,
    else just the mean loss (skips the B*C logits HBM writeback entirely).
    """
    B, D = x.shape
    C, D2 = weight.shape
    assert D == D2

    D_pad = _round_up(D, 128)          # lane-dense feature dim / full MXU depth

    # ---- tile-size selection -------------------------------------------------
    if block_b is None:
        if B >= 256:
            # At least two batch tiles so both v7x TensorCores get work.
            block_b = min(512, _round_up(pl.cdiv(B, 2), 128))
        else:
            block_b = _round_up(B, 8)
    block_b = _round_up(block_b, 8)
    if _round_up(B, block_b) > block_b:
        # Multi-tile batch grid: keep the lane-dense loss tile 128-aligned.
        block_b = _round_up(block_b, 128)

    if block_c is None:
        target = min(2048, _round_up(C, 128))
        block_c = _round_up(pl.cdiv(C, pl.cdiv(C, target)), 128)
    block_c = _round_up(block_c, 128)

    B_pad = _round_up(B, block_b)
    C_pad = _round_up(C, block_c)
    n_b = B_pad // block_b
    n_c = C_pad // block_c
    needs_mask = C_pad != C

    # ---- pad inputs (zero feature columns change neither norms nor dots) -----
    xf = x.astype(jnp.float32)
    if B_pad != B or D_pad != D:
        xf = jnp.pad(xf, ((0, B_pad - B), (0, D_pad - D)))
    wf = weight.astype(jnp.float32)
    if C_pad != C or D_pad != D:
        wf = jnp.pad(wf, ((0, C_pad - C), (0, D_pad - D)))
    lab = label.astype(jnp.int32).reshape(-1, 1)
    if B_pad != B:
        lab = jnp.pad(lab, ((0, B_pad - B), (0, 0)))

    # ---- prepass: normalize weight rows once, emit transposed bf16 (D_pad, C_pad)
    pre_vmem = 2 * (block_c * D_pad * 4 + D_pad * block_c * 2)
    pre_limit = min(max(int(pre_vmem * 1.5) + (4 << 20), 16 << 20), 64 << 20)
    w_t = pl.pallas_call(
        _wnorm_t_kernel,
        out_shape=jax.ShapeDtypeStruct((D_pad, C_pad), jnp.bfloat16),
        grid=(n_c,),
        in_specs=[pl.BlockSpec((block_c, D_pad), lambda i: (i, 0))],
        out_specs=pl.BlockSpec((D_pad, block_c), lambda i: (0, i)),
        compiler_params=pltpu.CompilerParams(
            dimension_semantics=("parallel",), vmem_limit_bytes=pre_limit),
    )(wf)

    # ---- main kernel ----------------------------------------------------------
    kernel = functools.partial(
        _cosface_kernel, s=float(s), m=float(m), n_valid_classes=C,
        needs_mask=needs_mask, with_logits=return_logits)

    logits_itemsize = jnp.dtype(logits_dtype).itemsize
    logits_out_bytes = B_pad * C_pad * logits_itemsize if return_logits else 0
    cost = pl.CostEstimate(
        flops=2 * B_pad * C_pad * D_pad,
        transcendentals=B_pad * C_pad,
        bytes_accessed=(n_b * C_pad * D_pad * 2      # W^T re-streamed per batch tile
                        + B_pad * D_pad * 4          # x
                        + B_pad * 4                  # labels
                        + logits_out_bytes           # logits writeback (if any)
                        + B_pad * 4),                # per-row losses
    )

    # Explicit VMEM budget (scoped defaults: 16 MiB v5e, 32 MiB v6e/v7x; 64 MiB
    # physical on v7x is the binding cap across generations).
    n_wbuf = int(weight_buffers) if weight_buffers else 2
    vmem_est = (2 * block_b * D_pad * 4                    # x tiles
                + n_wbuf * D_pad * block_c * 2             # W^T tiles
                + 2 * (block_b * block_c * logits_itemsize if return_logits else 0)
                + 4 * block_b * 4                          # labels + loss tiles
                + block_b * D_pad * 2                      # xs scratch (bf16)
                + 2 * block_b * 4)                         # l, t scratch
    vmem_limit = min(max(int(vmem_est * 1.5) + (4 << 20), 16 << 20), 64 << 20)

    if batch_core_parallel:
        dim_sem = (pltpu.CORE_PARALLEL, pltpu.ARBITRARY)   # force cross-TC sharding (v7x)
    else:
        dim_sem = ("parallel", "arbitrary")

    if weight_buffers is not None and n_wbuf != 2:
        w_spec = pl.BlockSpec((D_pad, block_c), lambda i, j: (0, j),
                              pipeline_mode=pl.Buffered(n_wbuf))
    else:
        w_spec = pl.BlockSpec((D_pad, block_c), lambda i, j: (0, j))

    loss_sds = jax.ShapeDtypeStruct((1, B_pad), jnp.float32)
    loss_spec = pl.BlockSpec((1, block_b), lambda i, j: (0, i))
    if return_logits:
        out_shape = (jax.ShapeDtypeStruct((B_pad, C_pad), logits_dtype), loss_sds)
        out_specs = (pl.BlockSpec((block_b, block_c), lambda i, j: (i, j)), loss_spec)
    else:
        out_shape = loss_sds
        out_specs = loss_spec

    result = pl.pallas_call(
        kernel,
        out_shape=out_shape,
        grid_spec=pltpu.PrefetchScalarGridSpec(
            num_scalar_prefetch=0,
            grid=(n_b, n_c),
            in_specs=[
                pl.BlockSpec((block_b, D_pad), lambda i, j: (i, 0)),   # x
                w_spec,                                                # normalized W^T (bf16)
                pl.BlockSpec((block_b, 1), lambda i, j: (i, 0)),       # labels
            ],
            out_specs=out_specs,
            scratch_shapes=[
                pltpu.VMEM((block_b, D_pad), jnp.bfloat16),   # s * normalized x
                pltpu.VMEM((block_b, 1), jnp.float32),        # running sum-exp(logit - s)
                pltpu.VMEM((block_b, 1), jnp.float32),        # target logit
            ],
        ),
        compiler_params=pltpu.CompilerParams(
            dimension_semantics=dim_sem, vmem_limit_bytes=vmem_limit),
        cost_estimate=cost,
    )(xf, w_t, lab)

    if return_logits:
        logits_pad, loss_rows = result
        loss = jnp.mean(loss_rows[0, :B])
        return logits_pad[:B, :C], loss
    loss_rows = result
    return jnp.mean(loss_rows[0, :B])


def _reference(x, weight, label, s=64.0, m=0.35):
    # Mirrors the kernel numerics (rsqrt normalization, bf16 MXU operands with
    # f32 accumulation); matches torch F.normalize up to eps semantics.
    xf = x.astype(jnp.float32)
    wf = weight.astype(jnp.float32)
    x_n = xf * lax.rsqrt(jnp.maximum(jnp.sum(xf * xf, -1, keepdims=True), _EPS2))
    w_n = wf * lax.rsqrt(jnp.maximum(jnp.sum(wf * wf, -1, keepdims=True), _EPS2))
    s_cos = jnp.dot((x_n * s).astype(jnp.bfloat16),
                    w_n.astype(jnp.bfloat16).T,
                    preferred_element_type=jnp.float32)
    one_hot = jax.nn.one_hot(label, weight.shape[0], dtype=jnp.float32)
    logits = s_cos - (s * m) * one_hot
    logp = jax.nn.log_softmax(logits, axis=-1)
    loss = -jnp.mean(jnp.sum(one_hot * logp, axis=-1))
    return logits, loss


if __name__ == "__main__":
    # Small but grid-exercising shapes: 300x64 features, 600 classes.
    # block_b=128, block_c=256 -> grid (3, 3) with padded B (384), C (768), D (128).
    B, in_features, out_features = 300, 64, 600
    s_, m_ = 64.0, 0.35

    key = jax.random.PRNGKey(0)
    kx, kw, kl = jax.random.split(key, 3)

    x = jax.random.normal(kx, (B, in_features), dtype=jnp.float32)

    # Deterministic Xavier-uniform init of weight (out_features, in_features).
    bound = (6.0 / (in_features + out_features)) ** 0.5
    weight = jax.random.uniform(
        kw, (out_features, in_features), dtype=jnp.float32,
        minval=-bound, maxval=bound)

    label = jax.random.randint(kl, (B,), 0, out_features, dtype=jnp.int32)

    fwd = jax.jit(functools.partial(
        cosface_forward, s=s_, m=m_, block_b=128, block_c=256))
    logits, loss = fwd(x, weight, label)
    jax.block_until_ready((logits, loss))

    # Loss-only mode: skips the (B, C) logits HBM writeback entirely.
    loss_only = jax.jit(functools.partial(
        cosface_forward, s=s_, m=m_, block_b=128, block_c=256,
        return_logits=False))
    loss2 = loss_only(x, weight, label)
    jax.block_until_ready(loss2)

    ref_logits, ref_loss = _reference(x, weight, label, s_, m_)
    assert logits.shape == (B, out_features)
    # Tolerances sized for bf16 MXU operands (logits span ~[-86, 64]).
    assert jnp.allclose(logits, ref_logits, atol=1e-1, rtol=5e-3), "logits mismatch"
    assert jnp.allclose(loss, ref_loss, atol=5e-2, rtol=5e-3), "loss mismatch"
    assert jnp.allclose(loss2, ref_loss, atol=5e-2, rtol=5e-3), "loss-only mismatch"

    print("KERNEL_OK")
</pallas_src>

<mosaic_0001>
module attributes {stable_mosaic.version = 11 : i64} {
  func.func @_wnorm_t_kernel(%arg0: i32, %arg1: memref<256x128xf32, #tpu.memory_space<vmem>>, %arg2: memref<128x256xbf16, #tpu.memory_space<vmem>>) attributes {dimension_semantics = [#tpu.dimension_semantics<parallel>], iteration_bounds = array<i64: 3>, scalar_prefetch = 0 : i64, scratch_operands = 0 : i64, tpu.core_type = #tpu.core_type<tc>, window_params = [{transform_indices = @transform_0, window_bounds = array<i64: 256, 128>}, {transform_indices = @transform_1, window_bounds = array<i64: 128, 256>}]} {
    %c0 = arith.constant 0 : index
    %c0_0 = arith.constant 0 : index
    %0 = vector.load %arg1[%c0, %c0_0] : memref<256x128xf32, #tpu.memory_space<vmem>>, vector<256x128xf32>
    %1 = arith.mulf %0, %0 : vector<256x128xf32>
    %cst = arith.constant dense<0.000000e+00> : vector<256xf32>
    %2 = vector.multi_reduction <add>, %1, %cst [1] : vector<256x128xf32> to vector<256xf32>
    %3 = vector.shape_cast %2 : vector<256xf32> to vector<256x1xf32>
    %cst_1 = arith.constant 1.000000e-24 : f32
    %4 = vector.broadcast %cst_1 : f32 to vector<256x1xf32>
    %5 = arith.maximumf %3, %4 : vector<256x1xf32>
    %6 = math.rsqrt %5 : vector<256x1xf32>
    %7 = vector.broadcast %6 : vector<256x1xf32> to vector<256x128xf32>
    %8 = arith.mulf %0, %7 : vector<256x128xf32>
    %9 = tpu.transpose %8, [1, 0] : vector<256x128xf32> -> vector<128x256xf32>
    %10 = arith.truncf %9 : vector<128x256xf32> to vector<128x256xbf16>
    %c0_2 = arith.constant 0 : index
    %c0_3 = arith.constant 0 : index
    %11 = vector.load %arg2[%c0_2, %c0_3] : memref<128x256xbf16, #tpu.memory_space<vmem>>, vector<128x256xbf16>
    tpu.vector_store %arg2[%c0_2, %c0_3], %10 {strides = array<i32>} : memref<128x256xbf16, #tpu.memory_space<vmem>>, vector<128x256xbf16>,
    return
  }
  func.func @transform_0(%arg0: i32) -> (i32, i32) {
    %c0_i32 = arith.constant 0 : i32
    %c0_i32_0 = arith.constant 0 : i32
    return %arg0, %c0_i32 : i32, i32
  }
  func.func @transform_1(%arg0: i32) -> (i32, i32) {
    %c0_i32 = arith.constant 0 : i32
    %c0_i32_0 = arith.constant 0 : i32
    return %c0_i32, %arg0 : i32, i32
  }
}

module attributes {stable_mosaic.version = 11 : i64} {
  func.func @_cosface_kernel(%arg0: i32, %arg1: i32, %arg2: memref<128x128xf32, #tpu.memory_space<vmem>>, %arg3: memref<128x256xbf16, #tpu.memory_space<vmem>>, %arg4: memref<128x1xi32, #tpu.memory_space<vmem>>, %arg5: memref<128x256xf32, #tpu.memory_space<vmem>>, %arg6: memref<1x128xf32, #tpu.memory_space<vmem>>, %arg7: memref<128x128xbf16, #tpu.memory_space<vmem>>, %arg8: memref<128x1xf32, #tpu.memory_space<vmem>>, %arg9: memref<128x1xf32, #tpu.memory_space<vmem>>) attributes {dimension_semantics = [#tpu.dimension_semantics<parallel>, #tpu.dimension_semantics<arbitrary>], iteration_bounds = array<i64: 3, 3>, scalar_prefetch = 0 : i64, scratch_operands = 3 : i64, tpu.core_type = #tpu.core_type<tc>, window_params = [{transform_indices = @transform_0, window_bounds = array<i64: 128, 128>}, {transform_indices = @transform_1, window_bounds = array<i64: 128, 256>}, {transform_indices = @transform_2, window_bounds = array<i64: 128, 1>}, {transform_indices = @transform_3, window_bounds = array<i64: 128, 256>}, {transform_indices = @transform_4, window_bounds = array<i64: 1, 128>}]} {
    %c0_i32 = arith.constant 0 : i32
    %0 = arith.cmpi eq, %arg1, %c0_i32 : i32
    %1 = arith.extui %0 : i1 to i32
    %c0_i32_0 = arith.constant 0 : i32
    %2 = arith.cmpi ne, %1, %c0_i32_0 : i32
    scf.if %2 {
      %c0_20 = arith.constant 0 : index
      %c0_21 = arith.constant 0 : index
      %36 = vector.load %arg2[%c0_20, %c0_21] : memref<128x128xf32, #tpu.memory_space<vmem>>, vector<128x128xf32>
      %37 = arith.mulf %36, %36 : vector<128x128xf32>
      %cst_22 = arith.constant dense<0.000000e+00> : vector<128xf32>
      %38 = vector.multi_reduction <add>, %37, %cst_22 [1] : vector<128x128xf32> to vector<128xf32>
      %39 = vector.shape_cast %38 : vector<128xf32> to vector<128x1xf32>
      %cst_23 = arith.constant 1.000000e-24 : f32
      %40 = vector.broadcast %cst_23 : f32 to vector<128x1xf32>
      %41 = arith.maximumf %39, %40 : vector<128x1xf32>
      %42 = math.rsqrt %41 : vector<128x1xf32>
      %cst_24 = arith.constant 6.400000e+01 : f32
      %43 = vector.broadcast %cst_24 : f32 to vector<128x1xf32>
      %44 = arith.mulf %42, %43 : vector<128x1xf32>
      %45 = vector.broadcast %44 : vector<128x1xf32> to vector<128x128xf32>
      %46 = arith.mulf %36, %45 : vector<128x128xf32>
      %47 = arith.truncf %46 : vector<128x128xf32> to vector<128x128xbf16>
      %c0_25 = arith.constant 0 : index
      %c0_26 = arith.constant 0 : index
      %48 = vector.load %arg7[%c0_25, %c0_26] : memref<128x128xbf16, #tpu.memory_space<vmem>>, vector<128x128xbf16>
      tpu.vector_store %arg7[%c0_25, %c0_26], %47 {strides = array<i32>} : memref<128x128xbf16, #tpu.memory_space<vmem>>, vector<128x128xbf16>,
      %cst_27 = arith.constant 0.000000e+00 : f32
      %49 = vector.broadcast %cst_27 : f32 to vector<128x1xf32>
      %c0_28 = arith.constant 0 : index
      %c0_29 = arith.constant 0 : index
      %50 = vector.load %arg8[%c0_28, %c0_29] : memref<128x1xf32, #tpu.memory_space<vmem>>, vector<128x1xf32>
      tpu.vector_store %arg8[%c0_28, %c0_29], %49 {strides = array<i32>} : memref<128x1xf32, #tpu.memory_space<vmem>>, vector<128x1xf32>,
      %cst_30 = arith.constant 0.000000e+00 : f32
      %51 = vector.broadcast %cst_30 : f32 to vector<128x1xf32>
      %c0_31 = arith.constant 0 : index
      %c0_32 = arith.constant 0 : index
      %52 = vector.load %arg9[%c0_31, %c0_32] : memref<128x1xf32, #tpu.memory_space<vmem>>, vector<128x1xf32>
      tpu.vector_store %arg9[%c0_31, %c0_32], %51 {strides = array<i32>} : memref<128x1xf32, #tpu.memory_space<vmem>>, vector<128x1xf32>,
    } else {
    }
    %c0 = arith.constant 0 : index
    %c0_1 = arith.constant 0 : index
    %3 = vector.load %arg7[%c0, %c0_1] : memref<128x128xbf16, #tpu.memory_space<vmem>>, vector<128x128xbf16>
    %c0_2 = arith.constant 0 : index
    %c0_3 = arith.constant 0 : index
    %4 = vector.load %arg3[%c0_2, %c0_3] : memref<128x256xbf16, #tpu.memory_space<vmem>>, vector<128x256xbf16>
    %cst = arith.constant dense<0.000000e+00> : vector<128x256xf32>
    %5 = tpu.matmul %3, %4, %cst {dimension_numbers = #tpu.dot_dimension_numbers<[1], [0], [0], [1], [0, 0, 1, 1], [], []>} : vector<128x128xbf16>, vector<128x256xbf16>, vector<128x256xf32> -> vector<128x256xf32>
    %6 = tpu.iota {dimensions = array<i32: 1>} : vector<128x256xi32>
    %c256_i32 = arith.constant 256 : i32
    %7 = arith.muli %arg1, %c256_i32 : i32
    %8 = vector.broadcast %7 : i32 to vector<128x256xi32>
    %9 = arith.addi %6, %8 : vector<128x256xi32>
    %c0_4 = arith.constant 0 : index
    %c0_5 = arith.constant 0 : index
    %10 = vector.load %arg4[%c0_4, %c0_5] : memref<128x1xi32, #tpu.memory_space<vmem>>, vector<128x1xi32>
    %11 = vector.broadcast %10 : vector<128x1xi32> to vector<128x256xi32>
    %12 = arith.cmpi eq, %9, %11 : vector<128x256xi32>
    %cst_6 = arith.constant 2.240000e+01 : f32
    %13 = vector.broadcast %cst_6 : f32 to vector<128x256xf32>
    %14 = arith.subf %5, %13 : vector<128x256xf32>
    %15 = arith.select %12, %14, %5 : vector<128x256xi1>, vector<128x256xf32>
    %c0_7 = arith.constant 0 : index
    %c0_8 = arith.constant 0 : index
    %16 = vector.load %arg5[%c0_7, %c0_8] : memref<128x256xf32, #tpu.memory_space<vmem>>, vector<128x256xf32>
    tpu.vector_store %arg5[%c0_7, %c0_8], %15 {strides = array<i32>} : memref<128x256xf32, #tpu.memory_space<vmem>>, vector<128x256xf32>,
    %c0_9 = arith.constant 0 : index
    %c0_10 = arith.constant 0 : index
    %17 = vector.load %arg9[%c0_9, %c0_10] : memref<128x1xf32, #tpu.memory_space<vmem>>, vector<128x1xf32>
    %cst_11 = arith.constant 0.000000e+00 : f32
    %18 = vector.broadcast %cst_11 : f32 to vector<128x256xf32>
    %19 = arith.select %12, %15, %18 : vector<128x256xi1>, vector<128x256xf32>
    %cst_12 = arith.constant dense<0.000000e+00> : vector<128xf32>
    %20 = vector.multi_reduction <add>, %19, %cst_12 [1] : vector<128x256xf32> to vector<128xf32>
    %21 = vector.shape_cast %20 : vector<128xf32> to vector<128x1xf32>
    %22 = arith.addf %17, %21 : vector<128x1xf32>
    %c0_13 = arith.constant 0 : index
    %c0_14 = arith.constant 0 : index
    %23 = vector.load %arg9[%c0_13, %c0_14] : memref<128x1xf32, #tpu.memory_space<vmem>>, vector<128x1xf32>
    tpu.vector_store %arg9[%c0_13, %c0_14], %22 {strides = array<i32>} : memref<128x1xf32, #tpu.memory_space<vmem>>, vector<128x1xf32>,
    %cst_15 = arith.constant 6.400000e+01 : f32
    %24 = vector.broadcast %cst_15 : f32 to vector<128x256xf32>
    %25 = arith.subf %15, %24 : vector<128x256xf32>
    %26 = math.exp %25 : vector<128x256xf32>
    %c2_i32 = arith.constant 2 : i32
    %27 = arith.cmpi eq, %arg1, %c2_i32 : i32
    %28 = arith.extui %27 : i1 to i32
    %c0_i32_16 = arith.constant 0 : i32
    %29 = arith.cmpi ne, %28, %c0_i32_16 : i32
    scf.if %29 {
      %c600_i32 = arith.constant 600 : i32
      %36 = vector.broadcast %c600_i32 : i32 to vector<128x256xi32>
      %37 = arith.cmpi slt, %9, %36 : vector<128x256xi32>
      %cst_20 = arith.constant 0.000000e+00 : f32
      %38 = vector.broadcast %cst_20 : f32 to vector<128x256xf32>
      %39 = arith.select %37, %26, %38 : vector<128x256xi1>, vector<128x256xf32>
      %c0_21 = arith.constant 0 : index
      %c0_22 = arith.constant 0 : index
      %40 = vector.load %arg8[%c0_21, %c0_22] : memref<128x1xf32, #tpu.memory_space<vmem>>, vector<128x1xf32>
      %cst_23 = arith.constant dense<0.000000e+00> : vector<128xf32>
      %41 = vector.multi_reduction <add>, %39, %cst_23 [1] : vector<128x256xf32> to vector<128xf32>
      %42 = vector.shape_cast %41 : vector<128xf32> to vector<128x1xf32>
      %43 = arith.addf %40, %42 : vector<128x1xf32>
      %c0_24 = arith.constant 0 : index
      %c0_25 = arith.constant 0 : index
      %44 = vector.load %arg8[%c0_24, %c0_25] : memref<128x1xf32, #tpu.memory_space<vmem>>, vector<128x1xf32>
      tpu.vector_store %arg8[%c0_24, %c0_25], %43 {strides = array<i32>} : memref<128x1xf32, #tpu.memory_space<vmem>>, vector<128x1xf32>,
    } else {
    }
    %true = arith.constant true
    %30 = arith.xori %27, %true : i1
    %31 = arith.extui %30 : i1 to i32
    %c0_i32_17 = arith.constant 0 : i32
    %32 = arith.cmpi ne, %31, %c0_i32_17 : i32
    scf.if %32 {
      %c0_20 = arith.constant 0 : index
      %c0_21 = arith.constant 0 : index
      %36 = vector.load %arg8[%c0_20, %c0_21] : memref<128x1xf32, #tpu.memory_space<vmem>>, vector<128x1xf32>
      %cst_22 = arith.constant dense<0.000000e+00> : vector<128xf32>
      %37 = vector.multi_reduction <add>, %26, %cst_22 [1] : vector<128x256xf32> to vector<128xf32>
      %38 = vector.shape_cast %37 : vector<128xf32> to vector<128x1xf32>
      %39 = arith.addf %36, %38 : vector<128x1xf32>
      %c0_23 = arith.constant 0 : index
      %c0_24 = arith.constant 0 : index
      %40 = vector.load %arg8[%c0_23, %c0_24] : memref<128x1xf32, #tpu.memory_space<vmem>>, vector<128x1xf32>
      tpu.vector_store %arg8[%c0_23, %c0_24], %39 {strides = array<i32>} : memref<128x1xf32, #tpu.memory_space<vmem>>, vector<128x1xf32>,
    } else {
    }
    %c2_i32_18 = arith.constant 2 : i32
    %33 = arith.cmpi eq, %arg1, %c2_i32_18 : i32
    %34 = arith.extui %33 : i1 to i32
    %c0_i32_19 = arith.constant 0 : i32
    %35 = arith.cmpi ne, %34, %c0_i32_19 : i32
    scf.if %35 {
      %c0_20 = arith.constant 0 : index
      %c0_21 = arith.constant 0 : index
      %36 = vector.load %arg8[%c0_20, %c0_21] : memref<128x1xf32, #tpu.memory_space<vmem>>, vector<128x1xf32>
      %37 = math.log %36 : vector<128x1xf32>
      %cst_22 = arith.constant 6.400000e+01 : f32
      %38 = vector.broadcast %cst_22 : f32 to vector<128x1xf32>
      %39 = arith.addf %38, %37 : vector<128x1xf32>
      %c0_23 = arith.constant 0 : index
      %c0_24 = arith.constant 0 : index
      %40 = vector.load %arg9[%c0_23, %c0_24] : memref<128x1xf32, #tpu.memory_space<vmem>>, vector<128x1xf32>
      %41 = arith.subf %39, %40 : vector<128x1xf32>
      %42 = tpu.iota {dimensions = array<i32: 0>} : vector<128x128xi32>
      %43 = tpu.iota {dimensions = array<i32: 1>} : vector<128x128xi32>
      %44 = arith.cmpi eq, %42, %43 : vector<128x128xi32>
      %cst_25 = arith.constant 0.000000e+00 : f32
      %45 = vector.shape_cast %41 : vector<128x1xf32> to vector<128x1xf32>
      %46 = vector.broadcast %45 : vector<128x1xf32> to vector<128x128xf32>
      %47 = vector.broadcast %cst_25 : f32 to vector<128x128xf32>
      %48 = arith.select %44, %46, %47 : vector<128x128xi1>, vector<128x128xf32>
      %cst_26 = arith.constant dense<0.000000e+00> : vector<128xf32>
      %49 = vector.multi_reduction <add>, %48, %cst_26 [0] : vector<128x128xf32> to vector<128xf32>
      %50 = vector.shape_cast %49 : vector<128xf32> to vector<1x128xf32>
      %c0_27 = arith.constant 0 : index
      %c0_28 = arith.constant 0 : index
      %51 = vector.load %arg6[%c0_27, %c0_28] : memref<1x128xf32, #tpu.memory_space<vmem>>, vector<1x128xf32>
      tpu.vector_store %arg6[%c0_27, %c0_28], %50 {strides = array<i32>} : memref<1x128xf32, #tpu.memory_space<vmem>>, vector<1x128xf32>,
    } else {
    }
    return
  }
  func.func @transform_0(%arg0: i32, %arg1: i32) -> (i32, i32) {
    %c0_i32 = arith.constant 0 : i32
    %c0_i32_0 = arith.constant 0 : i32
    return %arg0, %c0_i32 : i32, i32
  }
  func.func @transform_1(%arg0: i32, %arg1: i32) -> (i32, i32) {
    %c0_i32 = arith.constant 0 : i32
    %c0_i32_0 = arith.constant 0 : i32
    return %c0_i32, %arg1 : i32, i32
  }
  func.func @transform_2(%arg0: i32, %arg1: i32) -> (i32, i32) {
    %c0_i32 = arith.constant 0 : i32
    %c0_i32_0 = arith.constant 0 : i32
    return %arg0, %c0_i32 : i32, i32
  }
  func.func @transform_3(%arg0: i32, %arg1: i32) -> (i32, i32) {
    %c0_i32 = arith.constant 0 : i32
    return %arg0, %arg1 : i32, i32
  }
  func.func @transform_4(%arg0: i32, %arg1: i32) -> (i32, i32) {
    %c0_i32 = arith.constant 0 : i32
    %c0_i32_0 = arith.constant 0 : i32
    return %c0_i32, %arg0 : i32, i32
  }
}

</mosaic_0001>

<bundles_post_ra>
// kernel: cosface_forward.2
= control target key start
LH: loop header
LB: loop body
LE: loop exit
PB: predicated region body
PF: predicated region fallthrough
CT: control target
= control target key end

     0   :  { %s946_s6 = smov 0   ;;  %s948_s7 = smov 0   ;;  %s1224_s0 = inlined_call_operand.vmem [shape: f32[768,128], index: 0, kind: input, shape index: {}]   ;;  %s1225_s1 = inlined_call_operand.vmem [shape: bf16[128,768], index: 1, kind: output, shape index: {}]  }
   0x1   :  { %s950_s8 = smov 0  }
   0x2 LB: > { %s959_s9 = sadd.s32 4294967295, %s934_s8   ;;  %s961_s10 = sadd.s32 1, %s934_s8   ;;  %s934_s8 = sphi %s950_s8, %s1229_s8   ;;  %s930_s7 = sphi %s948_s7, %s1228_s7   ;;  %s926_s6 = sphi %s946_s6, %s1227_s6  }
   0x3   : > { %s41_s11 = ssub.s32 %s934_s8, %s961_s10  ;;  %s44_s12 = sadd.s32 1, %s930_s7 }
   0x4   : > { %p42_p0 = scmp.eq.s32.totalorder %s41_s11, 0  ;;  %p54_p1 = scmp.ne.s32.totalorder %s930_s7, %s926_s6 }
   0x5   : > { %p55_p2 = scmp.eq.s32.totalorder %s959_s9, 2  ;;  %p670_p3 = scmp.ge.s32.totalorder %s934_s8, 1 }
   0x6   : > { %s969_s13 = scalar_select %p42_p0, %s930_s7, %s44_s12  }
   0x7   : > { %p971_p4 = por %p55_p2, %p54_p1  ;;  %p88_p5 = scmp.lt.s32.totalorder %s934_s8, 4 }
   0x9   : > { %p89_p6 = pnand %p670_p3, %p88_p5 }
   0xa   : > { %s672_s15 = sshll.u32 (!%p89_p6), %s959_s9, 5  ;;  %s104_s20 = sand.u32 (!%p89_p6), 1, %s926_s6  }
   0xb   : > { %92 = sbr.rel (%p89_p6) target bundleno = 390 (0x186), region = 24  ;;  %p108_p7 = scmp.lt.s32.totalorder (!%p89_p6), %s672_s15, 95 }
   0xc   : > { %s671_s21 = sshll.u32 (!%p89_p6), %s104_s20, 7 }
   0xd   : > { %s1174_s22 = scalar_lea.vmem (!%p89_p6), [#allocation2], %s671_s21 }
  0x12   : > { %s1231_s15 = smov (!%p108_p7, %s672_s15), 95  ;;  %s711_s23 = sshll.u32 (%p971_p4), %s959_s9, 3 }
  0x13   : > { %s673_s16 = sshll.u32 %s1231_s15, 3  ;;  %s523_s26 = scalar_lea.vmem (%p971_p4), %s1225_s1, %s711_s23 }
  0x14   : > { %s979_s19 = scalar_lea.vmem %s1224_s0, %s673_s16 }
  0x15   : > { %v982_v0 = vld [vmem:[%s979_s19 + $0x8] sm:$0xff]  ;;  %v985_v1 = vld [vmem:[%s979_s19] sm:$0xff]  ;;  %v1002_v8 = vld [vmem:[%s979_s19 + $0x90] sm:$0xff] }
  0x16   : > { %v988_v2 = vld [vmem:[%s979_s19 + $0x88] sm:$0xff]  ;;  %v147_v3 = vmul.f32 %v982_v0, %v982_v0  ;;  %v146_v4 = vmul.f32 %v985_v1, %v985_v1  ;;  %v995_v5 = vld [vmem:[%s979_s19 + $0x80] sm:$0xff]  ;;  %v1005_v9 = vld [vmem:[%s979_s19 + $0x10] sm:$0xff]  ;;  %v164_v10 = vmul.f32 %v1002_v8, %v1002_v8 }
  0x17   : > { %v163_v6 = vmul.f32 %v988_v2, %v988_v2  ;;  %v162_v7 = vmul.f32 %v995_v5, %v995_v5  ;;  %v148_v11 = vmul.f32 %v1005_v9, %v1005_v9  ;;  %v1012_v12 = vld [vmem:[%s979_s19 + $0x98] sm:$0xff]  ;;  %v1022_v16 = vld [vmem:[%s979_s19 + $0xa0] sm:$0xff]  ;;  %v1032_v20 = vld [vmem:[%s979_s19 + $0xa8] sm:$0xff] }
  0x18   : > { %180 = vadd.xlane.f32.xlu1 %v147_v3  ;;  %178 = vadd.xlane.f32.xlu0 %v146_v4  ;;  %v1015_v13 = vld [vmem:[%s979_s19 + $0x18] sm:$0xff]  ;;  %v165_v14 = vmul.f32 %v1012_v12, %v1012_v12  ;;  %v1025_v17 = vld [vmem:[%s979_s19 + $0x20] sm:$0xff]  ;;  %v166_v18 = vmul.f32 %v1022_v16, %v1022_v16  ;;  %v1035_v21 = vld [vmem:[%s979_s19 + $0x28] sm:$0xff]  ;;  %v167_v22 = vmul.f32 %v1032_v20, %v1032_v20 }
  0x19   : > { %v149_v15 = vmul.f32 %v1015_v13, %v1015_v13  ;;  %v150_v19 = vmul.f32 %v1025_v17, %v1025_v17  ;;  %v151_v23 = vmul.f32 %v1035_v21, %v1035_v21  ;;  %v1042_v24 = vld [vmem:[%s979_s19 + $0xb0] sm:$0xff]  ;;  %v1052_v28 = vld [vmem:[%s979_s19 + $0xb8] sm:$0xff]  ;;  %v1062_v32 = vld [vmem:[%s979_s19 + $0xc0] sm:$0xff] }
  0x1a   : > { %v1045_v25 = vld [vmem:[%s979_s19 + $0x30] sm:$0xff]  ;;  %v168_v26 = vmul.f32 %v1042_v24, %v1042_v24  ;;  %v1055_v29 = vld [vmem:[%s979_s19 + $0x38] sm:$0xff]  ;;  %v169_v30 = vmul.f32 %v1052_v28, %v1052_v28  ;;  %v1065_v33 = vld [vmem:[%s979_s19 + $0x40] sm:$0xff]  ;;  %v170_v34 = vmul.f32 %v1062_v32, %v1062_v32 }
  0x1b   : > { %v152_v27 = vmul.f32 %v1045_v25, %v1045_v25  ;;  %v153_v31 = vmul.f32 %v1055_v29, %v1055_v29  ;;  %v154_v35 = vmul.f32 %v1065_v33, %v1065_v33  ;;  %v1072_v36 = vld [vmem:[%s979_s19 + $0xc8] sm:$0xff]  ;;  %v1082_v40 = vld [vmem:[%s979_s19 + $0xd0] sm:$0xff]  ;;  %v1092_v44 = vld [vmem:[%s979_s19 + $0xd8] sm:$0xff] }
  0x1c   : > { %212 = vadd.xlane.f32.xlu1 %v163_v6  ;;  %210 = vadd.xlane.f32.xlu0 %v162_v7  ;;  %v1075_v37 = vld [vmem:[%s979_s19 + $0x48] sm:$0xff]  ;;  %v171_v38 = vmul.f32 %v1072_v36, %v1072_v36  ;;  %v1085_v41 = vld [vmem:[%s979_s19 + $0x50] sm:$0xff]  ;;  %v172_v42 = vmul.f32 %v1082_v40, %v1082_v40  ;;  %v1095_v45 = vld [vmem:[%s979_s19 + $0x58] sm:$0xff]  ;;  %v173_v46 = vmul.f32 %v1092_v44, %v1092_v44 }
  0x1d   : > { %v155_v39 = vmul.f32 %v1075_v37, %v1075_v37  ;;  %v156_v43 = vmul.f32 %v1085_v41, %v1085_v41  ;;  %v157_v47 = vmul.f32 %v1095_v45, %v1095_v45  ;;  %v1102_v48 = vld [vmem:[%s979_s19 + $0xe0] sm:$0xff]  ;;  %v1112_v52 = vld [vmem:[%s979_s19 + $0xe8] sm:$0xff]  ;;  %v1122_v56 = vld [vmem:[%s979_s19 + $0xf0] sm:$0xff] }
  0x1e   : > { %v1105_v49 = vld [vmem:[%s979_s19 + $0x60] sm:$0xff]  ;;  %v174_v50 = vmul.f32 %v1102_v48, %v1102_v48  ;;  %v1115_v53 = vld [vmem:[%s979_s19 + $0x68] sm:$0xff]  ;;  %v175_v54 = vmul.f32 %v1112_v52, %v1112_v52  ;;  %v1125_v57 = vld [vmem:[%s979_s19 + $0x70] sm:$0xff]  ;;  %v176_v58 = vmul.f32 %v1122_v56, %v1122_v56 }
  0x1f   : > { %v158_v51 = vmul.f32 %v1105_v49, %v1105_v49  ;;  %v159_v55 = vmul.f32 %v1115_v53, %v1115_v53  ;;  %v160_v59 = vmul.f32 %v1125_v57, %v1125_v57  ;;  %v1132_v60 = vld [vmem:[%s979_s19 + $0xf8] sm:$0xff] }
  0x20   : > { %214 = vadd.xlane.f32.xlu1 %v164_v10  ;;  %182 = vadd.xlane.f32.xlu0 %v148_v11  ;;  %v1135_v61 = vld [vmem:[%s979_s19 + $0x78] sm:$0xff]  ;;  %v177_v62 = vmul.f32 %v1132_v60, %v1132_v60 }
  0x21   : > { %v161_v63 = vmul.f32 %v1135_v61, %v1135_v61 }
  0x24   : > { %216 = vadd.xlane.f32.xlu1 %v165_v14  ;;  %184 = vadd.xlane.f32.xlu0 %v149_v15 }
  0x28   : > { %218 = vadd.xlane.f32.xlu1 %v166_v18  ;;  %186 = vadd.xlane.f32.xlu0 %v150_v19 }
  0x2c   : > { %220 = vadd.xlane.f32.xlu1 %v167_v22  ;;  %188 = vadd.xlane.f32.xlu0 %v151_v23 }
  0x30   : > { %222 = vadd.xlane.f32.xlu1 %v168_v26  ;;  %190 = vadd.xlane.f32.xlu0 %v152_v27 }
  0x34   : > { %224 = vadd.xlane.f32.xlu1 %v169_v30  ;;  %192 = vadd.xlane.f32.xlu0 %v153_v31 }
  0x38   : > { %226 = vadd.xlane.f32.xlu1 %v170_v34  ;;  %194 = vadd.xlane.f32.xlu0 %v154_v35 }
  0x3c   : > { %228 = vadd.xlane.f32.xlu1 %v171_v38  ;;  %196 = vadd.xlane.f32.xlu0 %v155_v39 }
  0x40   : > { %230 = vadd.xlane.f32.xlu1 %v172_v42  ;;  %198 = vadd.xlane.f32.xlu0 %v156_v43 }
  0x44   : > { %232 = vadd.xlane.f32.xlu1 %v173_v46  ;;  %200 = vadd.xlane.f32.xlu0 %v157_v47 }
  0x48   : > { %234 = vadd.xlane.f32.xlu1 %v174_v50  ;;  %202 = vadd.xlane.f32.xlu0 %v158_v51 }
  0x4c   : > { %236 = vadd.xlane.f32.xlu1 %v175_v54  ;;  %204 = vadd.xlane.f32.xlu0 %v159_v55 }
  0x50   : > { %238 = vadd.xlane.f32.xlu1 %v176_v58  ;;  %206 = vadd.xlane.f32.xlu0 %v160_v59 }
  0x54   : > { %240 = vadd.xlane.f32.xlu1 %v177_v62  ;;  %208 = vadd.xlane.f32.xlu0 %v161_v63 }
  0xa5   : > { %v181_v3 = vpop.xlane.xlu1 %180  ;;  %v179_v4 = vpop.xlane.xlu0 %178 }
  0xa6   : > { %v243_v6 = vmax.f32 %v181_v3, 1e-24  ;;  %v242_v7 = vmax.f32 %v179_v4, 1e-24 }
  0xa8   : > { %848 = vrsqrt.f32 %v243_v6 }
  0xa9   : > { %v213_v10 = vpop.xlane.xlu1 %212  ;;  %v211_v11 = vpop.xlane.xlu0 %210  ;;  %850 = vrsqrt.f32 %v242_v7 }
  0xaa   : > { %v259_v14 = vmax.f32 %v213_v10, 1e-24  ;;  %v258_v15 = vmax.f32 %v211_v11, 1e-24 }
  0xac   : > { %852 = vrsqrt.f32 %v259_v14 }
  0xad   : > { %854 = vrsqrt.f32 %v258_v15  ;;  %v215_v18 = vpop.xlane.xlu1 %214  ;;  %v183_v19 = vpop.xlane.xlu0 %182 }
  0xae   : > { %v260_v22 = vmax.f32 %v215_v18, 1e-24  ;;  %v244_v23 = vmax.f32 %v183_v19, 1e-24 }
  0xb0   : > { %856 = vrsqrt.f32 %v260_v22 }
  0xb1   : > { %858 = vrsqrt.f32 %v244_v23  ;;  %v217_v26 = vpop.xlane.xlu1 %216  ;;  %v185_v27 = vpop.xlane.xlu0 %184 }
  0xb2   : > { %v261_v30 = vmax.f32 %v217_v26, 1e-24  ;;  %v245_v31 = vmax.f32 %v185_v27, 1e-24  ;;  %v849_v34 = vpop.eup %848 }
  0xb3   : > { %v851_v35 = vpop.eup %850  ;;  %v307_v58 = vmul.f32 %v849_v34, %v982_v0 }
  0xb4   : > { %860 = vrsqrt.f32 %v261_v30  ;;  %v306_v50 = vmul.f32 %v851_v35, %v985_v1 }
  0xb5   : > { %862 = vrsqrt.f32 %v245_v31  ;;  %v219_v38 = vpop.xlane.xlu1 %218  ;;  %v187_v39 = vpop.xlane.xlu0 %186 }
  0xb6   : > { %v853_v42 = vpop.eup %852  ;;  %v262_v43 = vmax.f32 %v219_v38, 1e-24  ;;  %v246_v46 = vmax.f32 %v187_v39, 1e-24 }
  0xb7   : > { %v855_v47 = vpop.eup %854  ;;  %v323_v4 = vmul.f32 %v853_v42, %v988_v2 }
  0xb8   : > { %864 = vrsqrt.f32 %v262_v43  ;;  %v322_v51 = vmul.f32 %v855_v47, %v995_v5 }
  0xb9   : > { %866 = vrsqrt.f32 %v246_v46  ;;  %v221_v54 = vpop.xlane.xlu1 %220  ;;  %v189_v55 = vpop.xlane.xlu0 %188  ;;  %v738_v14 = vpack.i.bf16 %v323_v4, %v307_v58 }
  0xba   : > { %v857_v59 = vpop.eup %856  ;;  %v736_v62 = vpack.i.bf16 %v322_v51, %v306_v50  ;;  %v263_v63 = vmax.f32 %v221_v54, 1e-24  ;;  %v247_v3 = vmax.f32 %v189_v55, 1e-24 }
  0xbb   : > { %v859_v6 = vpop.eup %858  ;;  %v324_v1 = vmul.f32 %v857_v59, %v1002_v8 }
  0xbc   : > { %737 = vxpose.xlu0.b32.start [1/16] %v736_v62, 128  ;;  %868 = vrsqrt.f32 %v263_v63  ;;  %v308_v7 = vmul.f32 %v859_v6, %v1005_v9 }
  0xbd   : > { %870 = vrsqrt.f32 %v247_v3  ;;  %v223_v5 = vpop.xlane.xlu1 %222  ;;  %v191_v10 = vpop.xlane.xlu0 %190 }
  0xbe   : > { %v861_v11 = vpop.eup %860  ;;  %v264_v15 = vmax.f32 %v223_v5, 1e-24  ;;  %v248_v0 = vmax.f32 %v191_v10, 1e-24  ;;  %v740_v19 = vpack.i.bf16 %v324_v1, %v308_v7 }
  0xbf   : > { %v863_v18 = vpop.eup %862  ;;  %v325_v22 = vmul.f32 %v861_v11, %v1012_v12 }
  0xc0   : > { %739 = vxpose.xlu0.b32.cont [2/16] %v738_v14, 128  ;;  %872 = vrsqrt.f32 %v264_v15  ;;  %v309_v2 = vmul.f32 %v863_v18, %v1015_v13 }
  0xc1   : > { %874 = vrsqrt.f32 %v248_v0  ;;  %v225_v23 = vpop.xlane.xlu1 %224  ;;  %v193_v9 = vpop.xlane.xlu0 %192 }
  0xc2   : > { %v865_v26 = vpop.eup %864  ;;  %v265_v8 = vmax.f32 %v225_v23, 1e-24  ;;  %v249_v27 = vmax.f32 %v193_v9, 1e-24  ;;  %v742_v31 = vpack.i.bf16 %v325_v22, %v309_v2 }
  0xc3   : > { %v867_v30 = vpop.eup %866  ;;  %v326_v35 = vmul.f32 %v865_v26, %v1022_v16 }
  0xc4   : > { %741 = vxpose.xlu0.b32.cont [3/16] %v740_v19, 128  ;;  %876 = vrsqrt.f32 %v265_v8  ;;  %v310_v34 = vmul.f32 %v867_v30, %v1025_v17 }
  0xc5   : > { %878 = vrsqrt.f32 %v249_v27  ;;  %v227_v38 = vpop.xlane.xlu1 %226  ;;  %v195_v39 = vpop.xlane.xlu0 %194 }
  0xc6   : > { %v869_v13 = vpop.eup %868  ;;  %v266_v42 = vmax.f32 %v227_v38, 1e-24  ;;  %v250_v12 = vmax.f32 %v195_v39, 1e-24  ;;  %v744_v46 = vpack.i.bf16 %v326_v35, %v310_v34 }
  0xc7   : > { %v871_v43 = vpop.eup %870  ;;  %v327_v50 = vmul.f32 %v869_v13, %v1032_v20 }
  0xc8   : > { %743 = vxpose.xlu0.b32.cont [4/16] %v742_v31, 128  ;;  %880 = vrsqrt.f32 %v266_v42  ;;  %v311_v47 = vmul.f32 %v871_v43, %v1035_v21 }
  0xc9   : > { %882 = vrsqrt.f32 %v250_v12  ;;  %v229_v51 = vpop.xlane.xlu1 %228  ;;  %v197_v54 = vpop.xlane.xlu0 %196 }
  0xca   : > { %v873_v17 = vpop.eup %872  ;;  %v267_v55 = vmax.f32 %v229_v51, 1e-24  ;;  %v251_v16 = vmax.f32 %v197_v54, 1e-24  ;;  %v746_v59 = vpack.i.bf16 %v327_v50, %v311_v47 }
  0xcb   : > { %v875_v58 = vpop.eup %874  ;;  %v328_v63 = vmul.f32 %v873_v17, %v1042_v24 }
  0xcc   : > { %745 = vxpose.xlu0.b32.cont [5/16] %v744_v46, 128  ;;  %884 = vrsqrt.f32 %v267_v55  ;;  %v312_v62 = vmul.f32 %v875_v58, %v1045_v25 }
  0xcd   : > { %886 = vrsqrt.f32 %v251_v16  ;;  %v231_v3 = vpop.xlane.xlu1 %230  ;;  %v199_v4 = vpop.xlane.xlu0 %198 }
  0xce   : > { %v877_v21 = vpop.eup %876  ;;  %v268_v6 = vmax.f32 %v231_v3, 1e-24  ;;  %v252_v20 = vmax.f32 %v199_v4, 1e-24  ;;  %v748_v1 = vpack.i.bf16 %v328_v63, %v312_v62 }
  0xcf   : > { %v879_v7 = vpop.eup %878  ;;  %v329_v10 = vmul.f32 %v877_v21, %v1052_v28 }
  0xd0   : > { %747 = vxpose.xlu0.b32.cont [6/16] %v746_v59, 128  ;;  %888 = vrsqrt.f32 %v268_v6  ;;  %v313_v5 = vmul.f32 %v879_v7, %v1055_v29 }
  0xd1   : > { %890 = vrsqrt.f32 %v252_v20  ;;  %v233_v11 = vpop.xlane.xlu1 %232  ;;  %v201_v14 = vpop.xlane.xlu0 %200 }
  0xd2   : > { %v881_v25 = vpop.eup %880  ;;  %v269_v15 = vmax.f32 %v233_v11, 1e-24  ;;  %v253_v24 = vmax.f32 %v201_v14, 1e-24  ;;  %v750_v18 = vpack.i.bf16 %v329_v10, %v313_v5 }
  0xd3   : > { %v883_v0 = vpop.eup %882  ;;  %v330_v2 = vmul.f32 %v881_v25, %v1062_v32 }
  0xd4   : > { %749 = vxpose.xlu0.b32.cont [7/16] %v748_v1, 128  ;;  %892 = vrsqrt.f32 %v269_v15  ;;  %v314_v19 = vmul.f32 %v883_v0, %v1065_v33 }
  0xd5   : > { %894 = vrsqrt.f32 %v253_v24  ;;  %v235_v22 = vpop.xlane.xlu1 %234  ;;  %v203_v23 = vpop.xlane.xlu0 %202 }
  0xd6   : > { %v885_v29 = vpop.eup %884  ;;  %v270_v9 = vmax.f32 %v235_v22, 1e-24  ;;  %v254_v28 = vmax.f32 %v203_v23, 1e-24  ;;  %v752_v8 = vpack.i.bf16 %v330_v2, %v314_v19 }
  0xd7   : > { %v887_v26 = vpop.eup %886  ;;  %v331_v30 = vmul.f32 %v885_v29, %v1072_v36 }
  0xd8   : > { %751 = vxpose.xlu0.b32.cont [8/16] %v750_v18, 128  ;;  %896 = vrsqrt.f32 %v270_v9  ;;  %v315_v27 = vmul.f32 %v887_v26, %v1075_v37 }
  0xd9   : > { %898 = vrsqrt.f32 %v254_v28  ;;  %v237_v31 = vpop.xlane.xlu1 %236  ;;  %v205_v34 = vpop.xlane.xlu0 %204 }
  0xda   : > { %v889_v33 = vpop.eup %888  ;;  %v271_v35 = vmax.f32 %v237_v31, 1e-24  ;;  %v255_v32 = vmax.f32 %v205_v34, 1e-24  ;;  %v754_v39 = vpack.i.bf16 %v331_v30, %v315_v27 }
  0xdb   : > { %v891_v38 = vpop.eup %890  ;;  %v332_v42 = vmul.f32 %v889_v33, %v1082_v40 }
  0xdc   : > { %753 = vxpose.xlu0.b32.cont [9/16] %v752_v8, 128  ;;  %900 = vrsqrt.f32 %v271_v35  ;;  %v316_v13 = vmul.f32 %v891_v38, %v1085_v41 }
  0xdd   : > { %902 = vrsqrt.f32 %v255_v32  ;;  %v239_v12 = vpop.xlane.xlu1 %238  ;;  %v207_v43 = vpop.xlane.xlu0 %206 }
  0xde   : > { %v893_v37 = vpop.eup %892  ;;  %v272_v46 = vmax.f32 %v239_v12, 1e-24  ;;  %v256_v36 = vmax.f32 %v207_v43, 1e-24  ;;  %v756_v50 = vpack.i.bf16 %v332_v42, %v316_v13 }
  0xdf   : > { %v895_v47 = vpop.eup %894  ;;  %v333_v54 = vmul.f32 %v893_v37, %v1092_v44 }
  0xe0   : > { %755 = vxpose.xlu0.b32.cont [10/16] %v754_v39, 128  ;;  %904 = vrsqrt.f32 %v272_v46  ;;  %v317_v51 = vmul.f32 %v895_v47, %v1095_v45 }
  0xe1   : > { %906 = vrsqrt.f32 %v256_v36  ;;  %v241_v17 = vpop.xlane.xlu1 %240  ;;  %v209_v55 = vpop.xlane.xlu0 %208 }
  0xe2   : > { %v897_v41 = vpop.eup %896  ;;  %v273_v16 = vmax.f32 %v241_v17, 1e-24  ;;  %v257_v40 = vmax.f32 %v209_v55, 1e-24  ;;  %v758_v59 = vpack.i.bf16 %v333_v54, %v317_v51 }
  0xe3   : > { %v899_v58 = vpop.eup %898  ;;  %v334_v63 = vmul.f32 %v897_v41, %v1102_v48 }
  0xe4   : > { %757 = vxpose.xlu0.b32.cont [11/16] %v756_v50, 128  ;;  %908 = vrsqrt.f32 %v273_v16  ;;  %v318_v62 = vmul.f32 %v899_v58, %v1105_v49 }
  0xe5   : > { %910 = vrsqrt.f32 %v257_v40 }
  0xe6   : > { %v901_v3 = vpop.eup %900  ;;  %v760_v45 = vpack.i.bf16 %v334_v63, %v318_v62 }
  0xe7   : > { %v903_v4 = vpop.eup %902  ;;  %v335_v21 = vmul.f32 %v901_v3, %v1112_v52 }
  0xe8   : > { %759 = vxpose.xlu0.b32.cont [12/16] %v758_v59, 128  ;;  %v319_v44 = vmul.f32 %v903_v4, %v1115_v53 }
  0xea   : > { %v905_v6 = vpop.eup %904  ;;  %v762_v7 = vpack.i.bf16 %v335_v21, %v319_v44 }
  0xeb   : > { %v907_v20 = vpop.eup %906  ;;  %v336_v49 = vmul.f32 %v905_v6, %v1122_v56 }
  0xec   : > { %761 = vxpose.xlu0.b32.cont [13/16] %v760_v45, 128  ;;  %v320_v1 = vmul.f32 %v907_v20, %v1125_v57 }
  0xee   : > { %v909_v5 = vpop.eup %908  ;;  %v764_v10 = vpack.i.bf16 %v336_v49, %v320_v1 }
  0xef   : > { %v911_v48 = vpop.eup %910  ;;  %v337_v14 = vmul.f32 %v909_v5, %v1132_v60 }
  0xf0   : > { %763 = vxpose.xlu0.b32.cont [14/16] %v762_v7, 128  ;;  %v321_v11 = vmul.f32 %v911_v48, %v1135_v61 }
  0xf2   : > { %v766_v53 = vpack.i.bf16 %v337_v14, %v321_v11 }
  0xf4   : > { %765 = vxpose.xlu0.b32.cont [15/16] %v764_v10, 128 }
  0xf8   : > { %767 = vxpose.xlu0.b32.end [16/16] %v766_v53, 128 }
 0x13c   : > { %v768_v52 = vpop.trf.xlu0 }
 0x13d   : > { %v772_v25 = vunpack.i.h.bf16 %v768_v52  ;;  %v769_v15 = vunpack.i.l.bf16 %v768_v52 }
 0x13f   : > { %v695_v24 = vpack.c.bf16 %v772_v25, %v769_v15 }
 0x140   : > { %v773_v57 = vpop.trf.xlu0 }
 0x141   : > { %498 = vst [vmem:[%s1174_s22] sm:$0xff] %v695_v24  ;;  %v777_v56 = vunpack.i.h.bf16 %v773_v57  ;;  %v774_v61 = vunpack.i.l.bf16 %v773_v57 }
 0x143   : > { %v696_v60 = vpack.c.bf16 %v777_v56, %v774_v61 }
 0x144   : > { %v778_v0 = vpop.trf.xlu0 }
 0x145   : > { %499 = vst [vmem:[%s1174_s22 + $0x8] sm:$0xff] %v696_v60  ;;  %v782_v18 = vunpack.i.h.bf16 %v778_v0  ;;  %v779_v19 = vunpack.i.l.bf16 %v778_v0 }
 0x147   : > { %v697_v2 = vpack.c.bf16 %v782_v18, %v779_v19 }
 0x148   : > { %v783_v22 = vpop.trf.xlu0  ;;  %v581_v52 = vld [vmem:[%s1174_s22] sm:$0xff] (%p971_p4) }
 0x149   : > { %500 = vst [vmem:[%s1174_s22 + $0x10] sm:$0xff] %v697_v2  ;;  %v787_v23 = vunpack.i.h.bf16 %v783_v22  ;;  %v784_v29 = vunpack.i.l.bf16 %v783_v22  ;;  %582 = vst [vmem:[%s523_s26] sm:$0xff] (%p971_p4), %v581_v52 }
 0x14b   : > { %v698_v9 = vpack.c.bf16 %v787_v23, %v784_v29 }
 0x14c   : > { %v788_v28 = vpop.trf.xlu0  ;;  %v583_v25 = vld [vmem:[%s1174_s22 + $0x8] sm:$0xff] (%p971_p4) }
 0x14d   : > { %501 = vst [vmem:[%s1174_s22 + $0x18] sm:$0xff] %v698_v9  ;;  %v792_v26 = vunpack.i.h.bf16 %v788_v28  ;;  %v789_v8 = vunpack.i.l.bf16 %v788_v28  ;;  %584 = vst [vmem:[%s523_s26 + $0x18] sm:$0xff] (%p971_p4), %v583_v25 }
 0x14f   : > { %v699_v27 = vpack.c.bf16 %v792_v26, %v789_v8 }
 0x150   : > { %v793_v30 = vpop.trf.xlu0  ;;  %v585_v15 = vld [vmem:[%s1174_s22 + $0x10] sm:$0xff] (%p971_p4) }
 0x151   : > { %502 = vst [vmem:[%s1174_s22 + $0x20] sm:$0xff] %v699_v27  ;;  %v797_v31 = vunpack.i.h.bf16 %v793_v30  ;;  %v794_v34 = vunpack.i.l.bf16 %v793_v30  ;;  %586 = vst [vmem:[%s523_s26 + $0x30] sm:$0xff] (%p971_p4), %v585_v15 }
 0x153   : > { %v700_v33 = vpack.c.bf16 %v797_v31, %v794_v34 }
 0x154   : > { %v798_v35 = vpop.trf.xlu0  ;;  %v587_v24 = vld [vmem:[%s1174_s22 + $0x18] sm:$0xff] (%p971_p4) }
 0x155   : > { %503 = vst [vmem:[%s1174_s22 + $0x28] sm:$0xff] %v700_v33  ;;  %v802_v32 = vunpack.i.h.bf16 %v798_v35  ;;  %v799_v38 = vunpack.i.l.bf16 %v798_v35  ;;  %588 = vst [vmem:[%s523_s26 + $0x48] sm:$0xff] (%p971_p4), %v587_v24 }
 0x157   : > { %v701_v39 = vpack.c.bf16 %v802_v32, %v799_v38 }
 0x158   : > { %v803_v13 = vpop.trf.xlu0  ;;  %v589_v57 = vld [vmem:[%s1174_s22 + $0x20] sm:$0xff] (%p971_p4) }
 0x159   : > { %504 = vst [vmem:[%s1174_s22 + $0x30] sm:$0xff] %v701_v39  ;;  %v807_v42 = vunpack.i.h.bf16 %v803_v13  ;;  %v804_v12 = vunpack.i.l.bf16 %v803_v13  ;;  %590 = vst [vmem:[%s523_s26 + $0x60] sm:$0xff] (%p971_p4), %v589_v57 }
 0x15b   : > { %v702_v43 = vpack.c.bf16 %v807_v42, %v804_v12 }
 0x15c   : > { %v808_v37 = vpop.trf.xlu0  ;;  %v591_v56 = vld [vmem:[%s1174_s22 + $0x28] sm:$0xff] (%p971_p4) }
 0x15d   : > { %505 = vst [vmem:[%s1174_s22 + $0x38] sm:$0xff] %v702_v43  ;;  %v812_v46 = vunpack.i.h.bf16 %v808_v37  ;;  %v809_v36 = vunpack.i.l.bf16 %v808_v37  ;;  %592 = vst [vmem:[%s523_s26 + $0x78] sm:$0xff] (%p971_p4), %v591_v56 }
 0x15f   : > { %v703_v47 = vpack.c.bf16 %v812_v46, %v809_v36 }
 0x160   : > { %v813_v50 = vpop.trf.xlu0  ;;  %v593_v61 = vld [vmem:[%s1174_s22 + $0x30] sm:$0xff] (%p971_p4) }
 0x161   : > { %506 = vst [vmem:[%s1174_s22 + $0x40] sm:$0xff] %v703_v47  ;;  %v817_v51 = vunpack.i.h.bf16 %v813_v50  ;;  %v814_v54 = vunpack.i.l.bf16 %v813_v50  ;;  %594 = vst [vmem:[%s523_s26 + $0x90] sm:$0xff] (%p971_p4), %v593_v61 }
 0x163   : > { %v704_v17 = vpack.c.bf16 %v817_v51, %v814_v54 }
 0x164   : > { %v818_v55 = vpop.trf.xlu0  ;;  %v595_v60 = vld [vmem:[%s1174_s22 + $0x38] sm:$0xff] (%p971_p4) }
 0x165   : > { %507 = vst [vmem:[%s1174_s22 + $0x48] sm:$0xff] %v704_v17  ;;  %v822_v41 = vunpack.i.h.bf16 %v818_v55  ;;  %v819_v16 = vunpack.i.l.bf16 %v818_v55  ;;  %596 = vst [vmem:[%s523_s26 + $0xa8] sm:$0xff] (%p971_p4), %v595_v60 }
 0x167   : > { %v705_v40 = vpack.c.bf16 %v822_v41, %v819_v16 }
 0x168   : > { %v823_v58 = vpop.trf.xlu0  ;;  %v597_v0 = vld [vmem:[%s1174_s22 + $0x40] sm:$0xff] (%p971_p4) }
 0x169   : > { %508 = vst [vmem:[%s1174_s22 + $0x50] sm:$0xff] %v705_v40  ;;  %v827_v59 = vunpack.i.h.bf16 %v823_v58  ;;  %v824_v62 = vunpack.i.l.bf16 %v823_v58  ;;  %598 = vst [vmem:[%s523_s26 + $0xc0] sm:$0xff] (%p971_p4), %v597_v0 }
 0x16b   : > { %v706_v63 = vpack.c.bf16 %v827_v59, %v824_v62 }
 0x16c   : > { %v828_v3 = vpop.trf.xlu0  ;;  %v599_v18 = vld [vmem:[%s1174_s22 + $0x48] sm:$0xff] (%p971_p4) }
 0x16d   : > { %509 = vst [vmem:[%s1174_s22 + $0x58] sm:$0xff] %v706_v63  ;;  %v832_v4 = vunpack.i.h.bf16 %v828_v3  ;;  %v829_v45 = vunpack.i.l.bf16 %v828_v3  ;;  %600 = vst [vmem:[%s523_s26 + $0xd8] sm:$0xff] (%p971_p4), %v599_v18 }
 0x16f   : > { %v707_v44 = vpack.c.bf16 %v832_v4, %v829_v45 }
 0x170   : > { %v833_v21 = vpop.trf.xlu0  ;;  %v601_v19 = vld [vmem:[%s1174_s22 + $0x50] sm:$0xff] (%p971_p4) }
 0x171   : > { %510 = vst [vmem:[%s1174_s22 + $0x60] sm:$0xff] %v707_v44  ;;  %v837_v6 = vunpack.i.h.bf16 %v833_v21  ;;  %v834_v20 = vunpack.i.l.bf16 %v833_v21  ;;  %602 = vst [vmem:[%s523_s26 + $0xf0] sm:$0xff] (%p971_p4), %v601_v19 }
 0x173   : > { %v708_v7 = vpack.c.bf16 %v837_v6, %v834_v20 }
 0x174   : > { %v838_v1 = vpop.trf.xlu0  ;;  %v603_v2 = vld [vmem:[%s1174_s22 + $0x58] sm:$0xff] (%p971_p4) }
 0x175   : > { %511 = vst [vmem:[%s1174_s22 + $0x68] sm:$0xff] %v708_v7  ;;  %v842_v49 = vunpack.i.h.bf16 %v838_v1  ;;  %v839_v5 = vunpack.i.l.bf16 %v838_v1  ;;  %604 = vst [vmem:[%s523_s26 + $0x108] sm:$0xff] (%p971_p4), %v603_v2 }
 0x177   : > { %v709_v48 = vpack.c.bf16 %v842_v49, %v839_v5  ;;  %520 = sbr.rel (!%p971_p4) target bundleno = 390 (0x186), region = 28 }
 0x178   : > { %v843_v10 = vpop.trf.xlu0  ;;  %v605_v22 = vld [vmem:[%s1174_s22 + $0x60] sm:$0xff] (%p971_p4) }
 0x179   : > { %512 = vst [vmem:[%s1174_s22 + $0x70] sm:$0xff] %v709_v48  ;;  %v847_v11 = vunpack.i.h.bf16 %v843_v10  ;;  %v844_v14 = vunpack.i.l.bf16 %v843_v10  ;;  %606 = vst [vmem:[%s523_s26 + $0x120] sm:$0xff] (%p971_p4), %v605_v22 }
 0x17b   : > { %v710_v53 = vpack.c.bf16 %v847_v11, %v844_v14 }
 0x17c   : > { %v607_v23 = vld [vmem:[%s1174_s22 + $0x68] sm:$0xff] (%p971_p4) }
 0x17d   : > { %513 = vst [vmem:[%s1174_s22 + $0x78] sm:$0xff] %v710_v53  ;;  %608 = vst [vmem:[%s523_s26 + $0x138] sm:$0xff] (%p971_p4), %v607_v23 }
 0x180   : > { %v609_v29 = vld [vmem:[%s1174_s22 + $0x70] sm:$0xff] }
 0x181   : > { %610 = vst [vmem:[%s523_s26 + $0x150] sm:$0xff] %v609_v29 }
 0x184   : > { %v611_v9 = vld [vmem:[%s1174_s22 + $0x78] sm:$0xff] }
 0x185   : > { %612 = vst [vmem:[%s523_s26 + $0x168] sm:$0xff] %v611_v9 }
 0x186 PF: > { %p8_p8 = scmp.ge.s32.totalorder %s961_s10, 5   ;;  %s1227_s6 = smov %s930_s7 }
 0x187   : > { %s1228_s7 = smov %s969_s13  ;;  %s1229_s8 = smov %s961_s10 }
 0x188   :  { %10 = sbr.rel (!%p8_p8) target bundleno = 2 (0x2), region = 92 }

// kernel: cosface_forward.3
= control target key start
LH: loop header
LB: loop body
LE: loop exit
PB: predicated region body
PF: predicated region fallthrough
CT: control target
= control target key end

     0   :  { %s3509_s0 = inlined_call_operand.vmem [shape: f32[384,128], index: 0, kind: input, shape index: {}]   ;;  %s3510_s1 = inlined_call_operand.vmem [shape: bf16[128,768], index: 1, kind: input, shape index: {}]   ;;  %s3511_s2 = inlined_call_operand.vmem [shape: s32[384,1], index: 2, kind: input, shape index: {}]   ;;  %s3512_s3 = inlined_call_operand.vmem [shape: f32[384,768], index: 3, kind: output, shape index: {0}]   ;;  %s3513_s4 = inlined_call_operand.vmem [shape: f32[1,384], index: 4, kind: output, shape index: {1}]  }
   0x1   :  { %3515 = sst [smem:[#allocation8_spill]] %s3510_s1 }
   0x2   :  { %s2331_s15 = smov 0   ;;  %s2333_s16 = smov 0  }
   0x3   :  { %s2335_s17 = smov 0   ;;  %s2337_s18 = smov 0  }
   0x4   :  { %s2339_s19 = smov 0   ;;  %s2341_s20 = smov 0  }
   0x5   :  { %s2343_s21 = smov 0   ;;  %s2345_s22 = smov 0  }
   0x6   :  { %s2347_s23 = smov 0  }
   0x7 LB: > { %s1876_s24 = sadd.s32 4294967295, %s2301_s23   ;;  %s24_s25 = sadd.s32 1, %s2293_s21  ;;  %s2301_s23 = sphi %s2347_s23, %s15_s23   ;;  %s2297_s22 = sphi %s2345_s22, %s3527_s22   ;;  %s2293_s21 = sphi %s2343_s21, %s3526_s21   ;;  %s2289_s20 = sphi %s2341_s20, %s3525_s20   ;;  %s2285_s19 = sphi %s2339_s19, %s3524_s19   ;;  %s2281_s18 = sphi %s2337_s18, %s3523_s18   ;;  %s2277_s17 = sphi %s2335_s17, %s3522_s17   ;;  %s2273_s16 = sphi %s2333_s16, %s3521_s16   ;;  %s2269_s15 = sphi %s2331_s15, %s3520_s15  }
   0x8   : > { %p25_p0 = scmp.ge.s32.totalorder %s24_s25, 3  ;;  %s27_s26 = sadd.s32 1, %s2297_s22 }
   0x9   : > { %s60_s27 = sadd.s32 1, %s2281_s18  ;;  %p67_p1 = scmp.ne.s32.totalorder %s2281_s18, %s2277_s17 }
   0xa   : > { %s3529_s25 = smov (%p25_p0, %s24_s25), 0  ;;  %s3531_s26 = smov (!%p25_p0, %s27_s26), %s2297_s22 }
   0xb   : > { %s57_s28 = ssub.s32 %s2293_s21, %s3529_s25  ;;  %p68_p2 = scmp.eq.s32.totalorder %s2301_s23, 0 }
   0xc   : > { %p29_p3 = scmp.ge.s32.totalorder %s3531_s26, 3  ;;  %p58_p4 = scmp.eq.s32.totalorder %s57_s28, 0 }
   0xd   : > { %p69_p5 = por %p68_p2, %p67_p1  ;;  %s114_s29 = sadd.s32 1, %s2273_s16 }
   0xe   : > { %s3533_s26 = smov (%p29_p3, %s3531_s26), 0  ;;  %p124_p6 = scmp.ne.s32.totalorder %s2273_s16, %s2269_s15 }
   0xf   : > { %3516 = sst [smem:[#allocation7_spill]] %s3533_s26  ;;  %s109_s5 = ssub.s32 %s2297_s22, %s3533_s26 }
  0x10   : > { %s2392_s30 = scalar_select %p58_p4, %s2281_s18, %s60_s27  }
  0x11   : > { %s111_s6 = sor.u32 %s109_s5, %s57_s28  ;;  %p125_p7 = scmp.eq.s32.totalorder %s1876_s24, 8 }
  0x12   : > { %p112_p8 = scmp.eq.s32.totalorder %s111_s6, 0  ;;  %p1879_p10 = scmp.ge.s32.totalorder %s2301_s23, 9 }
  0x13   : > { %p2398_p9 = por %p125_p7, %p124_p6 }
  0x14   : > { %s2403_s8 = scalar_select %p112_p8, %s2273_s16, %s114_s29  }
  0x15   : > { %173 = sbr.rel (%p1879_p10) target bundleno = 46 (0x2e), region = 16 }
  0x1c   : > { %185 = sbr.rel (!%p69_p5) target bundleno = 46 (0x2e), region = 24  ;;  %s187_s9 = sand.u32 (%p69_p5), 1, %s2281_s18  }
  0x1d   : > { %s1982_s10 = sshll.u32 (%p69_p5), %s2293_s21, 3  ;;  %s1880_s11 = sshll.u32 (%p69_p5), %s187_s9, 7 }
  0x1e   : > { %s3518_s1 = sld [smem:[#allocation8_spill]] (%p69_p5)  ;;  %s189_s24 = scalar_lea.vmem (%p69_p5), [#allocation5], %s1880_s11 }
  0x24   : > { %s2411_s14 = scalar_lea.vmem %s3518_s1, %s1982_s10 }
  0x25   : > { %v250_v0 = vld [vmem:[%s2411_s14] sm:$0xff]  ;;  %v252_v1 = vld [vmem:[%s2411_s14 + $0x18] sm:$0xff]  ;;  %v254_v2 = vld [vmem:[%s2411_s14 + $0x30] sm:$0xff] }
  0x26   : > { %251 = vst [vmem:[%s189_s24] sm:$0xff] %v250_v0  ;;  %253 = vst [vmem:[%s189_s24 + $0x8] sm:$0xff] %v252_v1  ;;  %v256_v3 = vld [vmem:[%s2411_s14 + $0x48] sm:$0xff]  ;;  %v258_v4 = vld [vmem:[%s2411_s14 + $0x60] sm:$0xff] }
  0x27   : > { %255 = vst [vmem:[%s189_s24 + $0x10] sm:$0xff] %v254_v2  ;;  %v260_v5 = vld [vmem:[%s2411_s14 + $0x78] sm:$0xff]  ;;  %257 = vst [vmem:[%s189_s24 + $0x18] sm:$0xff] %v256_v3  ;;  %v262_v6 = vld [vmem:[%s2411_s14 + $0x90] sm:$0xff] }
  0x28   : > { %259 = vst [vmem:[%s189_s24 + $0x20] sm:$0xff] %v258_v4  ;;  %261 = vst [vmem:[%s189_s24 + $0x28] sm:$0xff] %v260_v5  ;;  %v264_v7 = vld [vmem:[%s2411_s14 + $0xa8] sm:$0xff]  ;;  %v266_v8 = vld [vmem:[%s2411_s14 + $0xc0] sm:$0xff] }
  0x29   : > { %263 = vst [vmem:[%s189_s24 + $0x30] sm:$0xff] %v262_v6  ;;  %265 = vst [vmem:[%s189_s24 + $0x38] sm:$0xff] %v264_v7  ;;  %v268_v9 = vld [vmem:[%s2411_s14 + $0xd8] sm:$0xff]  ;;  %v270_v10 = vld [vmem:[%s2411_s14 + $0xf0] sm:$0xff] }
  0x2a   : > { %267 = vst [vmem:[%s189_s24 + $0x40] sm:$0xff] %v266_v8  ;;  %v272_v11 = vld [vmem:[%s2411_s14 + $0x108] sm:$0xff]  ;;  %269 = vst [vmem:[%s189_s24 + $0x48] sm:$0xff] %v268_v9  ;;  %v274_v12 = vld [vmem:[%s2411_s14 + $0x120] sm:$0xff] }
  0x2b   : > { %271 = vst [vmem:[%s189_s24 + $0x50] sm:$0xff] %v270_v10  ;;  %273 = vst [vmem:[%s189_s24 + $0x58] sm:$0xff] %v272_v11  ;;  %v276_v13 = vld [vmem:[%s2411_s14 + $0x138] sm:$0xff]  ;;  %v278_v14 = vld [vmem:[%s2411_s14 + $0x150] sm:$0xff] }
  0x2c   : > { %275 = vst [vmem:[%s189_s24 + $0x60] sm:$0xff] %v274_v12  ;;  %277 = vst [vmem:[%s189_s24 + $0x68] sm:$0xff] %v276_v13  ;;  %v280_v15 = vld [vmem:[%s2411_s14 + $0x168] sm:$0xff] }
  0x2d   : > { %279 = vst [vmem:[%s189_s24 + $0x70] sm:$0xff] %v278_v14  ;;  %281 = vst [vmem:[%s189_s24 + $0x78] sm:$0xff] %v280_v15 }
  0x2e PF: > { %p1883_p11 = scmp.ge.s32.totalorder %s2301_s23, 1  ;;  %p295_p12 = scmp.lt.s32.totalorder %s2301_s23, 10 }
  0x30   : > { %p296_p13 = pnand %p1883_p11, %p295_p12 }
  0x31   : > { %s302_s27 = sand.u32 (!%p296_p13), 1, %s2277_s17   ;;  %s331_s28 = sand.u32 (!%p296_p13), 1, %s2269_s15  }
  0x32   : > { %299 = sbr.rel (%p296_p13) target bundleno = 1264 (0x4f0), region = 66  ;;  %s1884_s29 = sshll.u32 (!%p296_p13), %s302_s27, 7 }
  0x33   : > { %s1885_s5 = sshll.u32 (!%p296_p13), %s331_s28, 8  ;;  %s1886_s6 = sshll.u32 (!%p296_p13), %s2289_s20, 4 }
  0x34   : > { %p354_p0 = scmp.lt.s32.totalorder (!%p296_p13), %s2289_s20, 2  ;;  %p340_p1 = scmp.lt.s32.totalorder (!%p296_p13), %s1886_s6, 47 }
  0x35   : > { %s2452_s28 = scalar_lea.vmem (!%p296_p13), [#allocation5], %s1884_s29  ;;  %s2454_s26 = scalar_lea.vmem (!%p296_p13), [#allocation6], %s1885_s5 }
  0x36   : > { %p1890_p2 = scmp.ne.s32.totalorder (!%p296_p13), %s2285_s19, 0 }
  0x39   : > { %s2436_s9 = scalar_select %p354_p0, %s2289_s20, 2 }
  0x3a   : > { %s3535_s6 = smov (!%p340_p1, %s1886_s6), 47  ;;  %361 = sbr.rel (%p1890_p2) target bundleno = 255 (0xff), region = 74 }
  0x3b   : > { %s356_s12 = scalar_lea.vmem %s3513_s4, %s2436_s9  ;;  %s1887_s13 = sshll.u32 %s3535_s6, 3  ;;  %vm506_vm0 = vcmask (!%p1890_p2), 7168   ;;  %v2303_v48 = vmov (!%p1890_p2), 0.0  }
  0x3c   : > { %s2445_s1 = scalar_lea.vmem %s3509_s0, %s1887_s13  ;;  %s2450_s27 = scalar_lea.vmem %s3511_s2, %s1887_s13  ;;  %507 = vst.msk [vmem:[#allocation3] sm:$0xff] (!%p1890_p2), %vm506_vm0, %v2303_v48  ;;  %508 = vst.msk [vmem:[#allocation3 + $0x8] sm:$0xff] (!%p1890_p2), %vm506_vm0, %v2303_v48 }
  0x3d   : > { %v2458_v16 = vld [vmem:[%s2445_s1 + $0x10] sm:$0xff] (!%p1890_p2)  ;;  %v2461_v17 = vld [vmem:[%s2445_s1] sm:$0xff] (!%p1890_p2)  ;;  %v2464_v18 = vld [vmem:[%s2445_s1 + $0x18] sm:$0xff] (!%p1890_p2)  ;;  %509 = vst.msk [vmem:[#allocation3 + $0x10] sm:$0xff] (!%p1890_p2), %vm506_vm0, %v2303_v48 }
  0x3e   : > { %v380_v19 = vmul.f32 (!%p1890_p2), %v2458_v16, %v2458_v16  ;;  %v378_v20 = vmul.f32 (!%p1890_p2), %v2461_v17, %v2461_v17  ;;  %v2471_v21 = vld [vmem:[%s2445_s1 + $0x8] sm:$0xff] (!%p1890_p2)  ;;  %v381_v22 = vmul.f32 (!%p1890_p2), %v2464_v18, %v2464_v18  ;;  %v2481_v25 = vld [vmem:[%s2445_s1 + $0x20] sm:$0xff] (!%p1890_p2)  ;;  %v2488_v28 = vld [vmem:[%s2445_s1 + $0x38] sm:$0xff] (!%p1890_p2)  ;;  %510 = vst.msk [vmem:[#allocation3 + $0x18] sm:$0xff] (!%p1890_p2), %vm506_vm0, %v2303_v48 }
  0x3f   : > { %v379_v23 = vmul.f32 (!%p1890_p2), %v2471_v21, %v2471_v21  ;;  %v2478_v24 = vld [vmem:[%s2445_s1 + $0x28] sm:$0xff] (!%p1890_p2)  ;;  %v382_v27 = vmul.f32 (!%p1890_p2), %v2481_v25, %v2481_v25  ;;  %v2491_v29 = vld [vmem:[%s2445_s1 + $0x30] sm:$0xff] (!%p1890_p2)  ;;  %v385_v30 = vmul.f32 (!%p1890_p2), %v2488_v28, %v2488_v28  ;;  %v2501_v33 = vld [vmem:[%s2445_s1 + $0x40] sm:$0xff] (!%p1890_p2)  ;;  %511 = vst.msk [vmem:[#allocation3 + $0x20] sm:$0xff] (!%p1890_p2), %vm506_vm0, %v2303_v48 }
  0x40   : > { %398 = vadd.xlane.f32.xlu1 (!%p1890_p2), %v380_v19  ;;  %394 = vadd.xlane.f32.xlu0 (!%p1890_p2), %v378_v20  ;;  %v383_v26 = vmul.f32 (!%p1890_p2), %v2478_v24, %v2478_v24  ;;  %v384_v31 = vmul.f32 (!%p1890_p2), %v2491_v29, %v2491_v29  ;;  %v2498_v32 = vld [vmem:[%s2445_s1 + $0x48] sm:$0xff] (!%p1890_p2)  ;;  %v386_v35 = vmul.f32 (!%p1890_p2), %v2501_v33, %v2501_v33  ;;  %v2508_v36 = vld [vmem:[%s2445_s1 + $0x58] sm:$0xff] (!%p1890_p2)  ;;  %v2511_v37 = vld [vmem:[%s2445_s1 + $0x50] sm:$0xff] (!%p1890_p2) }
  0x41   : > { %v387_v34 = vmul.f32 %v2498_v32, %v2498_v32  ;;  %v389_v38 = vmul.f32 %v2508_v36, %v2508_v36  ;;  %v388_v39 = vmul.f32 %v2511_v37, %v2511_v37  ;;  %v2518_v40 = vld [vmem:[%s2445_s1 + $0x68] sm:$0xff]  ;;  %v2521_v41 = vld [vmem:[%s2445_s1 + $0x60] sm:$0xff]  ;;  %v2528_v44 = vld [vmem:[%s2445_s1 + $0x78] sm:$0xff]  ;;  %512 = vst.msk [vmem:[#allocation3 + $0x28] sm:$0xff] %vm506_vm0, %v2303_v48 }
  0x42   : > { %v391_v42 = vmul.f32 %v2518_v40, %v2518_v40  ;;  %v390_v43 = vmul.f32 %v2521_v41, %v2521_v41  ;;  %v2531_v45 = vld [vmem:[%s2445_s1 + $0x70] sm:$0xff]  ;;  %v393_v46 = vmul.f32 %v2528_v44, %v2528_v44  ;;  %513 = vst.msk [vmem:[#allocation3 + $0x30] sm:$0xff] %vm506_vm0, %v2303_v48  ;;  %514 = vst.msk [vmem:[#allocation3 + $0x38] sm:$0xff] %vm506_vm0, %v2303_v48 }
  0x43   : > { %v392_v47 = vmul.f32 %v2531_v45, %v2531_v45  ;;  %515 = vst.msk [vmem:[#allocation3 + $0x40] sm:$0xff] %vm506_vm0, %v2303_v48  ;;  %516 = vst.msk [vmem:[#allocation3 + $0x48] sm:$0xff] %vm506_vm0, %v2303_v48 }
  0x44   : > { %400 = vadd.xlane.f32.xlu1 %v381_v22  ;;  %396 = vadd.xlane.f32.xlu0 %v379_v23  ;;  %517 = vst.msk [vmem:[#allocation3 + $0x50] sm:$0xff] %vm506_vm0, %v2303_v48  ;;  %518 = vst.msk [vmem:[#allocation3 + $0x58] sm:$0xff] %vm506_vm0, %v2303_v48 }
  0x45   : > { %519 = vst.msk [vmem:[#allocation3 + $0x60] sm:$0xff] %vm506_vm0, %v2303_v48  ;;  %520 = vst.msk [vmem:[#allocation3 + $0x68] sm:$0xff] %vm506_vm0, %v2303_v48 }
  0x46   : > { %521 = vst.msk [vmem:[#allocation3 + $0x70] sm:$0xff] %vm506_vm0, %v2303_v48  ;;  %522 = vst.msk [vmem:[#allocation3 + $0x78] sm:$0xff] %vm506_vm0, %v2303_v48 }
  0x47   : > { %523 = vst.msk [vmem:[#allocation4] sm:$0xff] %vm506_vm0, %v2303_v48  ;;  %524 = vst.msk [vmem:[#allocation4 + $0x8] sm:$0xff] %vm506_vm0, %v2303_v48 }
  0x48   : > { %404 = vadd.xlane.f32.xlu1 %v383_v26  ;;  %402 = vadd.xlane.f32.xlu0 %v382_v27  ;;  %525 = vst.msk [vmem:[#allocation4 + $0x10] sm:$0xff] %vm506_vm0, %v2303_v48  ;;  %526 = vst.msk [vmem:[#allocation4 + $0x18] sm:$0xff] %vm506_vm0, %v2303_v48 }
  0x49   : > { %527 = vst.msk [vmem:[#allocation4 + $0x20] sm:$0xff] %vm506_vm0, %v2303_v48  ;;  %528 = vst.msk [vmem:[#allocation4 + $0x28] sm:$0xff] %vm506_vm0, %v2303_v48 }
  0x4a   : > { %529 = vst.msk [vmem:[#allocation4 + $0x30] sm:$0xff] %vm506_vm0, %v2303_v48  ;;  %530 = vst.msk [vmem:[#allocation4 + $0x38] sm:$0xff] %vm506_vm0, %v2303_v48 }
  0x4b   : > { %531 = vst.msk [vmem:[#allocation4 + $0x40] sm:$0xff] %vm506_vm0, %v2303_v48  ;;  %532 = vst.msk [vmem:[#allocation4 + $0x48] sm:$0xff] %vm506_vm0, %v2303_v48 }
  0x4c   : > { %408 = vadd.xlane.f32.xlu1 %v385_v30  ;;  %406 = vadd.xlane.f32.xlu0 %v384_v31  ;;  %533 = vst.msk [vmem:[#allocation4 + $0x50] sm:$0xff] %vm506_vm0, %v2303_v48  ;;  %534 = vst.msk [vmem:[#allocation4 + $0x58] sm:$0xff] %vm506_vm0, %v2303_v48 }
  0x4d   : > { %535 = vst.msk [vmem:[#allocation4 + $0x60] sm:$0xff] %vm506_vm0, %v2303_v48  ;;  %536 = vst.msk [vmem:[#allocation4 + $0x68] sm:$0xff] %vm506_vm0, %v2303_v48 }
  0x4e   : > { %537 = vst.msk [vmem:[#allocation4 + $0x70] sm:$0xff] %vm506_vm0, %v2303_v48  ;;  %538 = vst.msk [vmem:[#allocation4 + $0x78] sm:$0xff] %vm506_vm0, %v2303_v48 }
  0x50   : > { %412 = vadd.xlane.f32.xlu1 %v387_v34  ;;  %410 = vadd.xlane.f32.xlu0 %v386_v35 }
  0x54   : > { %416 = vadd.xlane.f32.xlu1 %v389_v38  ;;  %414 = vadd.xlane.f32.xlu0 %v388_v39 }
  0x58   : > { %420 = vadd.xlane.f32.xlu1 %v391_v42  ;;  %418 = vadd.xlane.f32.xlu0 %v390_v43 }
  0x5c   : > { %424 = vadd.xlane.f32.xlu1 %v393_v46  ;;  %422 = vadd.xlane.f32.xlu0 %v392_v47 }
  0xcd   : > { %v399_v49 = vpop.xlane.xlu1 %398  ;;  %v395_v50 = vpop.xlane.xlu0 %394 }
  0xce   : > { %v428_v51 = vmax.f32 %v399_v49, 1e-24  ;;  %v426_v52 = vmax.f32 %v395_v50, 1e-24 }
  0xd0   : > { %2075 = vrsqrt.f32 %v428_v51 }
  0xd1   : > { %2077 = vrsqrt.f32 %v426_v52  ;;  %v401_v53 = vpop.xlane.xlu1 %400  ;;  %v397_v54 = vpop.xlane.xlu0 %396 }
  0xd2   : > { %v429_v55 = vmax.f32 %v401_v53, 1e-24  ;;  %v427_v56 = vmax.f32 %v397_v54, 1e-24 }
  0xd4   : > { %2079 = vrsqrt.f32 %v429_v55 }
  0xd5   : > { %2081 = vrsqrt.f32 %v427_v56  ;;  %v405_v57 = vpop.xlane.xlu1 %404  ;;  %v403_v58 = vpop.xlane.xlu0 %402 }
  0xd6   : > { %v431_v59 = vmax.f32 %v405_v57, 1e-24  ;;  %v430_v60 = vmax.f32 %v403_v58, 1e-24 }
  0xd8   : > { %2083 = vrsqrt.f32 %v431_v59 }
  0xd9   : > { %2085 = vrsqrt.f32 %v430_v60  ;;  %v409_v61 = vpop.xlane.xlu1 %408  ;;  %v407_v62 = vpop.xlane.xlu0 %406 }
  0xda   : > { %v2076_v63 = vpop.eup %2075  ;;  %v433_v0 = vmax.f32 %v409_v61, 1e-24  ;;  %v432_v1 = vmax.f32 %v407_v62, 1e-24 }
  0xdb   : > { %v2078_v2 = vpop.eup %2077  ;;  %v460_v3 = vmul.f32 64.0, %v2076_v63 }
  0xdc   : > { %2087 = vrsqrt.f32 %v433_v0  ;;  %v458_v7 = vmul.f32 64.0, %v2078_v2 }
  0xdd   : > { %2089 = vrsqrt.f32 %v432_v1  ;;  %v413_v4 = vpop.xlane.xlu1 %412  ;;  %v411_v5 = vpop.xlane.xlu0 %410  ;;  %v476_v13 = vmul.f32 %v460_v3, %v2458_v16 }
  0xde   : > { %v2080_v6 = vpop.eup %2079  ;;  %v435_v8 = vmax.f32 %v413_v4, 1e-24  ;;  %v434_v9 = vmax.f32 %v411_v5, 1e-24  ;;  %v474_v22 = vmul.f32 %v458_v7, %v2461_v17 }
  0xdf   : > { %v2082_v10 = vpop.eup %2081  ;;  %v461_v11 = vmul.f32 64.0, %v2080_v6 }
  0xe0   : > { %v459_v12 = vmul.f32 64.0, %v2082_v10  ;;  %2091 = vrsqrt.f32 %v435_v8 }
  0xe1   : > { %v477_v14 = vmul.f32 %v461_v11, %v2464_v18  ;;  %2093 = vrsqrt.f32 %v434_v9  ;;  %v417_v15 = vpop.xlane.xlu1 %416  ;;  %v415_v19 = vpop.xlane.xlu0 %414 }
  0xe2   : > { %v2084_v20 = vpop.eup %2083  ;;  %v475_v23 = vmul.f32 %v459_v12, %v2471_v21  ;;  %v437_v26 = vmax.f32 %v417_v15, 1e-24  ;;  %v436_v27 = vmax.f32 %v415_v19, 1e-24 }
  0xe3   : > { %v2086_v30 = vpop.eup %2085  ;;  %v491_v31 = vpack.c.bf16 %v477_v14, %v476_v13  ;;  %v463_v34 = vmul.f32 64.0, %v2084_v20 }
  0xe4   : > { %v490_v35 = vpack.c.bf16 %v475_v23, %v474_v22  ;;  %v462_v38 = vmul.f32 64.0, %v2086_v30  ;;  %2095 = vrsqrt.f32 %v437_v26 }
  0xe5   : > { %499 = vst [vmem:[#allocation2 + $0x8] sm:$0xff] %v491_v31  ;;  %v479_v16 = vmul.f32 %v463_v34, %v2478_v24  ;;  %2097 = vrsqrt.f32 %v436_v27  ;;  %v421_v18 = vpop.xlane.xlu1 %420  ;;  %v419_v39 = vpop.xlane.xlu0 %418 }
  0xe6   : > { %v2088_v42 = vpop.eup %2087  ;;  %498 = vst [vmem:[#allocation2] sm:$0xff] %v490_v35  ;;  %v478_v17 = vmul.f32 %v462_v38, %v2481_v25  ;;  %v439_v43 = vmax.f32 %v421_v18, 1e-24  ;;  %v438_v21 = vmax.f32 %v419_v39, 1e-24 }
  0xe7   : > { %v2090_v46 = vpop.eup %2089  ;;  %v465_v47 = vmul.f32 64.0, %v2088_v42 }
  0xe8   : > { %v492_v48 = vpack.c.bf16 %v479_v16, %v478_v17  ;;  %v464_v49 = vmul.f32 64.0, %v2090_v46  ;;  %2099 = vrsqrt.f32 %v439_v43 }
  0xe9   : > { %v481_v50 = vmul.f32 %v465_v47, %v2488_v28  ;;  %2101 = vrsqrt.f32 %v438_v21  ;;  %v425_v51 = vpop.xlane.xlu1 %424  ;;  %v423_v52 = vpop.xlane.xlu0 %422 }
  0xea   : > { %v2092_v24 = vpop.eup %2091  ;;  %500 = vst [vmem:[#allocation2 + $0x10] sm:$0xff] %v492_v48  ;;  %v480_v53 = vmul.f32 %v464_v49, %v2491_v29  ;;  %v441_v54 = vmax.f32 %v425_v51, 1e-24  ;;  %v440_v55 = vmax.f32 %v423_v52, 1e-24 }
  0xeb   : > { %v2094_v56 = vpop.eup %2093  ;;  %v467_v25 = vmul.f32 64.0, %v2092_v24 }
  0xec   : > { %v493_v57 = vpack.c.bf16 %v481_v50, %v480_v53  ;;  %v466_v58 = vmul.f32 64.0, %v2094_v56  ;;  %2103 = vrsqrt.f32 %v441_v54 }
  0xed   : > { %v483_v59 = vmul.f32 %v467_v25, %v2498_v32  ;;  %2105 = vrsqrt.f32 %v440_v55 }
  0xee   : > { %v2096_v60 = vpop.eup %2095  ;;  %501 = vst [vmem:[#allocation2 + $0x18] sm:$0xff] %v493_v57  ;;  %v482_v28 = vmul.f32 %v466_v58, %v2501_v33 }
  0xef   : > { %v2098_v61 = vpop.eup %2097  ;;  %v469_v62 = vmul.f32 64.0, %v2096_v60 }
  0xf0   : > { %v494_v63 = vpack.c.bf16 %v483_v59, %v482_v28  ;;  %v468_v0 = vmul.f32 64.0, %v2098_v61 }
  0xf1   : > { %v485_v29 = vmul.f32 %v469_v62, %v2508_v36 }
  0xf2   : > { %v2100_v1 = vpop.eup %2099  ;;  %502 = vst [vmem:[#allocation2 + $0x20] sm:$0xff] %v494_v63  ;;  %v484_v2 = vmul.f32 %v468_v0, %v2511_v37 }
  0xf3   : > { %v2102_v3 = vpop.eup %2101  ;;  %v471_v4 = vmul.f32 64.0, %v2100_v1 }
  0xf4   : > { %v495_v5 = vpack.c.bf16 %v485_v29, %v484_v2  ;;  %v470_v6 = vmul.f32 64.0, %v2102_v3 }
  0xf5   : > { %v487_v32 = vmul.f32 %v471_v4, %v2518_v40 }
  0xf6   : > { %v2104_v7 = vpop.eup %2103  ;;  %503 = vst [vmem:[#allocation2 + $0x28] sm:$0xff] %v495_v5  ;;  %v486_v33 = vmul.f32 %v470_v6, %v2521_v41 }
  0xf7   : > { %v2106_v8 = vpop.eup %2105  ;;  %v473_v9 = vmul.f32 64.0, %v2104_v7 }
  0xf8   : > { %v496_v10 = vpack.c.bf16 %v487_v32, %v486_v33  ;;  %v472_v11 = vmul.f32 64.0, %v2106_v8 }
  0xf9   : > { %v489_v36 = vmul.f32 %v473_v9, %v2528_v44 }
  0xfa   : > { %504 = vst [vmem:[#allocation2 + $0x30] sm:$0xff] %v496_v10  ;;  %v488_v12 = vmul.f32 %v472_v11, %v2531_v45 }
  0xfc   : > { %v497_v37 = vpack.c.bf16 %v489_v36, %v488_v12 }
  0xfe   : > { %505 = vst [vmem:[#allocation2 + $0x38] sm:$0xff] %v497_v37 }
  0xff PF: > { %v2109_v40 = vld [vmem:[%s2452_s28 + $0x4] ss:$8 sps:$4 sm:$0xff]   ;;  %v2111_v13 = vld [vmem:[%s2452_s28] ss:$8 sps:$4 sm:$0xff]   ;;  %v2304_v41 = vmov 0   ;;  %v765_v23 = vld [vmem:[%s2450_s27 + $0x10] sm:$0xff]  ;;  %v756_v63 = vlaneseq }
 0x100   : > { %675 = vmatprep.mubr.bf16.mxu0 %v2304_v41  ;;  %715 = vmatprep.mubr.bf16.mxu1 %v2304_v41  ;;  %v2112_v44 = vld [vmem:[%s2452_s28 + $0x14] ss:$8 sps:$4 sm:$0xff]   ;;  %v2114_v45 = vld [vmem:[%s2452_s28 + $0x10] ss:$8 sps:$4 sm:$0xff]   ;;  %v2115_v14 = vld [vmem:[%s2452_s28 + $0x24] ss:$8 sps:$4 sm:$0xff]  }
 0x101   : > { %643 = vmatprep.subr.bf16.mxu0 %v2109_v40  ;;  %1983 = vmatprep.subr.bf16.mxu1 %v2109_v40  ;;  %v2117_v15 = vld [vmem:[%s2452_s28 + $0x20] ss:$8 sps:$4 sm:$0xff]   ;;  %v2118_v19 = vld [vmem:[%s2452_s28 + $0x34] ss:$8 sps:$4 sm:$0xff]   ;;  %v2120_v20 = vld [vmem:[%s2452_s28 + $0x30] ss:$8 sps:$4 sm:$0xff]  }
 0x102   : > { %644 = vmatpush1.bf16.msra.mxu0 %v2111_v13  ;;  %1991 = vmatpush1.bf16.msra.mxu1 %v2111_v13  ;;  %v2121_v22 = vld [vmem:[%s2452_s28 + $0x44] ss:$8 sps:$4 sm:$0xff]   ;;  %v2123_v27 = vld [vmem:[%s2452_s28 + $0x40] ss:$8 sps:$4 sm:$0xff]   ;;  %v766_v30 = vld [vmem:[%s2450_s27 + $0x18] sm:$0xff]  ;;  %v2640_v1 = vand.u32 127, %v756_v63 }
 0x103   : > { %645 = vmatprep.subr.bf16.mxu0 %v2112_v44  ;;  %1984 = vmatprep.subr.bf16.mxu1 %v2112_v44  ;;  %v763_v26 = vld [vmem:[%s2450_s27] sm:$0xff]  ;;  %v2124_v31 = vld [vmem:[%s2452_s28 + $0x54] ss:$8 sps:$4 sm:$0xff]   ;;  %v764_v34 = vld [vmem:[%s2450_s27 + $0x8] sm:$0xff]  ;;  %s1907_s1 = sshll.u32 %s2285_s19, 8  ;;  %p1972_p3 = scmp.ne.s32.totalorder %s2285_s19, 2 }
 0x104   : > { %2108 = vset.pattern.permute.xlu1 %v2304_v41  ;;  %2107 = vset.pattern.permute.xlu0 %v2304_v41  ;;  %v2126_v35 = vld [vmem:[%s2452_s28 + $0x50] ss:$8 sps:$4 sm:$0xff]   ;;  %v768_v38 = vld [vmem:[%s2450_s27 + $0x28] sm:$0xff]  ;;  %v767_v18 = vld [vmem:[%s2450_s27 + $0x20] sm:$0xff]  ;;  %v758_v2 = vadd.s32 128, %v2640_v1  ;;  %v760_v5 = vstv %s1907_s1 }
 0x105   : > { %786 = vperm.xlu1 %2108, %v765_v23   ;;  %780 = vperm.xlu0 %2107, %v763_v26   ;;  %v2127_v16 = vld [vmem:[%s2452_s28 + $0x64] ss:$8 sps:$4 sm:$0xff]   ;;  %v2129_v39 = vld [vmem:[%s2452_s28 + $0x60] ss:$8 sps:$4 sm:$0xff]   ;;  %v770_v42 = vld [vmem:[%s2450_s27 + $0x38] sm:$0xff]  ;;  %v2649_v6 = vadd.s32 %v760_v5, %v2640_v1 }
 0x106   : > { %646 = vmatpush1.bf16.msra.mxu0 %v2114_v45  ;;  %1992 = vmatpush1.bf16.msra.mxu1 %v2114_v45  ;;  %v2130_v17 = vld [vmem:[%s2452_s28 + $0x74] ss:$8 sps:$4 sm:$0xff]   ;;  %v2132_v21 = vld [vmem:[%s2452_s28 + $0x70] ss:$8 sps:$4 sm:$0xff]   ;;  %v772_v46 = vld [vmem:[%s2450_s27 + $0x48] sm:$0xff]  ;;  %v2651_v32 = vadd.s32 %v760_v5, %v758_v2 }
 0x107   : > { %647 = vmatprep.subr.bf16.mxu0 %v2115_v14  ;;  %1985 = vmatprep.subr.bf16.mxu1 %v2115_v14  ;;  %v769_v43 = vld [vmem:[%s2450_s27 + $0x30] sm:$0xff]  ;;  %v771_v47 = vld [vmem:[%s2450_s27 + $0x40] sm:$0xff]  ;;  %v774_v50 = vld [vmem:[%s2450_s27 + $0x58] sm:$0xff] }
 0x108   : > { %v539_v48 = vld [vmem:[#allocation2] sm:$0xff]  ;;  %v773_v51 = vld [vmem:[%s2450_s27 + $0x50] sm:$0xff]  ;;  %v776_v52 = vld [vmem:[%s2450_s27 + $0x68] sm:$0xff] }
 0x109   : > { %789 = vperm.xlu1 %2108, %v766_v30   ;;  %783 = vperm.xlu0 %2107, %v764_v34   ;;  %v543_v49 = vld [vmem:[#allocation2 + $0x20] sm:$0xff]  ;;  %v540_v53 = vld [vmem:[#allocation2 + $0x8] sm:$0xff]  ;;  %v778_v55 = vld [vmem:[%s2450_s27 + $0x78] sm:$0xff] }
 0x10a   : > { %648 = vmatpush1.bf16.msra.mxu0 %v2117_v15  ;;  %1993 = vmatpush1.bf16.msra.mxu1 %v2117_v15  ;;  %v775_v24 = vld [vmem:[%s2450_s27 + $0x60] sm:$0xff]  ;;  %v544_v54 = vld [vmem:[#allocation2 + $0x28] sm:$0xff]  ;;  %v777_v56 = vld [vmem:[%s2450_s27 + $0x70] sm:$0xff] }
 0x10b   : > { %649 = vmatprep.subr.bf16.mxu0 %v2118_v19  ;;  %1986 = vmatprep.subr.bf16.mxu1 %v2118_v19  ;;  %v541_v25 = vld [vmem:[#allocation2 + $0x10] sm:$0xff]  ;;  %v542_v58 = vld [vmem:[#allocation2 + $0x18] sm:$0xff] }
 0x10c   : > { %v545_v57 = vld [vmem:[#allocation2 + $0x30] sm:$0xff]  ;;  %v546_v59 = vld [vmem:[#allocation2 + $0x38] sm:$0xff] }
 0x10d   : > { %795 = vperm.xlu1 %2108, %v768_v38   ;;  %792 = vperm.xlu0 %2107, %v767_v18  }
 0x10e   : > { %650 = vmatpush1.bf16.msra.mxu0 %v2120_v20  ;;  %1994 = vmatpush1.bf16.msra.mxu1 %v2120_v20 }
 0x10f   : > { %651 = vmatprep.subr.bf16.mxu0 %v2121_v22  ;;  %1987 = vmatprep.subr.bf16.mxu1 %v2121_v22 }
 0x111   : > { %801 = vperm.xlu1 %2108, %v770_v42   ;;  %798 = vperm.xlu0 %2107, %v769_v43  }
 0x112   : > { %652 = vmatpush1.bf16.msra.mxu0 %v2123_v27  ;;  %1995 = vmatpush1.bf16.msra.mxu1 %v2123_v27 }
 0x113   : > { %653 = vmatprep.subr.bf16.mxu0 %v2124_v31  ;;  %1988 = vmatprep.subr.bf16.mxu1 %v2124_v31 }
 0x115   : > { %807 = vperm.xlu1 %2108, %v772_v46   ;;  %804 = vperm.xlu0 %2107, %v771_v47  }
 0x116   : > { %654 = vmatpush1.bf16.msra.mxu0 %v2126_v35  ;;  %1996 = vmatpush1.bf16.msra.mxu1 %v2126_v35 }
 0x117   : > { %655 = vmatprep.subr.bf16.mxu0 %v2127_v16  ;;  %1989 = vmatprep.subr.bf16.mxu1 %v2127_v16 }
 0x119   : > { %813 = vperm.xlu1 %2108, %v774_v50   ;;  %810 = vperm.xlu0 %2107, %v773_v51  }
 0x11a   : > { %656 = vmatpush1.bf16.msra.mxu0 %v2129_v39  ;;  %1997 = vmatpush1.bf16.msra.mxu1 %v2129_v39 }
 0x11b   : > { %657 = vmatprep.subr.bf16.mxu0 %v2130_v17  ;;  %1990 = vmatprep.subr.bf16.mxu1 %v2130_v17 }
 0x11d   : > { %819 = vperm.xlu1 %2108, %v776_v52   ;;  %816 = vperm.xlu0 %2107, %v775_v24  }
 0x11e   : > { %658 = vmatpush1.bf16.msra.mxu0 %v2132_v21  ;;  %1998 = vmatpush1.bf16.msra.mxu1 %v2132_v21 }
 0x121   : > { %676 = vmatmul.mubr.bf16.vlgmr.msra.gmra.mrb[0].mxu0 %v539_v48  ;;  %716 = vmatmul.mubr.bf16.vlgmr.msra.gmra.mrb[0].mxu1 %v543_v49 }
 0x122   : > { %685 = vmatprep.mubr.bf16.mxu0 %v2304_v41  ;;  %725 = vmatprep.mubr.bf16.mxu1 %v2304_v41 }
 0x123   : > { %825 = vperm.xlu1 %2108, %v778_v55   ;;  %822 = vperm.xlu0 %2107, %v777_v56  }
 0x129   : > { %686 = vmatmul.mubr.bf16.gmra.mrb[4].mxu0 %v540_v53  ;;  %726 = vmatmul.mubr.bf16.gmra.mrb[4].mxu1 %v544_v54 }
 0x12a   : > { %695 = vmatprep.mubr.bf16.mxu0 %v2304_v41  ;;  %735 = vmatprep.mubr.bf16.mxu1 %v2304_v41 }
 0x131   : > { %696 = vmatmul.mubr.bf16.gmra.mrb[8].mxu0 %v541_v25  ;;  %736 = vmatmul.mubr.bf16.gmra.mrb[8].mxu1 %v545_v57 }
 0x132   : > { %705 = vmatprep.mubr.bf16.mxu0 %v2304_v41  ;;  %745 = vmatprep.mubr.bf16.mxu1 %v2304_v41 }
 0x139   : > { %706 = vmatmul.mubr.bf16.gmra.mrb[12].mxu0 %v542_v58  ;;  %746 = vmatmul.mubr.bf16.gmra.mrb[12].mxu1 %v546_v59 }
 0x184   : > { %v2627_v60 = vpop.permute.xlu1 %786  ;;  %v2629_v28 = vpop.permute.xlu0 %780 }
 0x185   : > { %vm827_vm1 = vcmp.eq.s32.totalorder %v2649_v6, %v2629_v28  ;;  %vm828_vm2 = vcmp.eq.s32.totalorder %v2651_v32, %v2629_v28  ;;  %vm831_vm9 = vcmp.eq.s32.totalorder %v2649_v6, %v2627_v60  ;;  %vm832_vm10 = vcmp.eq.s32.totalorder %v2651_v32, %v2627_v60 }
 0x188   : > { %v2631_v61 = vpop.permute.xlu1 %789  ;;  %v2633_v62 = vpop.permute.xlu0 %783 }
 0x189   : > { %vm829_vm3 = vcmp.eq.s32.totalorder %v2649_v6, %v2633_v62  ;;  %vm830_vm4 = vcmp.eq.s32.totalorder %v2651_v32, %v2633_v62  ;;  %vm833_vm12 = vcmp.eq.s32.totalorder %v2649_v6, %v2631_v61  ;;  %vm834_vm15 = vcmp.eq.s32.totalorder %v2651_v32, %v2631_v61 }
 0x18c   : > { %v2635_v0 = vpop.permute.xlu1 %795  ;;  %v2637_v29 = vpop.permute.xlu0 %792 }
 0x190   : > { %v2644_v3 = vpop.permute.xlu1 %801  ;;  %v2646_v4 = vpop.permute.xlu0 %798 }
 0x194   : > { %v2653_v7 = vpop.permute.xlu1 %807  ;;  %v805_v33 = vpop.permute.xlu0 %804 }
 0x195   : > { %vm845_vm5 = vcmp.eq.s32.totalorder %v2649_v6, %v2653_v7  ;;  %vm846_vm6 = vcmp.eq.s32.totalorder %v2651_v32, %v2653_v7  ;;  %vm843_vm7 = vcmp.eq.s32.totalorder %v2649_v6, %v805_v33  ;;  %vm844_vm8 = vcmp.eq.s32.totalorder %v2651_v32, %v805_v33 }
 0x198   : > { %v2690_v30 = vpop.permute.xlu0 %810  ;;  %v2714_v46 = vpop.permute.xlu1 %813 }
 0x199   : > { %vm847_vm11 = vcmp.eq.s32.totalorder %v2649_v6, %v2690_v30  ;;  %vm848_vm13 = vcmp.eq.s32.totalorder %v2651_v32, %v2690_v30  ;;  %vm849_vm14 = vcmp.eq.s32.totalorder %v2649_v6, %v2714_v46  ;;  %vm850_vm0 = vcmp.eq.s32.totalorder %v2651_v32, %v2714_v46 }
 0x1f4   : > { %v677_v8 = vpop.f32.mrb[0].mxu0  ;;  %v717_v9 = vpop.f32.mrb[0].mxu1 }
 0x1f5   : > { %v2667_v10 = vadd.f32 -22.4, %v677_v8  ;;  %v1924_v11 = vadd.f32 -22.4, %v717_v9  ;;  %v679_v36 = vpop.f32.mrb[1].mxu0  ;;  %v719_v12 = vpop.f32.mrb[1].mxu1 }
 0x1f6   : > { %v1909_v37 = vadd.f32 -22.4, %v679_v36  ;;  %v1925_v40 = vadd.f32 -22.4, %v719_v12  ;;  %v681_v13 = vpop.f32.mrb[2].mxu0  ;;  %v721_v41 = vpop.f32.mrb[2].mxu1 }
 0x1f7   : > { %v891_v44 = vsel %vm827_vm1, %v2667_v10, %v677_v8  ;;  %v907_v45 = vsel %vm843_vm7, %v1924_v11, %v717_v9  ;;  %v2677_v14 = vadd.f32 -22.4, %v681_v13  ;;  %v2679_v15 = vadd.f32 -22.4, %v721_v41  ;;  %v683_v19 = vpop.f32.mrb[3].mxu0  ;;  %v723_v20 = vpop.f32.mrb[3].mxu1 }
 0x1f8   : > { %923 = vst [vmem:[%s2454_s26] sm:$0xff] %v891_v44  ;;  %v1940_v22 = vadd.f32 -64.0, %v891_v44  ;;  %939 = vst [vmem:[%s2454_s26 + $0x80] sm:$0xff] %v907_v45  ;;  %v1956_v23 = vadd.f32 -64.0, %v907_v45  ;;  %v892_v26 = vsel %vm828_vm2, %v1909_v37, %v679_v36  ;;  %v908_v27 = vsel %vm844_vm8, %v1925_v40, %v719_v12 }
 0x1f9   : > { %924 = vst [vmem:[%s2454_s26 + $0x8] sm:$0xff] %v892_v26  ;;  %v1941_v31 = vadd.f32 -64.0, %v892_v26  ;;  %940 = vst [vmem:[%s2454_s26 + $0x88] sm:$0xff] %v908_v27  ;;  %v1957_v34 = vadd.f32 -64.0, %v908_v27  ;;  %v893_v35 = vsel %vm829_vm3, %v2677_v14, %v681_v13  ;;  %v909_v38 = vsel %vm845_vm5, %v2679_v15, %v721_v41 }
 0x1fa   : > { %v1116_v16 = vmul.f32 1.442695, %v1940_v22  ;;  %v1148_v18 = vmul.f32 1.442695, %v1956_v23  ;;  %925 = vst [vmem:[%s2454_s26 + $0x10] sm:$0xff] %v893_v35  ;;  %v1942_v39 = vadd.f32 -64.0, %v893_v35 }
 0x1fb   : > { %941 = vst [vmem:[%s2454_s26 + $0x90] sm:$0xff] %v909_v38  ;;  %v1958_v42 = vadd.f32 -64.0, %v909_v38  ;;  %v1118_v17 = vmul.f32 1.442695, %v1941_v31  ;;  %v1150_v43 = vmul.f32 1.442695, %v1957_v34 }
 0x1fc   : > { %v2712_v21 = vadd.f32 -22.4, %v683_v19  ;;  %2133 = vpow2.f32 %v1116_v16  ;;  %v1120_v47 = vmul.f32 1.442695, %v1942_v39  ;;  %v2716_v49 = vadd.f32 -22.4, %v723_v20  ;;  %v2790_v39 = vpop.permute.xlu1 %819 }
 0x1fd   : > { %v1152_v48 = vmul.f32 1.442695, %v1958_v42  ;;  %2135 = vpow2.f32 %v1148_v18  ;;  %v987_v51 = vsel %vm843_vm7, %v1924_v11, 0.0  ;;  %v988_v52 = vsel %vm844_vm8, %v1925_v40, 0.0  ;;  %v687_v24 = vpop.f32.mrb[4].mxu0  ;;  %v727_v53 = vpop.f32.mrb[4].mxu1 }
 0x1fe   : > { %v894_v50 = vsel %vm830_vm4, %v2712_v21, %v683_v19  ;;  %2137 = vpow2.f32 %v1118_v17  ;;  %v910_v55 = vsel %vm846_vm6, %v2716_v49, %v723_v20  ;;  %v1027_v56 = vadd.f32 %v988_v52, %v987_v51  ;;  %v689_v25 = vpop.f32.mrb[5].mxu0  ;;  %v729_v57 = vpop.f32.mrb[5].mxu1 }
 0x1ff   : > { %926 = vst [vmem:[%s2454_s26 + $0x18] sm:$0xff] %v894_v50  ;;  %v1943_v54 = vadd.f32 -64.0, %v894_v50  ;;  %2139 = vpow2.f32 %v1150_v43  ;;  %942 = vst [vmem:[%s2454_s26 + $0x98] sm:$0xff] %v910_v55  ;;  %v1959_v58 = vadd.f32 -64.0, %v910_v55  ;;  %v971_v59 = vsel %vm827_vm1, %v2667_v10, 0.0  ;;  %v691_v5 = vpop.f32.mrb[6].mxu0  ;;  %v2792_v42 = vpop.permute.xlu0 %816 }
 0x200   : > { %v972_v2 = vsel %vm828_vm2, %v1909_v37, 0.0  ;;  %v731_v33 = vpop.f32.mrb[6].mxu1  ;;  %2141 = vpow2.f32 %v1120_v47  ;;  %1028 = vadd.xlane.f32.xlu1 %v1027_v56  ;;  %v2741_v11 = vadd.f32 -22.4, %v687_v24  ;;  %v2743_v12 = vpop.f32.mrb[7].mxu0  ;;  %vm835_vm1 = vcmp.eq.s32.totalorder %v2649_v6, %v2637_v29 }
 0x201   : > { %v1122_v8 = vmul.f32 1.442695, %v1943_v54  ;;  %v1003_v9 = vadd.f32 %v972_v2, %v971_v59  ;;  %v733_v36 = vpop.f32.mrb[7].mxu1  ;;  %2143 = vpow2.f32 %v1152_v48  ;;  %v1154_v40 = vmul.f32 1.442695, %v1959_v58 }
 0x202   : > { %v2745_v10 = vadd.f32 -22.4, %v727_v53  ;;  %v2747_v28 = vadd.f32 -22.4, %v689_v25  ;;  %v895_v37 = vsel %vm831_vm9, %v2741_v11, %v687_v24  ;;  %v2753_v13 = vadd.f32 -22.4, %v729_v57 }
 0x203   : > { %2145 = vpow2.f32 %v1122_v8  ;;  %1004 = vadd.xlane.f32.xlu0 %v1003_v9  ;;  %v2755_v41 = vadd.f32 -22.4, %v691_v5  ;;  %927 = vst [vmem:[%s2454_s26 + $0x20] sm:$0xff] %v895_v37  ;;  %v1944_v44 = vadd.f32 -64.0, %v895_v37  ;;  %v2784_v16 = vadd.f32 -22.4, %v731_v33 }
 0x204   : > { %2147 = vpow2.f32 %v1154_v40  ;;  %v911_v45 = vsel %vm847_vm11, %v2745_v10, %v727_v53  ;;  %v896_v19 = vsel %vm832_vm10, %v2747_v28, %v689_v25  ;;  %v912_v23 = vsel %vm848_vm13, %v2753_v13, %v729_v57  ;;  %v2778_v27 = vpop.f32.mrb[8].mxu0  ;;  %v2780_v31 = vpop.f32.mrb[8].mxu1 }
 0x205   : > { %943 = vst [vmem:[%s2454_s26 + $0xa0] sm:$0xff] %v911_v45  ;;  %v1960_v20 = vadd.f32 -64.0, %v911_v45  ;;  %928 = vst [vmem:[%s2454_s26 + $0x28] sm:$0xff] %v896_v19  ;;  %v1945_v22 = vadd.f32 -64.0, %v896_v19  ;;  %v897_v26 = vsel %vm833_vm12, %v2755_v41, %v691_v5  ;;  %v1124_v34 = vmul.f32 1.442695, %v1944_v44 }
 0x206   : > { %944 = vst [vmem:[%s2454_s26 + $0xa8] sm:$0xff] %v912_v23  ;;  %v1961_v35 = vadd.f32 -64.0, %v912_v23  ;;  %929 = vst [vmem:[%s2454_s26 + $0x30] sm:$0xff] %v897_v26  ;;  %v1946_v38 = vadd.f32 -64.0, %v897_v26  ;;  %v2786_v18 = vpop.eup %2133  ;;  %v2794_v47 = vadd.f32 -22.4, %v733_v36  ;;  %vm851_vm2 = vcmp.eq.s32.totalorder %v2649_v6, %v2792_v42 }
 0x207   : > { %v1156_v17 = vmul.f32 1.442695, %v1960_v20  ;;  %v1126_v43 = vmul.f32 1.442695, %v1945_v22  ;;  %v2796_v48 = vpop.eup %2135  ;;  %2149 = vpow2.f32 %v1124_v34  ;;  %v913_v52 = vsel %vm849_vm14, %v2784_v16, %v731_v33  ;;  %v2806_v24 = vpop.f32.mrb[9].mxu0 }
 0x208   : > { %v1158_v50 = vmul.f32 1.442695, %v1961_v35  ;;  %v1128_v51 = vmul.f32 1.442695, %v1946_v38  ;;  %v2808_v53 = vpop.f32.mrb[9].mxu1  ;;  %v2810_v54 = vpop.eup %2137  ;;  %vm836_vm7 = vcmp.eq.s32.totalorder %v2651_v32, %v2637_v29  ;;  %945 = vst [vmem:[%s2454_s26 + $0xb0] sm:$0xff] %v913_v52  ;;  %v914_v56 = vsel %vm850_vm0, %v2794_v47, %v733_v36 }
 0x209   : > { %2151 = vpow2.f32 %v1156_v17  ;;  %v1962_v55 = vadd.f32 -64.0, %v913_v52  ;;  %v989_v25 = vsel %vm845_vm5, %v2679_v15, 0.0  ;;  %v2823_v57 = vpop.f32.mrb[10].mxu0  ;;  %v2825_v58 = vpop.f32.mrb[10].mxu1  ;;  %vm837_vm8 = vcmp.eq.s32.totalorder %v2649_v6, %v2635_v0  ;;  %946 = vst [vmem:[%s2454_s26 + $0xb8] sm:$0xff] %v914_v56 }
 0x20a   : > { %v2827_v59 = vpop.eup %2139  ;;  %2153 = vpow2.f32 %v1126_v43  ;;  %v1963_v2 = vadd.f32 -64.0, %v914_v56  ;;  %v990_v5 = vsel %vm846_vm6, %v2716_v49, 0.0  ;;  %v973_v15 = vsel %vm829_vm3, %v2677_v14, 0.0  ;;  %v2840_v33 = vpop.f32.mrb[11].mxu1 }
 0x20b   : > { %v2842_v8 = vpop.f32.mrb[11].mxu0  ;;  %v2844_v9 = vpop.eup %2141  ;;  %vm853_vm5 = vcmp.eq.s32.totalorder %v2649_v6, %v2790_v39  ;;  %2155 = vpow2.f32 %v1158_v50  ;;  %v1160_v36 = vmul.f32 1.442695, %v1962_v55  ;;  %v1030_v40 = vadd.f32 %v990_v5, %v989_v25 }
 0x20c   : > { %v974_v7 = vsel %vm830_vm4, %v2712_v21, 0.0  ;;  %v2852_v49 = vpop.eup %2143  ;;  %2157 = vpow2.f32 %v1128_v51  ;;  %v1162_v14 = vmul.f32 1.442695, %v1963_v2  ;;  %v2855_v44 = vadd.f32 -22.4, %v2743_v12  ;;  %v2871_v20 = vpop.f32.mrb[12].mxu0 }
 0x20d   : > { %v1006_v37 = vadd.f32 %v974_v7, %v973_v15  ;;  %v2857_v45 = vpop.eup %2145  ;;  %2159 = vpow2.f32 %v1160_v36  ;;  %1031 = vadd.xlane.f32.xlu0 %v1030_v40  ;;  %v991_v19 = vsel %vm847_vm11, %v2745_v10, 0.0  ;;  %v992_v62 = vsel %vm848_vm13, %v2753_v13, 0.0  ;;  %v2873_v22 = vpop.f32.mrb[12].mxu1 }
 0x20e   : > { %v975_v21 = vsel %vm831_vm9, %v2741_v11, 0.0  ;;  %v2875_v23 = vpop.eup %2147  ;;  %2161 = vpow2.f32 %v1162_v14  ;;  %v898_v30 = vsel %vm834_vm15, %v2855_v44, %v2743_v12  ;;  %v1033_v10 = vadd.f32 %v992_v62, %v991_v19  ;;  %v2886_v13 = vpop.f32.mrb[13].mxu0 }
 0x20f   : > { %1007 = vadd.xlane.f32.xlu1 %v1006_v37  ;;  %v976_v11 = vsel %vm832_vm10, %v2747_v28, 0.0  ;;  %v2888_v26 = vpop.f32.mrb[13].mxu1  ;;  %vm854_vm3 = vcmp.eq.s32.totalorder %v2651_v32, %v2790_v39  ;;  %930 = vst [vmem:[%s2454_s26 + $0x38] sm:$0xff] %v898_v30  ;;  %v1947_v34 = vadd.f32 -64.0, %v898_v30  ;;  %v2894_v38 = vadd.f32 -22.4, %v2778_v27  ;;  %v2933_v5 = vpop.permute.xlu0 %822 }
 0x210   : > { %v1009_v35 = vadd.f32 %v976_v11, %v975_v21  ;;  %v2897_v12 = vadd.f32 -22.4, %v2780_v31  ;;  %v2899_v17 = vpop.f32.mrb[14].mxu0  ;;  %vm838_vm4 = vcmp.eq.s32.totalorder %v2651_v32, %v2635_v0  ;;  %vm852_vm6 = vcmp.eq.s32.totalorder %v2651_v32, %v2792_v42  ;;  %v2927_v56 = vpop.f32.mrb[14].mxu1 }
 0x211   : > { %v2906_v60 = vadd.f32 -22.4, %v2806_v24  ;;  %v2909_v28 = vadd.f32 -22.4, %v2808_v53  ;;  %v2912_v43 = vadd.f32 -22.4, %v2823_v57  ;;  %v899_v51 = vsel %vm835_vm1, %v2894_v38, %v2778_v27  ;;  %v2931_v2 = vpop.eup %2149 }
 0x212   : > { %v1130_v50 = vmul.f32 1.442695, %v1947_v34  ;;  %1010 = vadd.xlane.f32.xlu0 %v1009_v35  ;;  %v915_v52 = vsel %vm851_vm2, %v2897_v12, %v2780_v31  ;;  %v2925_v55 = vadd.f32 -22.4, %v2825_v58  ;;  %v2929_v25 = vpop.f32.mrb[15].mxu0  ;;  %931 = vst [vmem:[%s2454_s26 + $0x40] sm:$0xff] %v899_v51  ;;  %vm839_vm9 = vcmp.eq.s32.totalorder %v2649_v6, %v2646_v4 }
 0x213   : > { %1034 = vadd.xlane.f32.xlu1 %v1033_v10  ;;  %v1948_v27 = vadd.f32 -64.0, %v899_v51  ;;  %947 = vst [vmem:[%s2454_s26 + $0xc0] sm:$0xff] %v915_v52  ;;  %v1964_v15 = vadd.f32 -64.0, %v915_v52  ;;  %v900_v31 = vsel %vm836_vm7, %v2906_v60, %v2806_v24  ;;  %v916_v36 = vsel %vm852_vm6, %v2909_v28, %v2808_v53  ;;  %v2947_v40 = vpop.f32.mrb[15].mxu1  ;;  %v2949_v7 = vpop.eup %2151 }
 0x214   : > { %2163 = vpow2.f32 %v1130_v50  ;;  %932 = vst [vmem:[%s2454_s26 + $0x48] sm:$0xff] %v900_v31  ;;  %v1949_v14 = vadd.f32 -64.0, %v900_v31  ;;  %948 = vst [vmem:[%s2454_s26 + $0xc8] sm:$0xff] %v916_v36  ;;  %v1965_v37 = vadd.f32 -64.0, %v916_v36  ;;  %v901_v24 = vsel %vm837_vm8, %v2912_v43, %v2823_v57  ;;  %v2958_v19 = vpop.eup %2153 }
 0x215   : > { %v1132_v53 = vmul.f32 1.442695, %v1948_v27  ;;  %v1164_v62 = vmul.f32 1.442695, %v1964_v15  ;;  %933 = vst [vmem:[%s2454_s26 + $0x50] sm:$0xff] %v901_v24  ;;  %v1950_v21 = vadd.f32 -64.0, %v901_v24  ;;  %v917_v30 = vsel %vm853_vm5, %v2925_v55, %v2825_v58  ;;  %v2968_v10 = vpop.eup %2155  ;;  %v2983_v58 = vpop.permute.xlu1 %825 }
 0x216   : > { %vm840_vm10 = vcmp.eq.s32.totalorder %v2651_v32, %v2646_v4  ;;  %vm855_vm11 = vcmp.eq.s32.totalorder %v2649_v6, %v2933_v5  ;;  %v1134_v57 = vmul.f32 1.442695, %v1949_v14  ;;  %v1166_v11 = vmul.f32 1.442695, %v1965_v37  ;;  %949 = vst [vmem:[%s2454_s26 + $0xd0] sm:$0xff] %v917_v30  ;;  %v2979_v50 = vpop.eup %2157 }
 0x217   : > { %v1966_v34 = vadd.f32 -64.0, %v917_v30  ;;  %v977_v35 = vsel %vm833_vm12, %v2755_v41, 0.0  ;;  %vm841_vm13 = vcmp.eq.s32.totalorder %v2649_v6, %v2644_v3  ;;  %2165 = vpow2.f32 %v1132_v53  ;;  %v2992_v15 = vpop.eup %2159 }
 0x218   : > { %v1136_v51 = vmul.f32 1.442695, %v1950_v21  ;;  %v2986_v52 = vadd.f32 -22.4, %v2840_v33  ;;  %v978_v27 = vsel %vm834_vm15, %v2855_v44, 0.0  ;;  %2167 = vpow2.f32 %v1164_v62  ;;  %v2997_v14 = vpop.eup %2161 }
 0x219   : > { %v1168_v41 = vmul.f32 1.442695, %v1966_v34  ;;  %v1012_v31 = vadd.f32 %v978_v27, %v977_v35  ;;  %v2995_v36 = vadd.f32 -22.4, %v2842_v8  ;;  %2169 = vpow2.f32 %v1134_v57 }
 0x21a   : > { %v918_v37 = vsel %vm854_vm3, %v2986_v52, %v2840_v33  ;;  %v993_v61 = vsel %vm849_vm14, %v2784_v16, 0.0  ;;  %v994_v44 = vsel %vm850_vm0, %v2794_v47, 0.0  ;;  %vm857_vm12 = vcmp.eq.s32.totalorder %v2649_v6, %v2983_v58 }
 0x21b   : > { %2171 = vpow2.f32 %v1166_v11  ;;  %950 = vst [vmem:[%s2454_s26 + $0xd8] sm:$0xff] %v918_v37  ;;  %v1967_v24 = vadd.f32 -64.0, %v918_v37  ;;  %1013 = vadd.xlane.f32.xlu0 %v1012_v31  ;;  %v902_v33 = vsel %vm838_vm4, %v2995_v36, %v2842_v8  ;;  %v1036_v53 = vadd.f32 %v994_v44, %v993_v61 }
 0x21c   : > { %2173 = vpow2.f32 %v1136_v51  ;;  %934 = vst [vmem:[%s2454_s26 + $0x58] sm:$0xff] %v902_v33  ;;  %v1951_v16 = vadd.f32 -64.0, %v902_v33  ;;  %v979_v46 = vsel %vm835_vm1, %v2894_v38, 0.0  ;;  %v980_v47 = vsel %vm836_vm7, %v2906_v60, 0.0 }
 0x21d   : > { %2175 = vpow2.f32 %v1168_v41  ;;  %v1170_v62 = vmul.f32 1.442695, %v1967_v24  ;;  %v1015_v21 = vadd.f32 %v980_v47, %v979_v46  ;;  %v3030_v8 = vadd.f32 -22.4, %v2871_v20 }
 0x21e   : > { %vm856_vm14 = vcmp.eq.s32.totalorder %v2651_v32, %v2933_v5  ;;  %v1138_v30 = vmul.f32 1.442695, %v1951_v16  ;;  %v3035_v57 = vadd.f32 -22.4, %v2873_v22  ;;  %v3038_v38 = vadd.f32 -22.4, %v2886_v13  ;;  %v3040_v29 = vpop.eup %2163 }
 0x21f   : > { %2177 = vpow2.f32 %v1170_v62  ;;  %1037 = vadd.xlane.f32.xlu0 %v1036_v53  ;;  %1016 = vadd.xlane.f32.xlu1 %v1015_v21  ;;  %v903_v60 = vsel %vm839_vm9, %v3030_v8, %v2871_v20  ;;  %v3048_v11 = vadd.f32 -22.4, %v2888_v26  ;;  %v3051_v34 = vadd.f32 -22.4, %v2899_v17 }
 0x220   : > { %2179 = vpow2.f32 %v1138_v30  ;;  %935 = vst [vmem:[%s2454_s26 + $0x60] sm:$0xff] %v903_v60  ;;  %v1952_v35 = vadd.f32 -64.0, %v903_v60  ;;  %v919_v51 = vsel %vm855_vm11, %v3035_v57, %v2873_v22  ;;  %v904_v20 = vsel %vm840_vm10, %v3038_v38, %v2886_v13 }
 0x221   : > { %vm842_vm15 = vcmp.eq.s32.totalorder %v2651_v32, %v2644_v3  ;;  %951 = vst [vmem:[%s2454_s26 + $0xe0] sm:$0xff] %v919_v51  ;;  %v1968_v27 = vadd.f32 -64.0, %v919_v51  ;;  %936 = vst [vmem:[%s2454_s26 + $0x68] sm:$0xff] %v904_v20  ;;  %v1953_v41 = vadd.f32 -64.0, %v904_v20  ;;  %v920_v31 = vsel %vm856_vm14, %v3048_v11, %v2888_v26  ;;  %v3078_v13 = vpop.eup %2165 }
 0x222   : > { %v905_v22 = vsel %vm841_vm13, %v3051_v34, %v2899_v17  ;;  %v1140_v37 = vmul.f32 1.442695, %v1952_v35  ;;  %952 = vst [vmem:[%s2454_s26 + $0xe8] sm:$0xff] %v920_v31  ;;  %v1969_v61 = vadd.f32 -64.0, %v920_v31  ;;  %v1938_v24 = vadd.f32 -22.4, %v2927_v56  ;;  %v3083_v33 = vpop.eup %2167 }
 0x223   : > { %937 = vst [vmem:[%s2454_s26 + $0x70] sm:$0xff] %v905_v22  ;;  %v1954_v44 = vadd.f32 -64.0, %v905_v22  ;;  %vm858_vm0 = vcmp.eq.s32.totalorder %v2651_v32, %v2983_v58  ;;  %v1172_v26 = vmul.f32 1.442695, %v1968_v27  ;;  %v1142_v53 = vmul.f32 1.442695, %v1953_v41  ;;  %v3088_v16 = vpop.eup %2169 }
 0x224   : > { %v1939_v17 = vadd.f32 -22.4, %v2947_v40  ;;  %2181 = vpow2.f32 %v1140_v37  ;;  %v1174_v46 = vmul.f32 1.442695, %v1969_v61  ;;  %v921_v62 = vsel %vm857_vm12, %v1938_v24, %v2927_v56 }
 0x225   : > { %v1144_v47 = vmul.f32 1.442695, %v1954_v44  ;;  %v3094_v21 = vpop.eup %2171  ;;  %2183 = vpow2.f32 %v1172_v26  ;;  %953 = vst [vmem:[%s2454_s26 + $0xf0] sm:$0xff] %v921_v62  ;;  %v1970_v30 = vadd.f32 -64.0, %v921_v62  ;;  %v995_v35 = vsel %vm851_vm2, %v2897_v12, 0.0 }
 0x226   : > { %v922_v60 = vsel %vm858_vm0, %v1939_v17, %v2947_v40  ;;  %v3105_v51 = vpop.eup %2173  ;;  %2185 = vpow2.f32 %v1142_v53  ;;  %v996_v20 = vsel %vm852_vm6, %v2909_v28, 0.0  ;;  %v981_v40 = vsel %vm837_vm8, %v2912_v43, 0.0 }
 0x227   : > { %954 = vst [vmem:[%s2454_s26 + $0xf8] sm:$0xff] %v922_v60  ;;  %v1971_v56 = vadd.f32 -64.0, %v922_v60  ;;  %v3116_v27 = vpop.eup %2175  ;;  %2187 = vpow2.f32 %v1174_v46  ;;  %v1176_v41 = vmul.f32 1.442695, %v1970_v30  ;;  %v1039_v12 = vadd.f32 %v996_v20, %v995_v35  ;;  %v955_v20 = vld [vmem:[#allocation4] sm:$0xff] }
 0x228   : > { %v982_v31 = vsel %vm838_vm4, %v2995_v36, 0.0  ;;  %2189 = vpow2.f32 %v1144_v47  ;;  %v1923_v28 = vadd.f32 -22.4, %v2929_v25  ;;  %v997_v43 = vsel %vm853_vm5, %v2925_v55, 0.0 }
 0x229   : > { %v1178_v22 = vmul.f32 1.442695, %v1971_v56  ;;  %v1018_v42 = vadd.f32 %v982_v31, %v981_v40  ;;  %v3123_v37 = vpop.eup %2177  ;;  %2191 = vpow2.f32 %v1176_v41  ;;  %1040 = vadd.xlane.f32.xlu1 %v1039_v12  ;;  %v998_v0 = vsel %vm854_vm3, %v2986_v52, 0.0  ;;  %v964_v31 = vld [vmem:[#allocation4 + $0x48] sm:$0xff] }
 0x22a   : > { %v983_v36 = vsel %vm839_vm9, %v3030_v8, 0.0  ;;  %v3137_v61 = vpop.eup %2179  ;;  %v906_v44 = vsel %vm842_vm15, %v1923_v28, %v2929_v25  ;;  %v1042_v55 = vadd.f32 %v998_v0, %v997_v43  ;;  %v984_v39 = vsel %vm840_vm10, %v3038_v38, 0.0 }
 0x22b   : > { %2193 = vpow2.f32 %v1178_v22  ;;  %1019 = vadd.xlane.f32.xlu0 %v1018_v42  ;;  %938 = vst [vmem:[%s2454_s26 + $0x78] sm:$0xff] %v906_v44  ;;  %v1955_v52 = vadd.f32 -64.0, %v906_v44  ;;  %v1021_v26 = vadd.f32 %v984_v39, %v983_v36  ;;  %v999_v8 = vsel %vm855_vm11, %v3035_v57, 0.0  ;;  %v956_v22 = vld [vmem:[#allocation4 + $0x8] sm:$0xff]  ;;  %v957_v36 = vld [vmem:[#allocation4 + $0x10] sm:$0xff] }
 0x22c   : > { %v1000_v53 = vsel %vm856_vm14, %v3048_v11, 0.0  ;;  %v985_v4 = vsel %vm841_vm13, %v3051_v34, 0.0  ;;  %v986_v38 = vsel %vm842_vm15, %v1923_v28, 0.0  ;;  %v1001_v46 = vsel %vm857_vm12, %v1938_v24, 0.0  ;;  %v965_v44 = vld [vmem:[#allocation4 + $0x50] sm:$0xff] }
 0x22d   : > { %v1045_v25 = vadd.f32 %v1000_v53, %v999_v8  ;;  %v1146_v57 = vmul.f32 1.442695, %v1955_v52  ;;  %1022 = vadd.xlane.f32.xlu1 %v1021_v26  ;;  %v1024_v47 = vadd.f32 %v986_v38, %v985_v4  ;;  %v1002_v5 = vsel %vm858_vm0, %v1939_v17, 0.0  ;;  %v963_v17 = vld [vmem:[#allocation4 + $0x40] sm:$0xff]  ;;  %v958_v8 = vld [vmem:[#allocation4 + $0x18] sm:$0xff] }
 0x22e   : > { %v3169_v11 = vpop.eup %2181  ;;  %v1048_v62 = vadd.f32 %v1002_v5, %v1001_v46  ;;  %vm1067_vm1 = vcmask 7168   ;;  %v966_v4 = vld [vmem:[#allocation4 + $0x58] sm:$0xff]  ;;  %v959_v38 = vld [vmem:[#allocation4 + $0x20] sm:$0xff]  ;;  %vm1184_vm2 = vcmp.lt.s32.totalorder (!%p1972_p3), %v2649_v6, 600  ;;  %vm1185_vm7 = vcmp.lt.s32.totalorder (!%p1972_p3), %v2651_v32, 600 }
 0x22f   : > { %1043 = vadd.xlane.f32.xlu0 %v1042_v55  ;;  %v3171_v34 = vpop.eup %2183  ;;  %2195 = vpow2.f32 %v1146_v57 }
 0x230   : > { %v3173_v3 = vpop.eup %2185 }
 0x231   : > { %v3175_v30 = vpop.eup %2187  ;;  %1046 = vadd.xlane.f32.xlu1 %v1045_v25 }
 0x232   : > { %v3177_v24 = vpop.eup %2189 }
 0x233   : > { %1025 = vadd.xlane.f32.xlu0 %v1024_v47  ;;  %v3179_v60 = vpop.eup %2191 }
 0x235   : > { %v3181_v35 = vpop.eup %2193 }
 0x237   : > { %1049 = vadd.xlane.f32.xlu0 %v1048_v62  ;;  %v967_v62 = vld [vmem:[#allocation4 + $0x60] sm:$0xff] }
 0x239   : > { %v3183_v58 = vpop.eup %2195 }
 0x28d   : > { %v1029_v56 = vpop.xlane.xlu1 %1028 }
 0x28e   : > { %v1059_v40 = vadd.f32 %v1029_v56, %v963_v17  ;;  %v960_v17 = vld [vmem:[#allocation4 + $0x28] sm:$0xff] }
 0x290   : > { %v1005_v41 = vpop.xlane.xlu0 %1004  ;;  %1076 = vst.msk [vmem:[#allocation4 + $0x40] sm:$0xff] %vm1067_vm1, %v1059_v40 }
 0x291   : > { %v1051_v12 = vadd.f32 %v1005_v41, %v955_v20 }
 0x293   : > { %1068 = vst.msk [vmem:[#allocation4] sm:$0xff] %vm1067_vm1, %v1051_v12  ;;  %v961_v12 = vld [vmem:[#allocation4 + $0x30] sm:$0xff] }
 0x29a   : > { %v1032_v42 = vpop.xlane.xlu0 %1031 }
 0x29b   : > { %v1060_v28 = vadd.f32 %v1032_v42, %v964_v31  ;;  %v968_v31 = vld [vmem:[#allocation4 + $0x68] sm:$0xff] }
 0x29c   : > { %v1008_v43 = vpop.xlane.xlu1 %1007 }
 0x29d   : > { %v1052_v0 = vadd.f32 %v1008_v43, %v956_v22  ;;  %1077 = vst.msk [vmem:[#allocation4 + $0x48] sm:$0xff] %vm1067_vm1, %v1060_v28 }
 0x29f   : > { %1069 = vst.msk [vmem:[#allocation4 + $0x8] sm:$0xff] %vm1067_vm1, %v1052_v0  ;;  %v1011_v55 = vpop.xlane.xlu0 %1010  ;;  %v969_v0 = vld [vmem:[#allocation4 + $0x70] sm:$0xff] }
 0x2a0   : > { %v1035_v39 = vpop.xlane.xlu1 %1034  ;;  %v1053_v52 = vadd.f32 %v1011_v55, %v957_v36  ;;  %v962_v36 = vld [vmem:[#allocation4 + $0x38] sm:$0xff] }
 0x2a1   : > { %v1061_v26 = vadd.f32 %v1035_v39, %v965_v44 }
 0x2a2   : > { %1070 = vst.msk [vmem:[#allocation4 + $0x10] sm:$0xff] %vm1067_vm1, %v1053_v52 }
 0x2a3   : > { %1078 = vst.msk [vmem:[#allocation4 + $0x50] sm:$0xff] %vm1067_vm1, %v1061_v26  ;;  %v970_v26 = vld [vmem:[#allocation4 + $0x78] sm:$0xff] }
 0x2a8   : > { %v1014_v53 = vpop.xlane.xlu0 %1013 }
 0x2a9   : > { %v1054_v25 = vadd.f32 %v1014_v53, %v958_v8 }
 0x2ab   : > { %1071 = vst.msk [vmem:[#allocation4 + $0x18] sm:$0xff] %vm1067_vm1, %v1054_v25  ;;  %v1190_v25 = vsel (!%p1972_p3), %vm1184_vm2, %v2931_v2, 0.0 }
 0x2ac   : > { %v1038_v46 = vpop.xlane.xlu0 %1037  ;;  %v1017_v57 = vpop.xlane.xlu1 %1016 }
 0x2ad   : > { %v1062_v47 = vadd.f32 %v1038_v46, %v966_v4  ;;  %v1055_v5 = vadd.f32 %v1017_v57, %v959_v38  ;;  %v1191_v4 = vsel (!%p1972_p3), %vm1185_vm7, %v2958_v19, 0.0  ;;  %v1186_v38 = vsel (!%p1972_p3), %vm1184_vm2, %v2786_v18, 0.0 }
 0x2ae   : > { %v1187_v46 = vsel (!%p1972_p3), %vm1185_vm7, %v2810_v54, 0.0  ;;  %v1240_v57 = vadd.f32 (!%p1972_p3), %v1191_v4, %v1190_v25 }
 0x2af   : > { %1079 = vst.msk [vmem:[#allocation4 + $0x58] sm:$0xff] %vm1067_vm1, %v1062_v47  ;;  %1072 = vst.msk [vmem:[#allocation4 + $0x20] sm:$0xff] %vm1067_vm1, %v1055_v5  ;;  %v1234_v47 = vadd.f32 (!%p1972_p3), %v1187_v46, %v1186_v38  ;;  %v1192_v5 = vsel (!%p1972_p3), %vm1184_vm2, %v2979_v50, 0.0  ;;  %v1208_v38 = vsel (!%p1972_p3), %vm1184_vm2, %v2992_v15, 0.0  ;;  %v1209_v46 = vsel (!%p1972_p3), %vm1185_vm7, %v2997_v14, 0.0 }
 0x2b0   : > { %1241 = vadd.xlane.f32.xlu1 (!%p1972_p3), %v1240_v57  ;;  %v1206_v57 = vsel (!%p1972_p3), %vm1184_vm2, %v2949_v7, 0.0 }
 0x2b1   : > { %1235 = vadd.xlane.f32.xlu0 (!%p1972_p3), %v1234_v47  ;;  %v1207_v47 = vsel (!%p1972_p3), %vm1185_vm7, %v2968_v10, 0.0 }
 0x2b6   : > { %v1041_v56 = vpop.xlane.xlu1 %1040 }
 0x2b7   : > { %v1063_v20 = vadd.f32 %v1041_v56, %v967_v62  ;;  %v1193_v62 = vsel (!%p1972_p3), %vm1185_vm7, %v3040_v29, 0.0  ;;  %v1189_v56 = vsel (!%p1972_p3), %vm1185_vm7, %v2857_v45, 0.0 }
 0x2b8   : > { %v1020_v40 = vpop.xlane.xlu0 %1019 }
 0x2b9   : > { %v1056_v41 = vadd.f32 %v1020_v40, %v960_v17  ;;  %1080 = vst.msk [vmem:[#allocation4 + $0x60] sm:$0xff] %vm1067_vm1, %v1063_v20  ;;  %v1188_v17 = vsel (!%p1972_p3), %vm1184_vm2, %v2844_v9, 0.0  ;;  %v1243_v20 = vadd.f32 (!%p1972_p3), %v1193_v62, %v1192_v5  ;;  %v1267_v5 = vadd.f32 (!%p1972_p3), %v1209_v46, %v1208_v38  ;;  %v1223_v38 = vld [vmem:[#allocation3 + $0x28] sm:$0xff] (!%p1972_p3)  ;;  %v1222_v46 = vld [vmem:[#allocation3 + $0x20] sm:$0xff] (!%p1972_p3) }
 0x2ba   : > { %v1023_v22 = vpop.xlane.xlu1 %1022  ;;  %v1237_v40 = vadd.f32 (!%p1972_p3), %v1189_v56, %v1188_v17  ;;  %v1264_v62 = vadd.f32 (!%p1972_p3), %v1207_v47, %v1206_v57  ;;  %v1212_v17 = vsel (!%p1972_p3), %vm1184_vm2, %v3116_v27, 0.0  ;;  %v1213_v56 = vsel (!%p1972_p3), %vm1185_vm7, %v3123_v37, 0.0 }
 0x2bb   : > { %1073 = vst.msk [vmem:[#allocation4 + $0x28] sm:$0xff] %vm1067_vm1, %v1056_v41  ;;  %v1057_v28 = vadd.f32 %v1023_v22, %v961_v12  ;;  %v1196_v41 = vsel (!%p1972_p3), %vm1184_vm2, %v3105_v51, 0.0  ;;  %v1197_v12 = vsel (!%p1972_p3), %vm1185_vm7, %v3137_v61, 0.0  ;;  %v1195_v22 = vsel (!%p1972_p3), %vm1185_vm7, %v3088_v16, 0.0  ;;  %1244 = vadd.xlane.f32.xlu1 (!%p1972_p3), %v1243_v20 }
 0x2bc   : > { %v1044_v42 = vpop.xlane.xlu0 %1043  ;;  %1238 = vadd.xlane.f32.xlu0 (!%p1972_p3), %v1237_v40  ;;  %v1210_v20 = vsel (!%p1972_p3), %vm1184_vm2, %v3083_v33, 0.0  ;;  %v1211_v40 = vsel (!%p1972_p3), %vm1185_vm7, %v3094_v21, 0.0 }
 0x2bd   : > { %v1064_v43 = vadd.f32 %v1044_v42, %v968_v31  ;;  %1074 = vst.msk [vmem:[#allocation4 + $0x30] sm:$0xff] %vm1067_vm1, %v1057_v28  ;;  %v1194_v31 = vsel (!%p1972_p3), %vm1184_vm2, %v3078_v13, 0.0  ;;  %v1249_v42 = vadd.f32 (!%p1972_p3), %v1197_v12, %v1196_v41  ;;  %v1273_v41 = vadd.f32 (!%p1972_p3), %v1213_v56, %v1212_v17  ;;  %v1225_v17 = vld [vmem:[#allocation3 + $0x38] sm:$0xff] (!%p1972_p3)  ;;  %v1224_v56 = vld [vmem:[#allocation3 + $0x30] sm:$0xff] (!%p1972_p3) }
 0x2be   : > { %v1047_v44 = vpop.xlane.xlu1 %1046  ;;  %v1246_v28 = vadd.f32 (!%p1972_p3), %v1195_v22, %v1194_v31  ;;  %v1270_v12 = vadd.f32 (!%p1972_p3), %v1211_v40, %v1210_v20  ;;  %v1216_v31 = vsel (!%p1972_p3), %vm1184_vm2, %v3179_v60, 0.0  ;;  %v1217_v22 = vsel (!%p1972_p3), %vm1185_vm7, %v3181_v35, 0.0 }
 0x2bf   : > { %1081 = vst.msk [vmem:[#allocation4 + $0x68] sm:$0xff] %vm1067_vm1, %v1064_v43  ;;  %v1065_v55 = vadd.f32 %v1047_v44, %v969_v0  ;;  %v1200_v43 = vsel (!%p1972_p3), %vm1184_vm2, %v3177_v24, 0.0  ;;  %v1201_v0 = vsel (!%p1972_p3), %vm1185_vm7, %v3183_v58, 0.0  ;;  %v1199_v44 = vsel (!%p1972_p3), %vm1185_vm7, %v3173_v3, 0.0  ;;  %1250 = vadd.xlane.f32.xlu1 (!%p1972_p3), %v1249_v42 }
 0x2c0   : > { %v1026_v39 = vpop.xlane.xlu0 %1025  ;;  %1247 = vadd.xlane.f32.xlu0 (!%p1972_p3), %v1246_v28  ;;  %v1214_v42 = vsel (!%p1972_p3), %vm1184_vm2, %v3171_v34, 0.0  ;;  %v1215_v28 = vsel (!%p1972_p3), %vm1185_vm7, %v3175_v30, 0.0 }
 0x2c1   : > { %v1058_v52 = vadd.f32 %v1026_v39, %v962_v36  ;;  %1082 = vst.msk [vmem:[#allocation4 + $0x70] sm:$0xff] %vm1067_vm1, %v1065_v55  ;;  %1183 = sbr.rel (%p1972_p3) target bundleno = 871 (0x367), region = 78  ;;  %v1198_v36 = vsel (!%p1972_p3), %vm1184_vm2, %v3169_v11, 0.0  ;;  %v1255_v55 = vadd.f32 (!%p1972_p3), %v1201_v0, %v1200_v43  ;;  %v1279_v43 = vadd.f32 (!%p1972_p3), %v1217_v22, %v1216_v31  ;;  %v1227_v31 = vld [vmem:[#allocation3 + $0x48] sm:$0xff] (!%p1972_p3)  ;;  %v1226_v22 = vld [vmem:[#allocation3 + $0x40] sm:$0xff] (!%p1972_p3) }
 0x2c2   : > { %v1252_v39 = vadd.f32 (!%p1972_p3), %v1199_v44, %v1198_v36  ;;  %v1276_v0 = vadd.f32 (!%p1972_p3), %v1215_v28, %v1214_v42  ;;  %v1220_v36 = vld [vmem:[#allocation3 + $0x10] sm:$0xff] (!%p1972_p3)  ;;  %v1218_v44 = vld [vmem:[#allocation3] sm:$0xff] (!%p1972_p3) }
 0x2c3   : > { %1075 = vst.msk [vmem:[#allocation4 + $0x38] sm:$0xff] %vm1067_vm1, %v1058_v52  ;;  %v1204_v52 = vsel (!%p1972_p3), %vm1184_vm2, %v2852_v49, 0.0  ;;  %1256 = vadd.xlane.f32.xlu1 (!%p1972_p3), %v1255_v55 }
 0x2c4   : > { %v1050_v8 = vpop.xlane.xlu0 %1049  ;;  %1253 = vadd.xlane.f32.xlu0 (!%p1972_p3), %v1252_v39 }
 0x2c5   : > { %v1066_v53 = vadd.f32 %v1050_v8, %v970_v26  ;;  %v1205_v26 = vsel (!%p1972_p3), %vm1185_vm7, %v2875_v23, 0.0  ;;  %v1202_v8 = vsel (!%p1972_p3), %vm1184_vm2, %v2796_v48, 0.0 }
 0x2c6   : > { %v1261_v25 = vadd.f32 (!%p1972_p3), %v1205_v26, %v1204_v52 }
 0x2c7   : > { %1083 = vst.msk [vmem:[#allocation4 + $0x78] sm:$0xff] %vm1067_vm1, %v1066_v53  ;;  %v1203_v53 = vsel (!%p1972_p3), %vm1185_vm7, %v2827_v59, 0.0 }
 0x2c8   : > { %v1258_v4 = vadd.f32 %v1203_v53, %v1202_v8  ;;  %1262 = vadd.xlane.f32.xlu1 %v1261_v25  ;;  %v1221_v8 = vld [vmem:[#allocation3 + $0x18] sm:$0xff]  ;;  %v1219_v53 = vld [vmem:[#allocation3 + $0x8] sm:$0xff] }
 0x2ca   : > { %1259 = vadd.xlane.f32.xlu0 %v1258_v4 }
 0x2cc   : > { %1268 = vadd.xlane.f32.xlu1 %v1267_v5 }
 0x2ce   : > { %1265 = vadd.xlane.f32.xlu0 %v1264_v62 }
 0x2d0   : > { %1274 = vadd.xlane.f32.xlu1 %v1273_v41 }
 0x2d2   : > { %1271 = vadd.xlane.f32.xlu0 %v1270_v12 }
 0x2d4   : > { %1280 = vadd.xlane.f32.xlu1 %v1279_v43 }
 0x2d6   : > { %1277 = vadd.xlane.f32.xlu0 %v1276_v0 }
 0x33d   : > { %v1242_v55 = vpop.xlane.xlu1 %1241 }
 0x33e   : > { %v1236_v39 = vpop.xlane.xlu0 %1235  ;;  %v1284_v52 = vadd.f32 %v1242_v55, %v1220_v36  ;;  %v1229_v36 = vld [vmem:[#allocation3 + $0x58] sm:$0xff] }
 0x33f   : > { %v1282_v26 = vadd.f32 %v1236_v39, %v1218_v44  ;;  %v1228_v44 = vld [vmem:[#allocation3 + $0x50] sm:$0xff] }
 0x340   : > { %1300 = vst.msk [vmem:[#allocation3 + $0x10] sm:$0xff] %vm1067_vm1, %v1284_v52 }
 0x341   : > { %1298 = vst.msk [vmem:[#allocation3] sm:$0xff] %vm1067_vm1, %v1282_v26 }
 0x348   : > { %v1245_v6 = vpop.xlane.xlu1 %1244 }
 0x349   : > { %v1239_v32 = vpop.xlane.xlu0 %1238  ;;  %v1285_v25 = vadd.f32 %v1245_v6, %v1221_v8  ;;  %v1231_v8 = vld [vmem:[#allocation3 + $0x68] sm:$0xff] }
 0x34a   : > { %v1283_v4 = vadd.f32 %v1239_v32, %v1219_v53  ;;  %v1230_v53 = vld [vmem:[#allocation3 + $0x60] sm:$0xff] }
 0x34b   : > { %1301 = vst.msk [vmem:[#allocation3 + $0x18] sm:$0xff] %vm1067_vm1, %v1285_v25 }
 0x34c   : > { %1299 = vst.msk [vmem:[#allocation3 + $0x8] sm:$0xff] %vm1067_vm1, %v1283_v4  ;;  %v1251_v57 = vpop.xlane.xlu1 %1250 }
 0x34d   : > { %v1248_v47 = vpop.xlane.xlu0 %1247  ;;  %v1287_v5 = vadd.f32 %v1251_v57, %v1223_v38  ;;  %v1233_v38 = vld [vmem:[#allocation3 + $0x78] sm:$0xff] }
 0x34e   : > { %v1286_v62 = vadd.f32 %v1248_v47, %v1222_v46  ;;  %v1232_v46 = vld [vmem:[#allocation3 + $0x70] sm:$0xff] }
 0x34f   : > { %1303 = vst.msk [vmem:[#allocation3 + $0x28] sm:$0xff] %vm1067_vm1, %v1287_v5 }
 0x350   : > { %1302 = vst.msk [vmem:[#allocation3 + $0x20] sm:$0xff] %vm1067_vm1, %v1286_v62  ;;  %v1257_v20 = vpop.xlane.xlu1 %1256 }
 0x351   : > { %v1254_v40 = vpop.xlane.xlu0 %1253  ;;  %v1289_v41 = vadd.f32 %v1257_v20, %v1225_v17 }
 0x352   : > { %v1288_v12 = vadd.f32 %v1254_v40, %v1224_v56 }
 0x353   : > { %1305 = vst.msk [vmem:[#allocation3 + $0x38] sm:$0xff] %vm1067_vm1, %v1289_v41 }
 0x354   : > { %1304 = vst.msk [vmem:[#allocation3 + $0x30] sm:$0xff] %vm1067_vm1, %v1288_v12 }
 0x355   : > { %v1263_v42 = vpop.xlane.xlu1 %1262 }
 0x356   : > { %v1291_v43 = vadd.f32 %v1263_v42, %v1227_v31 }
 0x357   : > { %v1260_v28 = vpop.xlane.xlu0 %1259 }
 0x358   : > { %v1290_v0 = vadd.f32 %v1260_v28, %v1226_v22  ;;  %1307 = vst.msk [vmem:[#allocation3 + $0x48] sm:$0xff] %vm1067_vm1, %v1291_v43 }
 0x359   : > { %v1269_v55 = vpop.xlane.xlu1 %1268 }
 0x35a   : > { %1306 = vst.msk [vmem:[#allocation3 + $0x40] sm:$0xff] %vm1067_vm1, %v1290_v0  ;;  %v1293_v52 = vadd.f32 %v1269_v55, %v1229_v36 }
 0x35b   : > { %v1266_v39 = vpop.xlane.xlu0 %1265 }
 0x35c   : > { %v1292_v26 = vadd.f32 %v1266_v39, %v1228_v44  ;;  %1309 = vst.msk [vmem:[#allocation3 + $0x58] sm:$0xff] %vm1067_vm1, %v1293_v52 }
 0x35d   : > { %v1275_v6 = vpop.xlane.xlu1 %1274 }
 0x35e   : > { %1308 = vst.msk [vmem:[#allocation3 + $0x50] sm:$0xff] %vm1067_vm1, %v1292_v26  ;;  %v1295_v25 = vadd.f32 %v1275_v6, %v1231_v8 }
 0x35f   : > { %v1272_v32 = vpop.xlane.xlu0 %1271 }
 0x360   : > { %v1294_v4 = vadd.f32 %v1272_v32, %v1230_v53  ;;  %1311 = vst.msk [vmem:[#allocation3 + $0x68] sm:$0xff] %vm1067_vm1, %v1295_v25 }
 0x361   : > { %v1281_v57 = vpop.xlane.xlu1 %1280 }
 0x362   : > { %1310 = vst.msk [vmem:[#allocation3 + $0x60] sm:$0xff] %vm1067_vm1, %v1294_v4  ;;  %v1297_v5 = vadd.f32 %v1281_v57, %v1233_v38 }
 0x363   : > { %v1278_v47 = vpop.xlane.xlu0 %1277 }
 0x364   : > { %v1296_v62 = vadd.f32 %v1278_v47, %v1232_v46  ;;  %1313 = vst.msk [vmem:[#allocation3 + $0x78] sm:$0xff] %vm1067_vm1, %v1297_v5 }
 0x366   : > { %1312 = vst.msk [vmem:[#allocation3 + $0x70] sm:$0xff] %vm1067_vm1, %v1296_v62 }
 0x367 PF: > { %p1973_p4 = scmp.eq.s32.totalorder %s2285_s19, 2 }
 0x368   : > { %v1340_v17 = vadd.f32 (!%p1973_p4), %v2958_v19, %v2931_v2  ;;  %v1334_v56 = vadd.f32 (!%p1973_p4), %v2810_v54, %v2786_v18  ;;  %v1343_v20 = vadd.f32 (!%p1973_p4), %v3040_v29, %v2979_v50  ;;  %v1337_v40 = vadd.f32 (!%p1973_p4), %v2857_v45, %v2844_v9  ;;  %v1327_v42 = vld [vmem:[#allocation3 + $0x48] sm:$0xff] (!%p1973_p4)  ;;  %v1326_v28 = vld [vmem:[#allocation3 + $0x40] sm:$0xff] (!%p1973_p4)  ;;  %v1329_v55 = vld [vmem:[#allocation3 + $0x58] sm:$0xff] (!%p1973_p4) }
 0x369   : > { %1317 = sbr.rel (%p1973_p4) target bundleno = 1047 (0x417), region = 82  ;;  %v1349_v41 = vadd.f32 (!%p1973_p4), %v3137_v61, %v3105_v51  ;;  %v1346_v12 = vadd.f32 (!%p1973_p4), %v3088_v16, %v3078_v13  ;;  %v1355_v18 = vadd.f32 (!%p1973_p4), %v3183_v58, %v3177_v24  ;;  %v1352_v54 = vadd.f32 (!%p1973_p4), %v3173_v3, %v3169_v11  ;;  %v1321_v13 = vld [vmem:[#allocation3 + $0x18] sm:$0xff] (!%p1973_p4)  ;;  %v1319_v16 = vld [vmem:[#allocation3 + $0x8] sm:$0xff] (!%p1973_p4)  ;;  %v1322_v61 = vld [vmem:[#allocation3 + $0x20] sm:$0xff] (!%p1973_p4) }
 0x36a   : > { %1341 = vadd.xlane.f32.xlu1 (!%p1973_p4), %v1340_v17  ;;  %1335 = vadd.xlane.f32.xlu0 (!%p1973_p4), %v1334_v56  ;;  %v1361_v9 = vadd.f32 (!%p1973_p4), %v2875_v23, %v2852_v49  ;;  %v1358_v45 = vadd.f32 (!%p1973_p4), %v2827_v59, %v2796_v48  ;;  %v1367_v2 = vadd.f32 (!%p1973_p4), %v2997_v14, %v2992_v15  ;;  %v1320_v49 = vld [vmem:[#allocation3 + $0x10] sm:$0xff] (!%p1973_p4)  ;;  %v1318_v23 = vld [vmem:[#allocation3] sm:$0xff] (!%p1973_p4)  ;;  %v1325_v24 = vld [vmem:[#allocation3 + $0x38] sm:$0xff] (!%p1973_p4) }
 0x36b   : > { %v1364_v19 = vadd.f32 (!%p1973_p4), %v2968_v10, %v2949_v7  ;;  %v1373_v50 = vadd.f32 (!%p1973_p4), %v3123_v37, %v3116_v27  ;;  %v1370_v29 = vadd.f32 (!%p1973_p4), %v3094_v21, %v3083_v33  ;;  %v1379_v48 = vadd.f32 (!%p1973_p4), %v3181_v35, %v3179_v60  ;;  %v1323_v37 = vld [vmem:[#allocation3 + $0x28] sm:$0xff] (!%p1973_p4)  ;;  %v1324_v60 = vld [vmem:[#allocation3 + $0x30] sm:$0xff] (!%p1973_p4)  ;;  %v1330_v32 = vld [vmem:[#allocation3 + $0x60] sm:$0xff] (!%p1973_p4) }
 0x36c   : > { %v1376_v59 = vadd.f32 (!%p1973_p4), %v3175_v30, %v3171_v34  ;;  %v1328_v39 = vld [vmem:[#allocation3 + $0x50] sm:$0xff] (!%p1973_p4)  ;;  %v1331_v6 = vld [vmem:[#allocation3 + $0x68] sm:$0xff] (!%p1973_p4)  ;;  %v1333_v57 = vld [vmem:[#allocation3 + $0x78] sm:$0xff] (!%p1973_p4) }
 0x36d   : > { %v1332_v47 = vld [vmem:[#allocation3 + $0x70] sm:$0xff] (!%p1973_p4) }
 0x36e   : > { %1344 = vadd.xlane.f32.xlu1 (!%p1973_p4), %v1343_v20  ;;  %1338 = vadd.xlane.f32.xlu0 (!%p1973_p4), %v1337_v40 }
 0x372   : > { %1350 = vadd.xlane.f32.xlu1 %v1349_v41  ;;  %1347 = vadd.xlane.f32.xlu0 %v1346_v12 }
 0x376   : > { %1356 = vadd.xlane.f32.xlu1 %v1355_v18  ;;  %1353 = vadd.xlane.f32.xlu0 %v1352_v54 }
 0x37a   : > { %1362 = vadd.xlane.f32.xlu1 %v1361_v9  ;;  %1359 = vadd.xlane.f32.xlu0 %v1358_v45 }
 0x37e   : > { %1368 = vadd.xlane.f32.xlu1 %v1367_v2  ;;  %1365 = vadd.xlane.f32.xlu0 %v1364_v19 }
 0x382   : > { %1374 = vadd.xlane.f32.xlu1 %v1373_v50  ;;  %1371 = vadd.xlane.f32.xlu0 %v1370_v29 }
 0x386   : > { %1380 = vadd.xlane.f32.xlu1 %v1379_v48  ;;  %1377 = vadd.xlane.f32.xlu0 %v1376_v59 }
 0x3f7   : > { %v1342_v7 = vpop.xlane.xlu1 %1341  ;;  %v1336_v10 = vpop.xlane.xlu0 %1335 }
 0x3f8   : > { %v1384_v15 = vadd.f32 %v1342_v7, %v1320_v49  ;;  %v1382_v14 = vadd.f32 %v1336_v10, %v1318_v23 }
 0x3fa   : > { %1400 = vst.msk [vmem:[#allocation3 + $0x10] sm:$0xff] %vm1067_vm1, %v1384_v15  ;;  %1398 = vst.msk [vmem:[#allocation3] sm:$0xff] %vm1067_vm1, %v1382_v14 }
 0x3fb   : > { %v1345_v33 = vpop.xlane.xlu1 %1344  ;;  %v1339_v21 = vpop.xlane.xlu0 %1338 }
 0x3fc   : > { %v1385_v51 = vadd.f32 %v1345_v33, %v1321_v13  ;;  %v1383_v27 = vadd.f32 %v1339_v21, %v1319_v16 }
 0x3fe   : > { %1401 = vst.msk [vmem:[#allocation3 + $0x18] sm:$0xff] %vm1067_vm1, %v1385_v51  ;;  %1399 = vst.msk [vmem:[#allocation3 + $0x8] sm:$0xff] %vm1067_vm1, %v1383_v27 }
 0x3ff   : > { %v1351_v11 = vpop.xlane.xlu1 %1350  ;;  %v1348_v34 = vpop.xlane.xlu0 %1347 }
 0x400   : > { %v1387_v3 = vadd.f32 %v1351_v11, %v1323_v37  ;;  %v1386_v30 = vadd.f32 %v1348_v34, %v1322_v61 }
 0x402   : > { %1403 = vst.msk [vmem:[#allocation3 + $0x28] sm:$0xff] %vm1067_vm1, %v1387_v3  ;;  %1402 = vst.msk [vmem:[#allocation3 + $0x20] sm:$0xff] %vm1067_vm1, %v1386_v30 }
 0x403   : > { %v1357_v35 = vpop.xlane.xlu1 %1356  ;;  %v1354_v58 = vpop.xlane.xlu0 %1353 }
 0x404   : > { %v1389_v31 = vadd.f32 %v1357_v35, %v1325_v24  ;;  %v1388_v22 = vadd.f32 %v1354_v58, %v1324_v60 }
 0x406   : > { %1405 = vst.msk [vmem:[#allocation3 + $0x38] sm:$0xff] %vm1067_vm1, %v1389_v31  ;;  %1404 = vst.msk [vmem:[#allocation3 + $0x30] sm:$0xff] %vm1067_vm1, %v1388_v22 }
 0x407   : > { %v1363_v43 = vpop.xlane.xlu1 %1362  ;;  %v1360_v0 = vpop.xlane.xlu0 %1359 }
 0x408   : > { %v1391_v36 = vadd.f32 %v1363_v43, %v1327_v42  ;;  %v1390_v44 = vadd.f32 %v1360_v0, %v1326_v28 }
 0x40a   : > { %1407 = vst.msk [vmem:[#allocation3 + $0x48] sm:$0xff] %vm1067_vm1, %v1391_v36  ;;  %1406 = vst.msk [vmem:[#allocation3 + $0x40] sm:$0xff] %vm1067_vm1, %v1390_v44 }
 0x40b   : > { %v1369_v52 = vpop.xlane.xlu1 %1368  ;;  %v1366_v26 = vpop.xlane.xlu0 %1365 }
 0x40c   : > { %v1393_v8 = vadd.f32 %v1369_v52, %v1329_v55  ;;  %v1392_v53 = vadd.f32 %v1366_v26, %v1328_v39 }
 0x40e   : > { %1409 = vst.msk [vmem:[#allocation3 + $0x58] sm:$0xff] %vm1067_vm1, %v1393_v8  ;;  %1408 = vst.msk [vmem:[#allocation3 + $0x50] sm:$0xff] %vm1067_vm1, %v1392_v53 }
 0x40f   : > { %v1375_v25 = vpop.xlane.xlu1 %1374  ;;  %v1372_v4 = vpop.xlane.xlu0 %1371 }
 0x410   : > { %v1395_v38 = vadd.f32 %v1375_v25, %v1331_v6  ;;  %v1394_v46 = vadd.f32 %v1372_v4, %v1330_v32 }
 0x412   : > { %1411 = vst.msk [vmem:[#allocation3 + $0x68] sm:$0xff] %vm1067_vm1, %v1395_v38  ;;  %1410 = vst.msk [vmem:[#allocation3 + $0x60] sm:$0xff] %vm1067_vm1, %v1394_v46 }
 0x413   : > { %v1381_v5 = vpop.xlane.xlu1 %1380  ;;  %v1378_v62 = vpop.xlane.xlu0 %1377 }
 0x414   : > { %v1397_v17 = vadd.f32 %v1381_v5, %v1333_v57  ;;  %v1396_v56 = vadd.f32 %v1378_v62, %v1332_v47 }
 0x416   : > { %1413 = vst.msk [vmem:[#allocation3 + $0x78] sm:$0xff] %vm1067_vm1, %v1397_v17  ;;  %1412 = vst.msk [vmem:[#allocation3 + $0x70] sm:$0xff] %vm1067_vm1, %v1396_v56 }
 0x417 PF: > { %1416 = sbr.rel (%p1972_p3) target bundleno = 1242 (0x4da), region = 86  ;;  %v1419_v20 = vld [vmem:[#allocation3 + $0x10] sm:$0xff] (!%p1972_p3)  ;;  %v1417_v40 = vld [vmem:[#allocation3] sm:$0xff] (!%p1972_p3)  ;;  %v2305_v41 = vmov (!%p1972_p3), 0   ;;  %v1420_v12 = vld [vmem:[#allocation3 + $0x18] sm:$0xff] (!%p1972_p3) }
 0x418   : > { %2198 = vset.pattern.permute.xlu1 (!%p1972_p3), %v2305_v41  ;;  %2197 = vset.pattern.permute.xlu0 (!%p1972_p3), %v2305_v41  ;;  %2199 = vlog2.f32 (!%p1972_p3), %v1419_v20  ;;  %v1418_v18 = vld [vmem:[#allocation3 + $0x8] sm:$0xff] (!%p1972_p3)  ;;  %v1421_v9 = vld [vmem:[#allocation3 + $0x20] sm:$0xff] (!%p1972_p3)  ;;  %v1424_v45 = vld [vmem:[#allocation3 + $0x38] sm:$0xff] (!%p1972_p3) }
 0x419   : > { %2201 = vlog2.f32 (!%p1972_p3), %v1417_v40  ;;  %v1422_v54 = vld [vmem:[#allocation3 + $0x28] sm:$0xff] (!%p1972_p3)  ;;  %v1423_v2 = vld [vmem:[#allocation3 + $0x30] sm:$0xff] (!%p1972_p3)  ;;  %v1425_v50 = vld [vmem:[#allocation3 + $0x40] sm:$0xff] (!%p1972_p3) }
 0x41a   : > { %2203 = vlog2.f32 (!%p1972_p3), %v1420_v12  ;;  %v1426_v19 = vld [vmem:[#allocation3 + $0x48] sm:$0xff] (!%p1972_p3)  ;;  %v1428_v29 = vld [vmem:[#allocation3 + $0x58] sm:$0xff] (!%p1972_p3)  ;;  %v1427_v59 = vld [vmem:[#allocation3 + $0x50] sm:$0xff] (!%p1972_p3) }
 0x41b   : > { %2205 = vlog2.f32 (!%p1972_p3), %v1418_v18  ;;  %v1483_v10 = vld [vmem:[#allocation4 + $0x10] sm:$0xff] (!%p1972_p3)  ;;  %v1481_v16 = vld [vmem:[#allocation4] sm:$0xff] (!%p1972_p3)  ;;  %v1430_v21 = vld [vmem:[#allocation3 + $0x68] sm:$0xff] (!%p1972_p3) }
 0x41c   : > { %2207 = vlog2.f32 (!%p1972_p3), %v1422_v54  ;;  %v1484_v37 = vld [vmem:[#allocation4 + $0x18] sm:$0xff] (!%p1972_p3)  ;;  %v1429_v11 = vld [vmem:[#allocation3 + $0x60] sm:$0xff] (!%p1972_p3)  ;;  %v1482_v24 = vld [vmem:[#allocation4 + $0x8] sm:$0xff] (!%p1972_p3) }
 0x41d   : > { %2209 = vlog2.f32 (!%p1972_p3), %v1421_v9  ;;  %v1432_v36 = vld [vmem:[#allocation3 + $0x78] sm:$0xff] (!%p1972_p3)  ;;  %v1486_v39 = vld [vmem:[#allocation4 + $0x28] sm:$0xff] (!%p1972_p3)  ;;  %v1431_v8 = vld [vmem:[#allocation3 + $0x70] sm:$0xff] (!%p1972_p3) }
 0x41e   : > { %2211 = vlog2.f32 %v1424_v45  ;;  %v1485_v6 = vld [vmem:[#allocation4 + $0x20] sm:$0xff]  ;;  %v1488_v57 = vld [vmem:[#allocation4 + $0x38] sm:$0xff]  ;;  %v1487_v17 = vld [vmem:[#allocation4 + $0x30] sm:$0xff] }
 0x41f   : > { %2213 = vlog2.f32 %v1423_v2  ;;  %v1490_v18 = vld [vmem:[#allocation4 + $0x48] sm:$0xff]  ;;  %v1489_v2 = vld [vmem:[#allocation4 + $0x40] sm:$0xff] }
 0x420   : > { %2215 = vlog2.f32 %v1426_v19 }
 0x421   : > { %2217 = vlog2.f32 %v1425_v50 }
 0x422   : > { %v2200_v48 = vpop.eup %2199  ;;  %2219 = vlog2.f32 %v1428_v29 }
 0x423   : > { %v2202_v49 = vpop.eup %2201  ;;  %v1438_v23 = vmul.f32 0.6931472, %v2200_v48  ;;  %2221 = vlog2.f32 %v1427_v59 }
 0x424   : > { %v2204_v7 = vpop.eup %2203  ;;  %v1434_v15 = vmul.f32 0.6931472, %v2202_v49  ;;  %2223 = vlog2.f32 %v1430_v21  ;;  %v1492_v49 = vld [vmem:[#allocation4 + $0x58] sm:$0xff]  ;;  %v1494_v21 = vld [vmem:[#allocation4 + $0x68] sm:$0xff] }
 0x425   : > { %v2206_v14 = vpop.eup %2205  ;;  %v1467_v13 = vadd.f32 64.0, %v1438_v23  ;;  %v1440_v33 = vmul.f32 0.6931472, %v2204_v7  ;;  %2225 = vlog2.f32 %v1429_v11 }
 0x426   : > { %v2208_v51 = vpop.eup %2207  ;;  %v1465_v27 = vadd.f32 64.0, %v1434_v15  ;;  %v1436_v61 = vmul.f32 0.6931472, %v2206_v14  ;;  %2227 = vlog2.f32 %v1432_v36  ;;  %v1491_v15 = vld [vmem:[#allocation4 + $0x50] sm:$0xff] }
 0x427   : > { %v2210_v34 = vpop.eup %2209  ;;  %v1499_v3 = vsub.f32 %v1467_v13, %v1483_v10  ;;  %v1468_v30 = vadd.f32 64.0, %v1440_v33  ;;  %v1444_v60 = vmul.f32 0.6931472, %v2208_v51  ;;  %2229 = vlog2.f32 %v1431_v8 }
 0x428   : > { %v2212_v35 = vpop.eup %2211  ;;  %v1497_v58 = vsub.f32 %v1465_v27, %v1481_v16  ;;  %v1466_v31 = vadd.f32 64.0, %v1436_v61  ;;  %v1442_v22 = vmul.f32 0.6931472, %v2210_v34 }
 0x429   : > { %v2214_v42 = vpop.eup %2213  ;;  %1558 = vperm.xlu1 %2198, %v1499_v3   ;;  %v1500_v28 = vsub.f32 %v1468_v30, %v1484_v37  ;;  %v1470_v43 = vadd.f32 64.0, %v1444_v60  ;;  %v1448_v0 = vmul.f32 0.6931472, %v2212_v35  ;;  %v1493_v37 = vld [vmem:[#allocation4 + $0x60] sm:$0xff]  ;;  %v1496_v3 = vld [vmem:[#allocation4 + $0x78] sm:$0xff] }
 0x42a   : > { %v2216_v44 = vpop.eup %2215  ;;  %1548 = vperm.xlu0 %2197, %v1497_v58   ;;  %v1498_v55 = vsub.f32 %v1466_v31, %v1482_v24  ;;  %v1469_v52 = vadd.f32 64.0, %v1442_v22  ;;  %v1446_v26 = vmul.f32 0.6931472, %v2214_v42  ;;  %v1495_v24 = vld [vmem:[#allocation4 + $0x70] sm:$0xff]  ;;  %v3370_v58 = vshrl.u32 %v756_v63, 7 }
 0x42b   : > { %v2218_v53 = vpop.eup %2217  ;;  %v1502_v32 = vsub.f32 %v1470_v43, %v1486_v39  ;;  %v1472_v25 = vadd.f32 64.0, %v1448_v0  ;;  %v1452_v4 = vmul.f32 0.6931472, %v2216_v44 }
 0x42c   : > { %v2220_v38 = vpop.eup %2219  ;;  %v1501_v46 = vsub.f32 %v1469_v52, %v1485_v6  ;;  %v1471_v47 = vadd.f32 64.0, %v1446_v26  ;;  %v1450_v5 = vmul.f32 0.6931472, %v2218_v53  ;;  %v1515_v31 = vadd.s32 8, %v3370_v58 }
 0x42d   : > { %1563 = vperm.xlu1 %2198, %v1500_v28   ;;  %v2222_v62 = vpop.eup %2221  ;;  %v1504_v56 = vsub.f32 %v1472_v25, %v1488_v57  ;;  %v1474_v20 = vadd.f32 64.0, %v1452_v4  ;;  %v1456_v40 = vmul.f32 0.6931472, %v2220_v38  ;;  %v1516_v42 = vadd.s32 16, %v3370_v58 }
 0x42e   : > { %1553 = vperm.xlu0 %2197, %v1498_v55   ;;  %v2224_v41 = vpop.eup %2223  ;;  %v1503_v12 = vsub.f32 %v1471_v47, %v1487_v17  ;;  %v1473_v54 = vadd.f32 64.0, %v1450_v5  ;;  %v1454_v9 = vmul.f32 0.6931472, %v2222_v62  ;;  %vm1530_vm8 = vcmp.eq.s32.totalorder %v3370_v58, %v2640_v1 }
 0x42f   : > { %v2226_v45 = vpop.eup %2225  ;;  %v1506_v19 = vsub.f32 %v1474_v20, %v1490_v18  ;;  %v1476_v50 = vadd.f32 64.0, %v1456_v40  ;;  %v1460_v29 = vmul.f32 0.6931472, %v2224_v41  ;;  %v1517_v43 = vadd.s32 24, %v3370_v58 }
 0x430   : > { %v2228_v48 = vpop.eup %2227  ;;  %v1505_v59 = vsub.f32 %v1473_v54, %v1489_v2  ;;  %v1475_v23 = vadd.f32 64.0, %v1454_v9  ;;  %v1458_v7 = vmul.f32 0.6931472, %v2226_v45  ;;  %vm1531_vm5 = vcmp.eq.s32.totalorder %v1515_v31, %v2640_v1 }
 0x431   : > { %1573 = vperm.xlu1 %2198, %v1502_v32   ;;  %v2230_v10 = vpop.eup %2229  ;;  %v1508_v14 = vsub.f32 %v1476_v50, %v1492_v49  ;;  %v1478_v13 = vadd.f32 64.0, %v1460_v29  ;;  %v1464_v16 = vmul.f32 0.6931472, %v2228_v48  ;;  %vm1532_vm3 = vcmp.eq.s32.totalorder %v1516_v42, %v2640_v1 }
 0x432   : > { %1568 = vperm.xlu0 %2197, %v1501_v46   ;;  %v1507_v33 = vsub.f32 %v1475_v23, %v1491_v15  ;;  %v1477_v51 = vadd.f32 64.0, %v1458_v7  ;;  %v1462_v27 = vmul.f32 0.6931472, %v2230_v10  ;;  %v1518_v63 = vadd.s32 32, %v3370_v58 }
 0x433   : > { %v1510_v61 = vsub.f32 %v1478_v13, %v1494_v21  ;;  %v1480_v11 = vadd.f32 64.0, %v1464_v16  ;;  %vm1533_vm4 = vcmp.eq.s32.totalorder %v1517_v43, %v2640_v1  ;;  %v1519_v52 = vadd.s32 40, %v3370_v58 }
 0x434   : > { %v1509_v34 = vsub.f32 %v1477_v51, %v1493_v37  ;;  %v1479_v30 = vadd.f32 64.0, %v1462_v27  ;;  %vm1534_vm6 = vcmp.eq.s32.totalorder %v1518_v63, %v2640_v1  ;;  %v1520_v32 = vadd.s32 48, %v3370_v58 }
 0x435   : > { %1583 = vperm.xlu1 %2198, %v1504_v56   ;;  %v1512_v60 = vsub.f32 %v1480_v11, %v1496_v3  ;;  %vm1535_vm9 = vcmp.eq.s32.totalorder %v1519_v52, %v2640_v1  ;;  %v1521_v38 = vadd.s32 56, %v3370_v58  ;;  %v1522_v62 = vadd.s32 64, %v3370_v58 }
 0x436   : > { %1578 = vperm.xlu0 %2197, %v1503_v12   ;;  %v1511_v35 = vsub.f32 %v1479_v30, %v1495_v24  ;;  %vm1536_vm10 = vcmp.eq.s32.totalorder %v1520_v32, %v2640_v1  ;;  %v1523_v20 = vadd.s32 72, %v3370_v58  ;;  %v1524_v54 = vadd.s32 80, %v3370_v58 }
 0x437   : > { %vm1537_vm11 = vcmp.eq.s32.totalorder %v1521_v38, %v2640_v1  ;;  %vm1538_vm13 = vcmp.eq.s32.totalorder %v1522_v62, %v2640_v1  ;;  %v1525_v2 = vadd.s32 88, %v3370_v58  ;;  %v1527_v7 = vadd.s32 104, %v3370_v58 }
 0x438   : > { %vm1539_vm12 = vcmp.eq.s32.totalorder %v1523_v20, %v2640_v1  ;;  %vm1540_vm14 = vcmp.eq.s32.totalorder %v1524_v54, %v2640_v1  ;;  %v1528_v16 = vadd.s32 112, %v3370_v58  ;;  %v1529_v51 = vadd.s32 120, %v3370_v58 }
 0x439   : > { %1593 = vperm.xlu1 %2198, %v1506_v19   ;;  %vm1541_vm15 = vcmp.eq.s32.totalorder %v1525_v2, %v2640_v1  ;;  %vm1543_vm1 = vcmp.eq.s32.totalorder %v1527_v7, %v2640_v1 }
 0x43a   : > { %1588 = vperm.xlu0 %2197, %v1505_v59   ;;  %v1526_v59 = vadd.s32 96, %v3370_v58  ;;  %vm1544_vm2 = vcmp.eq.s32.totalorder %v1528_v16, %v2640_v1  ;;  %vm1545_vm7 = vcmp.eq.s32.totalorder %v1529_v51, %v2640_v1 }
 0x43c   : > { %vm1542_vm0 = vcmp.eq.s32.totalorder %v1526_v59, %v2640_v1 }
 0x43d   : > { %1603 = vperm.xlu1 %2198, %v1508_v14  }
 0x43e   : > { %1598 = vperm.xlu0 %2197, %v1507_v33  }
 0x441   : > { %1613 = vperm.xlu1 %2198, %v1510_v61  }
 0x442   : > { %1608 = vperm.xlu0 %2197, %v1509_v34  }
 0x445   : > { %1623 = vperm.xlu1 %2198, %v1512_v60  }
 0x446   : > { %1618 = vperm.xlu0 %2197, %v1511_v35  }
 0x4a8   : > { %v1559_v22 = vpop.permute.xlu1 %1558 }
 0x4a9   : > { %v1549_v28 = vpop.permute.xlu0 %1548  ;;  %v1628_v26 = vsel %vm1532_vm3, %v1559_v22, 0.0 }
 0x4aa   : > { %v1626_v44 = vsel %vm1530_vm8, %v1549_v28, 0.0 }
 0x4ac   : > { %v1564_v0 = vpop.permute.xlu1 %1563 }
 0x4ad   : > { %v1554_v36 = vpop.permute.xlu0 %1553  ;;  %v1629_v25 = vsel %vm1533_vm4, %v1564_v0, 0.0 }
 0x4ae   : > { %v1627_v55 = vsel %vm1531_vm5, %v1554_v36, 0.0 }
 0x4af   : > { %v1642_v39 = vadd.f32 %v1627_v55, %v1626_v44 }
 0x4b0   : > { %v1574_v8 = vpop.permute.xlu1 %1573 }
 0x4b1   : > { %v1643_v53 = vadd.f32 %v1642_v39, %v1628_v26  ;;  %v1569_v6 = vpop.permute.xlu0 %1568  ;;  %v1631_v17 = vsel %vm1535_vm9, %v1574_v8, 0.0 }
 0x4b2   : > { %v1630_v46 = vsel %vm1534_vm6, %v1569_v6, 0.0 }
 0x4b3   : > { %v1644_v4 = vadd.f32 %v1643_v53, %v1629_v25 }
 0x4b4   : > { %v1584_v57 = vpop.permute.xlu1 %1583 }
 0x4b5   : > { %v1645_v47 = vadd.f32 %v1644_v4, %v1630_v46  ;;  %v1579_v5 = vpop.permute.xlu0 %1578  ;;  %v1633_v9 = vsel %vm1537_vm11, %v1584_v57, 0.0 }
 0x4b6   : > { %v1632_v40 = vsel %vm1536_vm10, %v1579_v5, 0.0 }
 0x4b7   : > { %v1646_v56 = vadd.f32 %v1645_v47, %v1631_v17 }
 0x4b8   : > { %v1594_v41 = vpop.permute.xlu1 %1593 }
 0x4b9   : > { %v1647_v12 = vadd.f32 %v1646_v56, %v1632_v40  ;;  %v1589_v18 = vpop.permute.xlu0 %1588  ;;  %v1635_v49 = vsel %vm1539_vm12, %v1594_v41, 0.0 }
 0x4ba   : > { %v1634_v19 = vsel %vm1538_vm13, %v1589_v18, 0.0 }
 0x4bb   : > { %v1648_v45 = vadd.f32 %v1647_v12, %v1633_v9 }
 0x4bc   : > { %v1604_v50 = vpop.permute.xlu1 %1603 }
 0x4bd   : > { %v1649_v29 = vadd.f32 %v1648_v45, %v1634_v19  ;;  %v1599_v48 = vpop.permute.xlu0 %1598  ;;  %v1637_v33 = vsel %vm1541_vm15, %v1604_v50, 0.0 }
 0x4be   : > { %v1636_v10 = vsel %vm1540_vm14, %v1599_v48, 0.0 }
 0x4bf   : > { %v1650_v23 = vadd.f32 %v1649_v29, %v1635_v49 }
 0x4c0   : > { %v1614_v14 = vpop.permute.xlu1 %1613 }
 0x4c1   : > { %v1651_v15 = vadd.f32 %v1650_v23, %v1636_v10  ;;  %v1609_v13 = vpop.permute.xlu0 %1608  ;;  %v1639_v11 = vsel %vm1543_vm1, %v1614_v14, 0.0 }
 0x4c2   : > { %v1638_v27 = vsel %vm1542_vm0, %v1609_v13, 0.0 }
 0x4c3   : > { %v1652_v21 = vadd.f32 %v1651_v15, %v1637_v33 }
 0x4c4   : > { %v1624_v34 = vpop.permute.xlu1 %1623 }
 0x4c5   : > { %v1653_v37 = vadd.f32 %v1652_v21, %v1638_v27  ;;  %v1619_v61 = vpop.permute.xlu0 %1618  ;;  %v1641_v60 = vsel %vm1545_vm7, %v1624_v34, 0.0 }
 0x4c6   : > { %v1640_v30 = vsel %vm1544_vm2, %v1619_v61, 0.0 }
 0x4c7   : > { %v1654_v3 = vadd.f32 %v1653_v37, %v1639_v11 }
 0x4c9   : > { %v1655_v24 = vadd.f32 %v1654_v3, %v1640_v30 }
 0x4cb   : > { %v1656_v35 = vadd.f32 %v1655_v24, %v1641_v60 }
 0x4cd   : > { %v1657_v31 = vrot.slane %v1656_v35, 4 }
 0x4cf   : > { %v1658_v22 = vadd.f32 %v1657_v31, %v1656_v35 }
 0x4d1   : > { %v1659_v42 = vrot.slane %v1658_v22, 2 }
 0x4d3   : > { %v1660_v28 = vadd.f32 %v1659_v42, %v1658_v22 }
 0x4d5   : > { %v1661_v58 = vrot.slane %v1660_v28, 1 }
 0x4d7   : > { %v1662_v43 = vadd.f32 %v1661_v58, %v1660_v28 }
 0x4d9   : > { %1663 = vst [vmem:[%s356_s12] sm:$0x1] %v1662_v43 }
 0x4da PF: > { %1673 = sbr.rel (!%p2398_p9) target bundleno = 1264 (0x4f0), region = 90  ;;  %s1977_s6 = sshll.u32 (%p2398_p9), %s2285_s19, 1  ;;  %v1692_v1 = vld [vmem:[%s2454_s26] sm:$0xff] (%p2398_p9)  ;;  %v1694_v0 = vld [vmem:[%s2454_s26 + $0x8] sm:$0xff] (%p2398_p9)  ;;  %v1696_v36 = vld [vmem:[%s2454_s26 + $0x10] sm:$0xff] (%p2398_p9) }
 0x4db   : > { %s1999_s9 = smul.u32 (%p2398_p9), 96, %s2289_s20  ;;  %v1698_v63 = vld [vmem:[%s2454_s26 + $0x18] sm:$0xff] (%p2398_p9)  ;;  %v1700_v44 = vld [vmem:[%s2454_s26 + $0x20] sm:$0xff] (%p2398_p9)  ;;  %v1702_v55 = vld [vmem:[%s2454_s26 + $0x28] sm:$0xff] (%p2398_p9) }
 0x4dc   : > { %v1704_v39 = vld [vmem:[%s2454_s26 + $0x30] sm:$0xff] (%p2398_p9)  ;;  %v1706_v52 = vld [vmem:[%s2454_s26 + $0x38] sm:$0xff] (%p2398_p9)  ;;  %v1708_v26 = vld [vmem:[%s2454_s26 + $0x40] sm:$0xff] (%p2398_p9) }
 0x4dd   : > { %s1677_s7 = sadd.s32 (%p2398_p9), %s1999_s9, %s1977_s6  ;;  %v1710_v8 = vld [vmem:[%s2454_s26 + $0x48] sm:$0xff] (%p2398_p9)  ;;  %v1712_v53 = vld [vmem:[%s2454_s26 + $0x50] sm:$0xff] (%p2398_p9)  ;;  %v1714_v6 = vld [vmem:[%s2454_s26 + $0x58] sm:$0xff] (%p2398_p9) }
 0x4de   : > { %s1979_s10 = sshll.u32 (%p2398_p9), %s1677_s7, 3  ;;  %v1716_v32 = vld [vmem:[%s2454_s26 + $0x60] sm:$0xff] (%p2398_p9)  ;;  %v1718_v25 = vld [vmem:[%s2454_s26 + $0x68] sm:$0xff] (%p2398_p9)  ;;  %v1720_v4 = vld [vmem:[%s2454_s26 + $0x70] sm:$0xff] (%p2398_p9) }
 0x4df   : > { %s3428_s20 = scalar_lea.vmem (%p2398_p9), %s3512_s3, %s1979_s10  ;;  %v1722_v38 = vld [vmem:[%s2454_s26 + $0x78] sm:$0xff] (%p2398_p9)  ;;  %v1724_v46 = vld [vmem:[%s2454_s26 + $0x80] sm:$0xff] (%p2398_p9)  ;;  %v1726_v57 = vld [vmem:[%s2454_s26 + $0x88] sm:$0xff] (%p2398_p9) }
 0x4e0   : > { %1693 = vst [vmem:[%s3428_s20] sm:$0xff] (%p2398_p9), %v1692_v1  ;;  %1695 = vst [vmem:[%s3428_s20 + $0x8] sm:$0xff] (%p2398_p9), %v1694_v0  ;;  %v1728_v47 = vld [vmem:[%s2454_s26 + $0x90] sm:$0xff] (%p2398_p9)  ;;  %v1730_v5 = vld [vmem:[%s2454_s26 + $0x98] sm:$0xff] (%p2398_p9) }
 0x4e1   : > { %1697 = vst [vmem:[%s3428_s20 + $0x30] sm:$0xff] %v1696_v36  ;;  %1699 = vst [vmem:[%s3428_s20 + $0x38] sm:$0xff] %v1698_v63  ;;  %v1732_v62 = vld [vmem:[%s2454_s26 + $0xa0] sm:$0xff]  ;;  %v1734_v17 = vld [vmem:[%s2454_s26 + $0xa8] sm:$0xff] }
 0x4e2   : > { %1701 = vst [vmem:[%s3428_s20 + $0x60] sm:$0xff] %v1700_v44  ;;  %1703 = vst [vmem:[%s3428_s20 + $0x68] sm:$0xff] %v1702_v55  ;;  %v1736_v56 = vld [vmem:[%s2454_s26 + $0xb0] sm:$0xff]  ;;  %v1738_v20 = vld [vmem:[%s2454_s26 + $0xb8] sm:$0xff] }
 0x4e3   : > { %1705 = vst [vmem:[%s3428_s20 + $0x90] sm:$0xff] %v1704_v39  ;;  %1707 = vst [vmem:[%s3428_s20 + $0x98] sm:$0xff] %v1706_v52  ;;  %v1740_v40 = vld [vmem:[%s2454_s26 + $0xc0] sm:$0xff]  ;;  %v1742_v41 = vld [vmem:[%s2454_s26 + $0xc8] sm:$0xff] }
 0x4e4   : > { %1709 = vst [vmem:[%s3428_s20 + $0xc0] sm:$0xff] %v1708_v26  ;;  %1711 = vst [vmem:[%s3428_s20 + $0xc8] sm:$0xff] %v1710_v8  ;;  %v1744_v12 = vld [vmem:[%s2454_s26 + $0xd0] sm:$0xff]  ;;  %v1746_v18 = vld [vmem:[%s2454_s26 + $0xd8] sm:$0xff] }
 0x4e5   : > { %1713 = vst [vmem:[%s3428_s20 + $0xf0] sm:$0xff] %v1712_v53  ;;  %1715 = vst [vmem:[%s3428_s20 + $0xf8] sm:$0xff] %v1714_v6  ;;  %v1748_v54 = vld [vmem:[%s2454_s26 + $0xe0] sm:$0xff]  ;;  %v1750_v9 = vld [vmem:[%s2454_s26 + $0xe8] sm:$0xff] }
 0x4e6   : > { %1717 = vst [vmem:[%s3428_s20 + $0x120] sm:$0xff] %v1716_v32  ;;  %1719 = vst [vmem:[%s3428_s20 + $0x128] sm:$0xff] %v1718_v25  ;;  %v1752_v45 = vld [vmem:[%s2454_s26 + $0xf0] sm:$0xff]  ;;  %v1754_v2 = vld [vmem:[%s2454_s26 + $0xf8] sm:$0xff] }
 0x4e7   : > { %1721 = vst [vmem:[%s3428_s20 + $0x150] sm:$0xff] %v1720_v4  ;;  %1723 = vst [vmem:[%s3428_s20 + $0x158] sm:$0xff] %v1722_v38 }
 0x4e8   : > { %1725 = vst [vmem:[%s3428_s20 + $0x180] sm:$0xff] %v1724_v46  ;;  %1727 = vst [vmem:[%s3428_s20 + $0x188] sm:$0xff] %v1726_v57 }
 0x4e9   : > { %1729 = vst [vmem:[%s3428_s20 + $0x1b0] sm:$0xff] %v1728_v47  ;;  %1731 = vst [vmem:[%s3428_s20 + $0x1b8] sm:$0xff] %v1730_v5 }
 0x4ea   : > { %1733 = vst [vmem:[%s3428_s20 + $0x1e0] sm:$0xff] %v1732_v62  ;;  %1735 = vst [vmem:[%s3428_s20 + $0x1e8] sm:$0xff] %v1734_v17 }
 0x4eb   : > { %1737 = vst [vmem:[%s3428_s20 + $0x210] sm:$0xff] %v1736_v56  ;;  %1739 = vst [vmem:[%s3428_s20 + $0x218] sm:$0xff] %v1738_v20 }
 0x4ec   : > { %1741 = vst [vmem:[%s3428_s20 + $0x240] sm:$0xff] %v1740_v40  ;;  %1743 = vst [vmem:[%s3428_s20 + $0x248] sm:$0xff] %v1742_v41 }
 0x4ed   : > { %1745 = vst [vmem:[%s3428_s20 + $0x270] sm:$0xff] %v1744_v12  ;;  %1747 = vst [vmem:[%s3428_s20 + $0x278] sm:$0xff] %v1746_v18 }
 0x4ee   : > { %1749 = vst [vmem:[%s3428_s20 + $0x2a0] sm:$0xff] %v1748_v54  ;;  %1751 = vst [vmem:[%s3428_s20 + $0x2a8] sm:$0xff] %v1750_v9 }
 0x4ef   : > { %1753 = vst [vmem:[%s3428_s20 + $0x2d0] sm:$0xff] %v1752_v45  ;;  %1755 = vst [vmem:[%s3428_s20 + $0x2d8] sm:$0xff] %v1754_v2 }
 0x4f0 PF: > { %s15_s23 = sadd.s32 1, %s2301_s23   ;;  %s3519_s12 = sld [smem:[#allocation7_spill]] }
 0x4f1   : > { %p12_p5 = scmp.ge.s32.totalorder %s15_s23, 11   ;;  %s3520_s15 = smov %s2273_s16 }
 0x4f2   : > { %s3521_s16 = smov %s2403_s8  ;;  %s3522_s17 = smov %s2281_s18 }
 0x4f3   : > { %s3523_s18 = smov %s2392_s30  ;;  %s3524_s19 = smov %s2293_s21 }
 0x4f4   : > { %s3525_s20 = smov %s2297_s22  ;;  %s3526_s21 = smov %s3529_s25 }
 0x4f5   :  { %14 = sbr.rel (!%p12_p5) target bundleno = 7 (0x7), region = 162 }
 0x4f6   : > { %s3527_s22 = smov %s3519_s12 }

</bundles_post_ra>
